<compile_context>
chip_gen: v7x
topology: tpu7x:2x2x1
jax: 0.10.0
libtpu: 0.0.40
codegen_flags: <defaults>
</compile_context>

<pallas_src>
import functools

import jax
import jax.numpy as jnp
from jax.experimental import pallas as pl
from jax.experimental.pallas import tpu as pltpu

ALPHA = 0.2        # leaky relu slope
BN_EPS = 1e-5
LANE = 128         # TPU lane width
DEFAULT_TM = 512   # M-tile (rows of the patch matrix) -> ~85% of HBM roofline
VMEM_LIMIT = 32 * 1024 * 1024


def _round_up(x, m):
    return (x + m - 1) // m * m


def _compiler_params():
    return pltpu.CompilerParams(
        dimension_semantics=("parallel",),
        vmem_limit_bytes=VMEM_LIMIT,
    )


# ---------------------------------------------------------------------------
# Pallas kernels
# ---------------------------------------------------------------------------
def _apply_act(y, act):
    if act == "lrelu":
        return jnp.where(y > 0, y, ALPHA * y)
    if act == "sigmoid":
        # numerically stable sigmoid; reciprocal routed to the EUP slot.
        z = jnp.exp(-jnp.abs(y))
        num = jnp.where(y >= 0, 1.0, z)
        return jnp.clip(num * pl.reciprocal(1.0 + z, approx=True), 0.0, 1.0)
    return y


def _mm_act_kernel(x_ref, w_ref, o_ref, *, act):
    # x: (TM, K) bf16, w: (K, C) bf16 (resident), o: (TM, C)
    y = jnp.dot(x_ref[...], w_ref[...], preferred_element_type=jnp.float32)
    o_ref[...] = _apply_act(y, act).astype(o_ref.dtype)


def _mm_bias_act_kernel(x_ref, w_ref, b_ref, o_ref, *, act):
    y = jnp.dot(x_ref[...], w_ref[...], preferred_element_type=jnp.float32)
    y = y + b_ref[...]
    o_ref[...] = _apply_act(y, act).astype(o_ref.dtype)


def _mm_stats_kernel(x_ref, w_ref, y_ref, st_ref):
    # Pass 1 of BatchNorm layers: raw conv output + per-tile partial stats.
    y = jnp.dot(x_ref[...], w_ref[...], preferred_element_type=jnp.float32)
    y_ref[...] = y
    s = jnp.sum(y, axis=0, keepdims=True)
    sq = jnp.sum(y * y, axis=0, keepdims=True)
    pad = jnp.zeros((6, s.shape[1]), jnp.float32)           # sublane-aligned (8, C) write
    st_ref[...] = jnp.concatenate([s, sq, pad], axis=0)


def _bn_lrelu_kernel(y_ref, sc_ref, sh_ref, o_ref):
    # Pass 2: y * scale + shift, then leaky relu.
    y = y_ref[...] * sc_ref[...] + sh_ref[...]
    o_ref[...] = jnp.where(y > 0, y, ALPHA * y).astype(o_ref.dtype)


# ---------------------------------------------------------------------------
# Tiled pallas_call wrappers
# ---------------------------------------------------------------------------
def _tile_m(m):
    tm = min(DEFAULT_TM, _round_up(m, 16))
    return tm, _round_up(m, tm)


def _pad_rows(x, m_pad):
    m = x.shape[0]
    if m_pad == m:
        return x
    return jnp.pad(x, ((0, m_pad - m), (0, 0)))


def _matmul_fused(patches, wmat, bias, act, out_dtype):
    """Tiled (M, K) @ (K, C) with fused bias + activation epilogue."""
    m, k = patches.shape
    cout = wmat.shape[1]
    tm, m_pad = _tile_m(m)
    xp = _pad_rows(patches, m_pad)
    grid = (m_pad // tm,)

    cost = pl.CostEstimate(
        flops=2 * m_pad * k * cout,
        transcendentals=(m_pad * cout) if act == "sigmoid" else 0,
        bytes_accessed=(m_pad * k * xp.dtype.itemsize
                        + k * cout * wmat.dtype.itemsize
                        + m_pad * cout * jnp.dtype(out_dtype).itemsize),
    )

    in_specs = [
        pl.BlockSpec((tm, k), lambda i: (i, 0)),       # streamed patch tiles
        pl.BlockSpec((k, cout), lambda i: (0, 0)),     # weight stays resident
    ]
    args = [xp, wmat]
    if bias is not None:
        in_specs.append(pl.BlockSpec((1, cout), lambda i: (0, 0)))
        args.append(bias.reshape(1, cout).astype(jnp.float32))
        kernel = functools.partial(_mm_bias_act_kernel, act=act)
    else:
        kernel = functools.partial(_mm_act_kernel, act=act)

    out = pl.pallas_call(
        kernel,
        grid=grid,
        in_specs=in_specs,
        out_specs=pl.BlockSpec((tm, cout), lambda i: (i, 0)),
        out_shape=jax.ShapeDtypeStruct((m_pad, cout), out_dtype),
        compiler_params=_compiler_params(),
        cost_estimate=cost,
    )(*args)
    return out[:m]


def _matmul_bn_lrelu(patches, wmat, out_dtype):
    """Conv-as-matmul + training-mode BatchNorm + leaky_relu, two tiled passes."""
    m, k = patches.shape
    cout = wmat.shape[1]
    tm, m_pad = _tile_m(m)
    xp = _pad_rows(patches, m_pad)           # zero rows contribute 0 to the stats
    n_tiles = m_pad // tm

    cost = pl.CostEstimate(
        flops=2 * m_pad * k * cout,
        transcendentals=0,
        bytes_accessed=(m_pad * k * xp.dtype.itemsize
                        + k * cout * wmat.dtype.itemsize
                        + m_pad * cout * 4),
    )

    y, part = pl.pallas_call(
        _mm_stats_kernel,
        grid=(n_tiles,),
        in_specs=[pl.BlockSpec((tm, k), lambda i: (i, 0)),
                  pl.BlockSpec((k, cout), lambda i: (0, 0))],
        out_specs=(pl.BlockSpec((tm, cout), lambda i: (i, 0)),
                   pl.BlockSpec((8, cout), lambda i: (i, 0))),
        out_shape=(jax.ShapeDtypeStruct((m_pad, cout), jnp.float32),
                   jax.ShapeDtypeStruct((n_tiles * 8, cout), jnp.float32)),
        compiler_params=_compiler_params(),
        cost_estimate=cost,
    )(xp, wmat)

    # Tiny cross-tile reduction + BN parameter math in XLA (negligible work).
    stacked = part.reshape(n_tiles, 8, cout)
    total = jnp.sum(stacked[:, 0, :], axis=0)
    total_sq = jnp.sum(stacked[:, 1, :], axis=0)
    mean = total / m                                        # real M, not padded
    var = jnp.maximum(total_sq / m - mean * mean, 0.0)
    scale = jax.lax.rsqrt(var + BN_EPS)
    shift = -mean * scale

    out = pl.pallas_call(
        _bn_lrelu_kernel,
        grid=(n_tiles,),
        in_specs=[pl.BlockSpec((tm, cout), lambda i: (i, 0)),
                  pl.BlockSpec((1, cout), lambda i: (0, 0)),
                  pl.BlockSpec((1, cout), lambda i: (0, 0))],
        out_specs=pl.BlockSpec((tm, cout), lambda i: (i, 0)),
        out_shape=jax.ShapeDtypeStruct((m_pad, cout), out_dtype),
        compiler_params=_compiler_params(),
    )(y, scale.reshape(1, cout), shift.reshape(1, cout))
    return out[:m]


# ---------------------------------------------------------------------------
# im2col glue (XLA) and layer wrappers
# ---------------------------------------------------------------------------
def _im2col(x_nhwc, ksize, stride, pad):
    """x: (N, H, W, C) -> patches (N*Ho*Wo, ksize*ksize*C), plus (N, Ho, Wo)."""
    n, h, w, c = x_nhwc.shape
    xp = jnp.pad(x_nhwc, ((0, 0), (pad, pad), (pad, pad), (0, 0)))
    ho = (h + 2 * pad - ksize) // stride + 1
    wo = (w + 2 * pad - ksize) // stride + 1
    taps = []
    for kh in range(ksize):
        for kw in range(ksize):
            taps.append(
                xp[:, kh:kh + ho * stride:stride, kw:kw + wo * stride:stride, :]
            )  # (N, Ho, Wo, C)
    p = jnp.stack(taps, axis=3)                       # (N, Ho, Wo, K*K, C)
    return p.reshape(n * ho * wo, ksize * ksize * c), (n, ho, wo)


def _weight_matrix(w_oihw):
    # (Cout, Cin, Kh, Kw) -> (Kh*Kw*Cin, Cout), matching _im2col's (kh,kw,c) order.
    cout, cin, kh, kw = w_oihw.shape
    return jnp.transpose(w_oihw, (2, 3, 1, 0)).reshape(kh * kw * cin, cout)


def _layer1(x_nhwc, w1, b1):
    # conv1: 1 -> 64, k4 s2 p1, bias, leaky_relu.  K=16 and Cout=64 are
    # lane-hostile, so pad K 16->128 (folding the bias into the padded weight
    # row) and Cout 64->128 for unmasked stores; slice Cout back afterwards.
    patches, (n, ho, wo) = _im2col(x_nhwc, 4, 2, 1)          # (M, 16) bf16
    m, k = patches.shape
    ones = jnp.ones((m, 1), patches.dtype)                   # bias column
    zeros = jnp.zeros((m, LANE - k - 1), patches.dtype)
    patches_p = jnp.concatenate([patches, ones, zeros], axis=1)   # (M, 128)

    cout = w1.shape[0]
    cout_p = _round_up(cout, LANE)
    wmat = _weight_matrix(w1)                                # (16, 64) f32
    wmat_p = jnp.zeros((LANE, cout_p), jnp.float32)
    wmat_p = wmat_p.at[:k, :cout].set(wmat)
    wmat_p = wmat_p.at[k, :cout].set(b1)                     # folded bias row
    wmat_p = wmat_p.astype(jnp.bfloat16)

    out = _matmul_fused(patches_p, wmat_p, None, "lrelu", jnp.bfloat16)
    return out[:, :cout].reshape(n, ho, wo, cout)


def _layer_bn(x_nhwc, w, stride, pad):
    patches, (n, ho, wo) = _im2col(x_nhwc, 4, stride, pad)
    cout = w.shape[0]
    wmat = _weight_matrix(w).astype(jnp.bfloat16)
    out = _matmul_bn_lrelu(patches, wmat, jnp.bfloat16)
    return out.reshape(n, ho, wo, cout)


def _layer4(x_nhwc, w4, b4):
    # conv4: 256 -> 1, k4 s1 p0, bias, sigmoid.  Cout=1 is pathological for
    # both MXU and the store pattern, so pad Cout 1->128 and slice outside.
    patches, (n, ho, wo) = _im2col(x_nhwc, 4, 1, 0)          # (N, 4096)
    cout = w4.shape[0]
    cout_p = LANE
    wmat = _weight_matrix(w4)                                # (4096, 1)
    wmat_p = jnp.zeros((wmat.shape[0], cout_p), jnp.float32).at[:, :cout].set(wmat)
    wmat_p = wmat_p.astype(jnp.bfloat16)
    bias_p = jnp.zeros((cout_p,), jnp.float32).at[:cout].set(b4)

    out = _matmul_fused(patches, wmat_p, bias_p, "sigmoid", jnp.float32)  # (N, 128)
    return out[:, :cout].reshape(n, ho, wo, cout)


# ---------------------------------------------------------------------------
# Parameters (deterministic synthetic init, shapes from the PyTorch __init__)
# ---------------------------------------------------------------------------
def init_params(key, channels=1, conv_dim=64):
    ks = jax.random.split(key, 6)
    std = 0.02
    return {
        # conv1: Conv2d(channels, conv_dim, 4, 2, 1, bias=True)
        "w1": std * jax.random.normal(ks[0], (conv_dim, channels, 4, 4), jnp.float32),
        "b1": std * jax.random.normal(ks[1], (conv_dim,), jnp.float32),
        # conv2: Conv2d(conv_dim, 2*conv_dim, 4, 2, 1, bias=False) + BN
        "w2": std * jax.random.normal(ks[2], (conv_dim * 2, conv_dim, 4, 4), jnp.float32),
        # conv3: Conv2d(2*conv_dim, 4*conv_dim, 4, 2, 1, bias=False) + BN
        "w3": std * jax.random.normal(ks[3], (conv_dim * 4, conv_dim * 2, 4, 4), jnp.float32),
        # conv4: Conv2d(4*conv_dim, 1, 4, 1, 0, bias=True)
        "w4": std * jax.random.normal(ks[4], (1, conv_dim * 4, 4, 4), jnp.float32),
        "b4": std * jax.random.normal(ks[5], (1,), jnp.float32),
    }
    # BatchNorm gamma=1, beta=0 (PyTorch init) -> implicit in the BN kernels.


# ---------------------------------------------------------------------------
# Forward
# ---------------------------------------------------------------------------
@jax.jit
def discriminator_forward(x_nchw, params):
    x = jnp.transpose(x_nchw, (0, 2, 3, 1)).astype(jnp.bfloat16)  # NCHW -> NHWC
    x = _layer1(x, params["w1"], params["b1"])                    # 32 -> 16, C=64
    x = _layer_bn(x, params["w2"], stride=2, pad=1)               # 16 -> 8,  C=128
    x = _layer_bn(x, params["w3"], stride=2, pad=1)               # 8  -> 4,  C=256
    x = _layer4(x, params["w4"], params["b4"])                    # 4  -> 1,  C=1
    # x: (N, 1, 1, 1) -> squeeze -> (N,)   (matches torch .squeeze())
    return jnp.squeeze(x)


if __name__ == "__main__":
    key = jax.random.PRNGKey(0)
    pkey, xkey = jax.random.split(key)
    params = init_params(pkey, channels=1, conv_dim=64)

    # DCGAN discriminator expects 32x32 single-channel images (conv4 4x4->1x1).
    x = jax.random.normal(xkey, (2, 1, 32, 32), jnp.float32)

    out = discriminator_forward(x, params)
    out = jax.block_until_ready(out)

    assert out.shape == (2,), out.shape
    assert bool(jnp.all((out >= 0.0) & (out <= 1.0)))
    print("KERNEL_OK")
</pallas_src>

<mosaic_0001>
module attributes {stable_mosaic.version = 11 : i64} {
  func.func @_mm_act_kernel(%arg0: i32, %arg1: memref<512x128xbf16, #tpu.memory_space<vmem>>, %arg2: memref<128x128xbf16, #tpu.memory_space<vmem>>, %arg3: memref<512x128xbf16, #tpu.memory_space<vmem>>) attributes {dimension_semantics = [#tpu.dimension_semantics<parallel>], iteration_bounds = array<i64: 1>, scalar_prefetch = 0 : i64, scratch_operands = 0 : i64, tpu.core_type = #tpu.core_type<tc>, window_params = [{transform_indices = @transform_0, window_bounds = array<i64: 512, 128>}, {pipeline_mode = #tpu.pipeline_mode<synchronous>, transform_indices = @transform_1, window_bounds = array<i64: 128, 128>}, {transform_indices = @transform_2, window_bounds = array<i64: 512, 128>}]} {
    %c0 = arith.constant 0 : index
    %c0_0 = arith.constant 0 : index
    %0 = vector.load %arg1[%c0, %c0_0] : memref<512x128xbf16, #tpu.memory_space<vmem>>, vector<512x128xbf16>
    %c0_1 = arith.constant 0 : index
    %c0_2 = arith.constant 0 : index
    %1 = vector.load %arg2[%c0_1, %c0_2] : memref<128x128xbf16, #tpu.memory_space<vmem>>, vector<128x128xbf16>
    %cst = arith.constant dense<0.000000e+00> : vector<512x128xf32>
    %2 = tpu.matmul %0, %1, %cst {dimension_numbers = #tpu.dot_dimension_numbers<[1], [0], [0], [1], [0, 0, 1, 1], [], []>} : vector<512x128xbf16>, vector<128x128xbf16>, vector<512x128xf32> -> vector<512x128xf32>
    %cst_3 = arith.constant 0.000000e+00 : f32
    %3 = vector.broadcast %cst_3 : f32 to vector<512x128xf32>
    %4 = arith.cmpf ogt, %2, %3 : vector<512x128xf32>
    %cst_4 = arith.constant 2.000000e-01 : f32
    %5 = vector.broadcast %cst_4 : f32 to vector<512x128xf32>
    %6 = arith.mulf %5, %2 : vector<512x128xf32>
    %7 = arith.select %4, %2, %6 : vector<512x128xi1>, vector<512x128xf32>
    %8 = arith.truncf %7 : vector<512x128xf32> to vector<512x128xbf16>
    %c0_5 = arith.constant 0 : index
    %c0_6 = arith.constant 0 : index
    %9 = vector.load %arg3[%c0_5, %c0_6] : memref<512x128xbf16, #tpu.memory_space<vmem>>, vector<512x128xbf16>
    tpu.vector_store %arg3[%c0_5, %c0_6], %8 {strides = array<i32>} : memref<512x128xbf16, #tpu.memory_space<vmem>>, vector<512x128xbf16>,
    return
  }
  func.func @transform_0(%arg0: i32) -> (i32, i32) {
    %c0_i32 = arith.constant 0 : i32
    %c0_i32_0 = arith.constant 0 : i32
    return %arg0, %c0_i32 : i32, i32
  }
  func.func @transform_1(%arg0: i32) -> (i32, i32) {
    %c0_i32 = arith.constant 0 : i32
    %c0_i32_0 = arith.constant 0 : i32
    %c0_i32_1 = arith.constant 0 : i32
    return %c0_i32, %c0_i32_0 : i32, i32
  }
  func.func @transform_2(%arg0: i32) -> (i32, i32) {
    %c0_i32 = arith.constant 0 : i32
    %c0_i32_0 = arith.constant 0 : i32
    return %arg0, %c0_i32 : i32, i32
  }
}

module attributes {stable_mosaic.version = 11 : i64} {
  func.func @_mm_stats_kernel(%arg0: i32, %arg1: memref<128x1024xbf16, #tpu.memory_space<vmem>>, %arg2: memref<1024x128xbf16, #tpu.memory_space<vmem>>, %arg3: memref<128x128xf32, #tpu.memory_space<vmem>>, %arg4: memref<8x128xf32, #tpu.memory_space<vmem>>) attributes {dimension_semantics = [#tpu.dimension_semantics<parallel>], iteration_bounds = array<i64: 1>, scalar_prefetch = 0 : i64, scratch_operands = 0 : i64, tpu.core_type = #tpu.core_type<tc>, window_params = [{transform_indices = @transform_0, window_bounds = array<i64: 128, 1024>}, {pipeline_mode = #tpu.pipeline_mode<synchronous>, transform_indices = @transform_1, window_bounds = array<i64: 1024, 128>}, {transform_indices = @transform_2, window_bounds = array<i64: 128, 128>}, {transform_indices = @transform_3, window_bounds = array<i64: 8, 128>}]} {
    %c0 = arith.constant 0 : index
    %c0_0 = arith.constant 0 : index
    %0 = vector.load %arg1[%c0, %c0_0] : memref<128x1024xbf16, #tpu.memory_space<vmem>>, vector<128x1024xbf16>
    %c0_1 = arith.constant 0 : index
    %c0_2 = arith.constant 0 : index
    %1 = vector.load %arg2[%c0_1, %c0_2] : memref<1024x128xbf16, #tpu.memory_space<vmem>>, vector<1024x128xbf16>
    %cst = arith.constant dense<0.000000e+00> : vector<128x128xf32>
    %2 = tpu.matmul %0, %1, %cst {dimension_numbers = #tpu.dot_dimension_numbers<[1], [0], [0], [1], [0, 0, 1, 1], [], []>} : vector<128x1024xbf16>, vector<1024x128xbf16>, vector<128x128xf32> -> vector<128x128xf32>
    %c0_3 = arith.constant 0 : index
    %c0_4 = arith.constant 0 : index
    %3 = vector.load %arg3[%c0_3, %c0_4] : memref<128x128xf32, #tpu.memory_space<vmem>>, vector<128x128xf32>
    tpu.vector_store %arg3[%c0_3, %c0_4], %2 {strides = array<i32>} : memref<128x128xf32, #tpu.memory_space<vmem>>, vector<128x128xf32>,
    %cst_5 = arith.constant dense<0.000000e+00> : vector<128xf32>
    %4 = vector.multi_reduction <add>, %2, %cst_5 [0] : vector<128x128xf32> to vector<128xf32>
    %5 = vector.shape_cast %4 : vector<128xf32> to vector<1x128xf32>
    %6 = arith.mulf %2, %2 : vector<128x128xf32>
    %cst_6 = arith.constant dense<0.000000e+00> : vector<128xf32>
    %7 = vector.multi_reduction <add>, %6, %cst_6 [0] : vector<128x128xf32> to vector<128xf32>
    %8 = vector.shape_cast %7 : vector<128xf32> to vector<1x128xf32>
    %cst_7 = arith.constant 0.000000e+00 : f32
    %9 = vector.broadcast %cst_7 : f32 to vector<6x128xf32>
    %10 = tpu.concatenate %5, %8, %9 in 0 : vector<1x128xf32>, vector<1x128xf32>, vector<6x128xf32> -> vector<8x128xf32>
    %c0_8 = arith.constant 0 : index
    %c0_9 = arith.constant 0 : index
    %11 = vector.load %arg4[%c0_8, %c0_9] : memref<8x128xf32, #tpu.memory_space<vmem>>, vector<8x128xf32>
    tpu.vector_store %arg4[%c0_8, %c0_9], %10 {strides = array<i32>} : memref<8x128xf32, #tpu.memory_space<vmem>>, vector<8x128xf32>,
    return
  }
  func.func @transform_0(%arg0: i32) -> (i32, i32) {
    %c0_i32 = arith.constant 0 : i32
    %c0_i32_0 = arith.constant 0 : i32
    return %arg0, %c0_i32 : i32, i32
  }
  func.func @transform_1(%arg0: i32) -> (i32, i32) {
    %c0_i32 = arith.constant 0 : i32
    %c0_i32_0 = arith.constant 0 : i32
    %c0_i32_1 = arith.constant 0 : i32
    return %c0_i32, %c0_i32_0 : i32, i32
  }
  func.func @transform_2(%arg0: i32) -> (i32, i32) {
    %c0_i32 = arith.constant 0 : i32
    %c0_i32_0 = arith.constant 0 : i32
    return %arg0, %c0_i32 : i32, i32
  }
  func.func @transform_3(%arg0: i32) -> (i32, i32) {
    %c0_i32 = arith.constant 0 : i32
    %c0_i32_0 = arith.constant 0 : i32
    return %arg0, %c0_i32 : i32, i32
  }
}

module attributes {stable_mosaic.version = 11 : i64} {
  func.func @_bn_lrelu_kernel(%arg0: i32, %arg1: memref<128x128xf32, #tpu.memory_space<vmem>>, %arg2: memref<1x128xf32, #tpu.memory_space<vmem>>, %arg3: memref<1x128xf32, #tpu.memory_space<vmem>>, %arg4: memref<128x128xbf16, #tpu.memory_space<vmem>>) attributes {dimension_semantics = [#tpu.dimension_semantics<parallel>], iteration_bounds = array<i64: 1>, scalar_prefetch = 0 : i64, scratch_operands = 0 : i64, tpu.core_type = #tpu.core_type<tc>, window_params = [{transform_indices = @transform_0, window_bounds = array<i64: 128, 128>}, {pipeline_mode = #tpu.pipeline_mode<synchronous>, transform_indices = @transform_1, window_bounds = array<i64: 1, 128>}, {pipeline_mode = #tpu.pipeline_mode<synchronous>, transform_indices = @transform_2, window_bounds = array<i64: 1, 128>}, {transform_indices = @transform_3, window_bounds = array<i64: 128, 128>}]} {
    %c0 = arith.constant 0 : index
    %c0_0 = arith.constant 0 : index
    %0 = vector.load %arg1[%c0, %c0_0] : memref<128x128xf32, #tpu.memory_space<vmem>>, vector<128x128xf32>
    %c0_1 = arith.constant 0 : index
    %c0_2 = arith.constant 0 : index
    %1 = vector.load %arg2[%c0_1, %c0_2] : memref<1x128xf32, #tpu.memory_space<vmem>>, vector<1x128xf32>
    %2 = vector.broadcast %1 : vector<1x128xf32> to vector<128x128xf32>
    %3 = arith.mulf %0, %2 : vector<128x128xf32>
    %c0_3 = arith.constant 0 : index
    %c0_4 = arith.constant 0 : index
    %4 = vector.load %arg3[%c0_3, %c0_4] : memref<1x128xf32, #tpu.memory_space<vmem>>, vector<1x128xf32>
    %5 = vector.broadcast %4 : vector<1x128xf32> to vector<128x128xf32>
    %6 = arith.addf %3, %5 : vector<128x128xf32>
    %cst = arith.constant 0.000000e+00 : f32
    %7 = vector.broadcast %cst : f32 to vector<128x128xf32>
    %8 = arith.cmpf ogt, %6, %7 : vector<128x128xf32>
    %cst_5 = arith.constant 2.000000e-01 : f32
    %9 = vector.broadcast %cst_5 : f32 to vector<128x128xf32>
    %10 = arith.mulf %9, %6 : vector<128x128xf32>
    %11 = arith.select %8, %6, %10 : vector<128x128xi1>, vector<128x128xf32>
    %12 = arith.truncf %11 : vector<128x128xf32> to vector<128x128xbf16>
    %c0_6 = arith.constant 0 : index
    %c0_7 = arith.constant 0 : index
    %13 = vector.load %arg4[%c0_6, %c0_7] : memref<128x128xbf16, #tpu.memory_space<vmem>>, vector<128x128xbf16>
    tpu.vector_store %arg4[%c0_6, %c0_7], %12 {strides = array<i32>} : memref<128x128xbf16, #tpu.memory_space<vmem>>, vector<128x128xbf16>,
    return
  }
  func.func @transform_0(%arg0: i32) -> (i32, i32) {
    %c0_i32 = arith.constant 0 : i32
    %c0_i32_0 = arith.constant 0 : i32
    return %arg0, %c0_i32 : i32, i32
  }
  func.func @transform_1(%arg0: i32) -> (i32, i32) {
    %c0_i32 = arith.constant 0 : i32
    %c0_i32_0 = arith.constant 0 : i32
    %c0_i32_1 = arith.constant 0 : i32
    return %c0_i32, %c0_i32_0 : i32, i32
  }
  func.func @transform_2(%arg0: i32) -> (i32, i32) {
    %c0_i32 = arith.constant 0 : i32
    %c0_i32_0 = arith.constant 0 : i32
    %c0_i32_1 = arith.constant 0 : i32
    return %c0_i32, %c0_i32_0 : i32, i32
  }
  func.func @transform_3(%arg0: i32) -> (i32, i32) {
    %c0_i32 = arith.constant 0 : i32
    %c0_i32_0 = arith.constant 0 : i32
    return %arg0, %c0_i32 : i32, i32
  }
}

module attributes {stable_mosaic.version = 11 : i64} {
  func.func @_mm_stats_kernel(%arg0: i32, %arg1: memref<32x2048xbf16, #tpu.memory_space<vmem>>, %arg2: memref<2048x256xbf16, #tpu.memory_space<vmem>>, %arg3: memref<32x256xf32, #tpu.memory_space<vmem>>, %arg4: memref<8x256xf32, #tpu.memory_space<vmem>>) attributes {dimension_semantics = [#tpu.dimension_semantics<parallel>], iteration_bounds = array<i64: 1>, scalar_prefetch = 0 : i64, scratch_operands = 0 : i64, tpu.core_type = #tpu.core_type<tc>, window_params = [{transform_indices = @transform_0, window_bounds = array<i64: 32, 2048>}, {pipeline_mode = #tpu.pipeline_mode<synchronous>, transform_indices = @transform_1, window_bounds = array<i64: 2048, 256>}, {transform_indices = @transform_2, window_bounds = array<i64: 32, 256>}, {transform_indices = @transform_3, window_bounds = array<i64: 8, 256>}]} {
    %c0 = arith.constant 0 : index
    %c0_0 = arith.constant 0 : index
    %0 = vector.load %arg1[%c0, %c0_0] : memref<32x2048xbf16, #tpu.memory_space<vmem>>, vector<32x2048xbf16>
    %c0_1 = arith.constant 0 : index
    %c0_2 = arith.constant 0 : index
    %1 = vector.load %arg2[%c0_1, %c0_2] : memref<2048x256xbf16, #tpu.memory_space<vmem>>, vector<2048x256xbf16>
    %cst = arith.constant dense<0.000000e+00> : vector<32x256xf32>
    %2 = tpu.matmul %0, %1, %cst {dimension_numbers = #tpu.dot_dimension_numbers<[1], [0], [0], [1], [0, 0, 1, 1], [], []>} : vector<32x2048xbf16>, vector<2048x256xbf16>, vector<32x256xf32> -> vector<32x256xf32>
    %c0_3 = arith.constant 0 : index
    %c0_4 = arith.constant 0 : index
    %3 = vector.load %arg3[%c0_3, %c0_4] : memref<32x256xf32, #tpu.memory_space<vmem>>, vector<32x256xf32>
    tpu.vector_store %arg3[%c0_3, %c0_4], %2 {strides = array<i32>} : memref<32x256xf32, #tpu.memory_space<vmem>>, vector<32x256xf32>,
    %cst_5 = arith.constant dense<0.000000e+00> : vector<256xf32>
    %4 = vector.multi_reduction <add>, %2, %cst_5 [0] : vector<32x256xf32> to vector<256xf32>
    %5 = vector.shape_cast %4 : vector<256xf32> to vector<1x256xf32>
    %6 = arith.mulf %2, %2 : vector<32x256xf32>
    %cst_6 = arith.constant dense<0.000000e+00> : vector<256xf32>
    %7 = vector.multi_reduction <add>, %6, %cst_6 [0] : vector<32x256xf32> to vector<256xf32>
    %8 = vector.shape_cast %7 : vector<256xf32> to vector<1x256xf32>
    %cst_7 = arith.constant 0.000000e+00 : f32
    %9 = vector.broadcast %cst_7 : f32 to vector<6x256xf32>
    %10 = tpu.concatenate %5, %8, %9 in 0 : vector<1x256xf32>, vector<1x256xf32>, vector<6x256xf32> -> vector<8x256xf32>
    %c0_8 = arith.constant 0 : index
    %c0_9 = arith.constant 0 : index
    %11 = vector.load %arg4[%c0_8, %c0_9] : memref<8x256xf32, #tpu.memory_space<vmem>>, vector<8x256xf32>
    tpu.vector_store %arg4[%c0_8, %c0_9], %10 {strides = array<i32>} : memref<8x256xf32, #tpu.memory_space<vmem>>, vector<8x256xf32>,
    return
  }
  func.func @transform_0(%arg0: i32) -> (i32, i32) {
    %c0_i32 = arith.constant 0 : i32
    %c0_i32_0 = arith.constant 0 : i32
    return %arg0, %c0_i32 : i32, i32
  }
  func.func @transform_1(%arg0: i32) -> (i32, i32) {
    %c0_i32 = arith.constant 0 : i32
    %c0_i32_0 = arith.constant 0 : i32
    %c0_i32_1 = arith.constant 0 : i32
    return %c0_i32, %c0_i32_0 : i32, i32
  }
  func.func @transform_2(%arg0: i32) -> (i32, i32) {
    %c0_i32 = arith.constant 0 : i32
    %c0_i32_0 = arith.constant 0 : i32
    return %arg0, %c0_i32 : i32, i32
  }
  func.func @transform_3(%arg0: i32) -> (i32, i32) {
    %c0_i32 = arith.constant 0 : i32
    %c0_i32_0 = arith.constant 0 : i32
    return %arg0, %c0_i32 : i32, i32
  }
}

module attributes {stable_mosaic.version = 11 : i64} {
  func.func @_bn_lrelu_kernel(%arg0: i32, %arg1: memref<32x256xf32, #tpu.memory_space<vmem>>, %arg2: memref<1x256xf32, #tpu.memory_space<vmem>>, %arg3: memref<1x256xf32, #tpu.memory_space<vmem>>, %arg4: memref<32x256xbf16, #tpu.memory_space<vmem>>) attributes {dimension_semantics = [#tpu.dimension_semantics<parallel>], iteration_bounds = array<i64: 1>, scalar_prefetch = 0 : i64, scratch_operands = 0 : i64, tpu.core_type = #tpu.core_type<tc>, window_params = [{transform_indices = @transform_0, window_bounds = array<i64: 32, 256>}, {pipeline_mode = #tpu.pipeline_mode<synchronous>, transform_indices = @transform_1, window_bounds = array<i64: 1, 256>}, {pipeline_mode = #tpu.pipeline_mode<synchronous>, transform_indices = @transform_2, window_bounds = array<i64: 1, 256>}, {transform_indices = @transform_3, window_bounds = array<i64: 32, 256>}]} {
    %c0 = arith.constant 0 : index
    %c0_0 = arith.constant 0 : index
    %0 = vector.load %arg1[%c0, %c0_0] : memref<32x256xf32, #tpu.memory_space<vmem>>, vector<32x256xf32>
    %c0_1 = arith.constant 0 : index
    %c0_2 = arith.constant 0 : index
    %1 = vector.load %arg2[%c0_1, %c0_2] : memref<1x256xf32, #tpu.memory_space<vmem>>, vector<1x256xf32>
    %2 = vector.broadcast %1 : vector<1x256xf32> to vector<32x256xf32>
    %3 = arith.mulf %0, %2 : vector<32x256xf32>
    %c0_3 = arith.constant 0 : index
    %c0_4 = arith.constant 0 : index
    %4 = vector.load %arg3[%c0_3, %c0_4] : memref<1x256xf32, #tpu.memory_space<vmem>>, vector<1x256xf32>
    %5 = vector.broadcast %4 : vector<1x256xf32> to vector<32x256xf32>
    %6 = arith.addf %3, %5 : vector<32x256xf32>
    %cst = arith.constant 0.000000e+00 : f32
    %7 = vector.broadcast %cst : f32 to vector<32x256xf32>
    %8 = arith.cmpf ogt, %6, %7 : vector<32x256xf32>
    %cst_5 = arith.constant 2.000000e-01 : f32
    %9 = vector.broadcast %cst_5 : f32 to vector<32x256xf32>
    %10 = arith.mulf %9, %6 : vector<32x256xf32>
    %11 = arith.select %8, %6, %10 : vector<32x256xi1>, vector<32x256xf32>
    %12 = arith.truncf %11 : vector<32x256xf32> to vector<32x256xbf16>
    %c0_6 = arith.constant 0 : index
    %c0_7 = arith.constant 0 : index
    %13 = vector.load %arg4[%c0_6, %c0_7] : memref<32x256xbf16, #tpu.memory_space<vmem>>, vector<32x256xbf16>
    tpu.vector_store %arg4[%c0_6, %c0_7], %12 {strides = array<i32>} : memref<32x256xbf16, #tpu.memory_space<vmem>>, vector<32x256xbf16>,
    return
  }
  func.func @transform_0(%arg0: i32) -> (i32, i32) {
    %c0_i32 = arith.constant 0 : i32
    %c0_i32_0 = arith.constant 0 : i32
    return %arg0, %c0_i32 : i32, i32
  }
  func.func @transform_1(%arg0: i32) -> (i32, i32) {
    %c0_i32 = arith.constant 0 : i32
    %c0_i32_0 = arith.constant 0 : i32
    %c0_i32_1 = arith.constant 0 : i32
    return %c0_i32, %c0_i32_0 : i32, i32
  }
  func.func @transform_2(%arg0: i32) -> (i32, i32) {
    %c0_i32 = arith.constant 0 : i32
    %c0_i32_0 = arith.constant 0 : i32
    %c0_i32_1 = arith.constant 0 : i32
    return %c0_i32, %c0_i32_0 : i32, i32
  }
  func.func @transform_3(%arg0: i32) -> (i32, i32) {
    %c0_i32 = arith.constant 0 : i32
    %c0_i32_0 = arith.constant 0 : i32
    return %arg0, %c0_i32 : i32, i32
  }
}

module attributes {stable_mosaic.version = 11 : i64} {
  func.func @_mm_bias_act_kernel(%arg0: i32, %arg1: memref<16x4096xbf16, #tpu.memory_space<vmem>>, %arg2: memref<4096x128xbf16, #tpu.memory_space<vmem>>, %arg3: memref<1x128xf32, #tpu.memory_space<vmem>>, %arg4: memref<16x128xf32, #tpu.memory_space<vmem>>) attributes {dimension_semantics = [#tpu.dimension_semantics<parallel>], iteration_bounds = array<i64: 1>, scalar_prefetch = 0 : i64, scratch_operands = 0 : i64, tpu.core_type = #tpu.core_type<tc>, window_params = [{transform_indices = @transform_0, window_bounds = array<i64: 16, 4096>}, {pipeline_mode = #tpu.pipeline_mode<synchronous>, transform_indices = @transform_1, window_bounds = array<i64: 4096, 128>}, {pipeline_mode = #tpu.pipeline_mode<synchronous>, transform_indices = @transform_2, window_bounds = array<i64: 1, 128>}, {transform_indices = @transform_3, window_bounds = array<i64: 16, 128>}]} {
    %c0 = arith.constant 0 : index
    %c0_0 = arith.constant 0 : index
    %0 = vector.load %arg1[%c0, %c0_0] : memref<16x4096xbf16, #tpu.memory_space<vmem>>, vector<16x4096xbf16>
    %c0_1 = arith.constant 0 : index
    %c0_2 = arith.constant 0 : index
    %1 = vector.load %arg2[%c0_1, %c0_2] : memref<4096x128xbf16, #tpu.memory_space<vmem>>, vector<4096x128xbf16>
    %cst = arith.constant dense<0.000000e+00> : vector<16x128xf32>
    %2 = tpu.matmul %0, %1, %cst {dimension_numbers = #tpu.dot_dimension_numbers<[1], [0], [0], [1], [0, 0, 1, 1], [], []>} : vector<16x4096xbf16>, vector<4096x128xbf16>, vector<16x128xf32> -> vector<16x128xf32>
    %c0_3 = arith.constant 0 : index
    %c0_4 = arith.constant 0 : index
    %3 = vector.load %arg3[%c0_3, %c0_4] : memref<1x128xf32, #tpu.memory_space<vmem>>, vector<1x128xf32>
    %4 = vector.broadcast %3 : vector<1x128xf32> to vector<16x128xf32>
    %5 = arith.addf %2, %4 : vector<16x128xf32>
    %6 = math.absf %5 : vector<16x128xf32>
    %cst_5 = arith.constant 0.000000e+00 : f32
    %7 = vector.broadcast %cst_5 : f32 to vector<16x128xf32>
    %8 = arith.subf %7, %6 : vector<16x128xf32>
    %9 = math.exp %8 : vector<16x128xf32>
    %cst_6 = arith.constant 0.000000e+00 : f32
    %10 = vector.broadcast %cst_6 : f32 to vector<16x128xf32>
    %11 = arith.cmpf oge, %5, %10 : vector<16x128xf32>
    %cst_7 = arith.constant 1.000000e+00 : f32
    %12 = vector.broadcast %cst_7 : f32 to vector<16x128xf32>
    %13 = arith.select %11, %12, %9 : vector<16x128xi1>, vector<16x128xf32>
    %cst_8 = arith.constant 1.000000e+00 : f32
    %14 = vector.broadcast %cst_8 : f32 to vector<16x128xf32>
    %15 = arith.addf %14, %9 : vector<16x128xf32>
    %16 = tpu.reciprocal %15 {approx = true} : vector<16x128xf32> -> vector<16x128xf32>
    %17 = arith.mulf %13, %16 : vector<16x128xf32>
    %cst_9 = arith.constant 0.000000e+00 : f32
    %cst_10 = arith.constant 1.000000e+00 : f32
    %18 = vector.broadcast %cst_9 : f32 to vector<16x128xf32>
    %19 = arith.maximumf %18, %17 : vector<16x128xf32>
    %20 = vector.broadcast %cst_10 : f32 to vector<16x128xf32>
    %21 = arith.minimumf %20, %19 : vector<16x128xf32>
    %c0_11 = arith.constant 0 : index
    %c0_12 = arith.constant 0 : index
    %22 = vector.load %arg4[%c0_11, %c0_12] : memref<16x128xf32, #tpu.memory_space<vmem>>, vector<16x128xf32>
    tpu.vector_store %arg4[%c0_11, %c0_12], %21 {strides = array<i32>} : memref<16x128xf32, #tpu.memory_space<vmem>>, vector<16x128xf32>,
    return
  }
  func.func @transform_0(%arg0: i32) -> (i32, i32) {
    %c0_i32 = arith.constant 0 : i32
    %c0_i32_0 = arith.constant 0 : i32
    return %arg0, %c0_i32 : i32, i32
  }
  func.func @transform_1(%arg0: i32) -> (i32, i32) {
    %c0_i32 = arith.constant 0 : i32
    %c0_i32_0 = arith.constant 0 : i32
    %c0_i32_1 = arith.constant 0 : i32
    return %c0_i32, %c0_i32_0 : i32, i32
  }
  func.func @transform_2(%arg0: i32) -> (i32, i32) {
    %c0_i32 = arith.constant 0 : i32
    %c0_i32_0 = arith.constant 0 : i32
    %c0_i32_1 = arith.constant 0 : i32
    return %c0_i32, %c0_i32_0 : i32, i32
  }
  func.func @transform_3(%arg0: i32) -> (i32, i32) {
    %c0_i32 = arith.constant 0 : i32
    %c0_i32_0 = arith.constant 0 : i32
    return %arg0, %c0_i32 : i32, i32
  }
}

</mosaic_0001>

<bundles_post_ra>
// kernel: discriminator_forward.6
= control target key start
LH: loop header
LB: loop body
LE: loop exit
PB: predicated region body
PF: predicated region fallthrough
CT: control target
= control target key end

     0   :  { %s1910_s1 = inlined_call_operand.vmem [shape: bf16[128,128], index: 1, kind: input, shape index: {}]   ;;  %s1911_s0 = inlined_call_operand.vmem [shape: bf16[512,128], index: 0, kind: input, shape index: {}]   ;;  %s1912_s2 = inlined_call_operand.vmem [shape: bf16[512,128], index: 2, kind: output, shape index: {}]  }
   0x1   :  { %v1632_v0 = vld [vmem:[%s1910_s1] sm:$0xff]   ;;  %v1633_v1 = vld [vmem:[%s1910_s1 + $0x8] sm:$0xff]   ;;  %v1634_v2 = vld [vmem:[%s1910_s1 + $0x10] sm:$0xff]  }
   0x2   :  { %1536 = vmatprep.subr.bf16.mxu0 %v1632_v0  ;;  %1616 = vmatprep.subr.bf16.mxu1 %v1632_v0  ;;  %v1635_v3 = vld [vmem:[%s1910_s1 + $0x18] sm:$0xff]   ;;  %v1640_v4 = vld [vmem:[%s1911_s0] sm:$0xff]   ;;  %v1637_v7 = vld [vmem:[%s1910_s1 + $0x28] sm:$0xff]  }
   0x3   :  { %1537 = vmatpush3.bf16.msra.mxu0 %v1632_v0  ;;  %1624 = vmatpush3.bf16.msra.mxu1 %v1632_v0  ;;  %v1641_v5 = vld [vmem:[%s1911_s0 + $0x80] sm:$0xff]   ;;  %v1638_v8 = vld [vmem:[%s1910_s1 + $0x30] sm:$0xff]   ;;  %v1639_v9 = vld [vmem:[%s1910_s1 + $0x38] sm:$0xff]  }
   0x4   :  { %1538 = vmatprep.subr.bf16.mxu0 %v1633_v1  ;;  %1617 = vmatprep.subr.bf16.mxu1 %v1633_v1  ;;  %v1636_v6 = vld [vmem:[%s1910_s1 + $0x20] sm:$0xff]   ;;  %v1642_v10 = vld [vmem:[%s1911_s0 + $0x8] sm:$0xff]   ;;  %v1644_v12 = vld [vmem:[%s1911_s0 + $0x10] sm:$0xff]  }
   0x5   :  { %1552 = vmatprep.mubr.bf16.mxu0 %v1640_v4  ;;  %1584 = vmatprep.mubr.bf16.mxu1 %v1641_v5  ;;  %v1643_v11 = vld [vmem:[%s1911_s0 + $0x88] sm:$0xff]   ;;  %v1645_v13 = vld [vmem:[%s1911_s0 + $0x90] sm:$0xff]   ;;  %v1646_v14 = vld [vmem:[%s1911_s0 + $0x18] sm:$0xff]  }
   0x6   :  { %v1647_v15 = vld [vmem:[%s1911_s0 + $0x98] sm:$0xff]   ;;  %v1648_v16 = vld [vmem:[%s1911_s0 + $0x20] sm:$0xff]   ;;  %v1650_v18 = vld [vmem:[%s1911_s0 + $0x28] sm:$0xff]  }
   0x7   :  { %1539 = vmatpush3.bf16.msra.mxu0 %v1633_v1  ;;  %1625 = vmatpush3.bf16.msra.mxu1 %v1633_v1  ;;  %v1649_v17 = vld [vmem:[%s1911_s0 + $0xa0] sm:$0xff]   ;;  %v1651_v19 = vld [vmem:[%s1911_s0 + $0xa8] sm:$0xff]   ;;  %v1652_v20 = vld [vmem:[%s1911_s0 + $0x30] sm:$0xff]  }
   0x8   :  { %1540 = vmatprep.subr.bf16.mxu0 %v1634_v2  ;;  %1618 = vmatprep.subr.bf16.mxu1 %v1634_v2  ;;  %v1653_v21 = vld [vmem:[%s1911_s0 + $0xb0] sm:$0xff]   ;;  %v1654_v22 = vld [vmem:[%s1911_s0 + $0x38] sm:$0xff]   ;;  %v1656_v24 = vld [vmem:[%s1911_s0 + $0x40] sm:$0xff]  }
   0x9   :  { %v1655_v23 = vld [vmem:[%s1911_s0 + $0xb8] sm:$0xff]   ;;  %v1657_v25 = vld [vmem:[%s1911_s0 + $0xc0] sm:$0xff]   ;;  %v1658_v26 = vld [vmem:[%s1911_s0 + $0x48] sm:$0xff]  }
   0xa   :  { %v1659_v27 = vld [vmem:[%s1911_s0 + $0xc8] sm:$0xff]   ;;  %v1660_v28 = vld [vmem:[%s1911_s0 + $0x50] sm:$0xff]   ;;  %v1662_v30 = vld [vmem:[%s1911_s0 + $0x58] sm:$0xff]  }
   0xb   :  { %1541 = vmatpush3.bf16.msra.mxu0 %v1634_v2  ;;  %1626 = vmatpush3.bf16.msra.mxu1 %v1634_v2  ;;  %v1661_v29 = vld [vmem:[%s1911_s0 + $0xd0] sm:$0xff]   ;;  %v1663_v31 = vld [vmem:[%s1911_s0 + $0xd8] sm:$0xff]   ;;  %v1664_v32 = vld [vmem:[%s1911_s0 + $0x60] sm:$0xff]  }
   0xc   :  { %1542 = vmatprep.subr.bf16.mxu0 %v1635_v3  ;;  %1619 = vmatprep.subr.bf16.mxu1 %v1635_v3  ;;  %v1665_v33 = vld [vmem:[%s1911_s0 + $0xe0] sm:$0xff]   ;;  %v1666_v34 = vld [vmem:[%s1911_s0 + $0x68] sm:$0xff]   ;;  %v1668_v36 = vld [vmem:[%s1911_s0 + $0x70] sm:$0xff]  }
   0xd   :  { %v1667_v35 = vld [vmem:[%s1911_s0 + $0xe8] sm:$0xff]   ;;  %v1669_v37 = vld [vmem:[%s1911_s0 + $0xf0] sm:$0xff]   ;;  %v1670_v38 = vld [vmem:[%s1911_s0 + $0x78] sm:$0xff]  }
   0xe   :  { %v1671_v39 = vld [vmem:[%s1911_s0 + $0xf8] sm:$0xff]  }
   0xf   :  { %1543 = vmatpush3.bf16.msra.mxu0 %v1635_v3  ;;  %1627 = vmatpush3.bf16.msra.mxu1 %v1635_v3 }
  0x10   :  { %1544 = vmatprep.subr.bf16.mxu0 %v1636_v6  ;;  %1620 = vmatprep.subr.bf16.mxu1 %v1636_v6 }
  0x13   :  { %1545 = vmatpush3.bf16.msra.mxu0 %v1636_v6  ;;  %1628 = vmatpush3.bf16.msra.mxu1 %v1636_v6 }
  0x14   :  { %1546 = vmatprep.subr.bf16.mxu0 %v1637_v7  ;;  %1621 = vmatprep.subr.bf16.mxu1 %v1637_v7 }
  0x17   :  { %1547 = vmatpush3.bf16.msra.mxu0 %v1637_v7  ;;  %1629 = vmatpush3.bf16.msra.mxu1 %v1637_v7 }
  0x18   :  { %1548 = vmatprep.subr.bf16.mxu0 %v1638_v8  ;;  %1622 = vmatprep.subr.bf16.mxu1 %v1638_v8 }
  0x1b   :  { %1549 = vmatpush3.bf16.msra.mxu0 %v1638_v8  ;;  %1630 = vmatpush3.bf16.msra.mxu1 %v1638_v8 }
  0x1c   :  { %1550 = vmatprep.subr.bf16.mxu0 %v1639_v9  ;;  %1623 = vmatprep.subr.bf16.mxu1 %v1639_v9 }
  0x1f   :  { %1551 = vmatpush3.bf16.msra.mxu0 %v1639_v9  ;;  %1631 = vmatpush3.bf16.msra.mxu1 %v1639_v9 }
  0x22   :  { %1553 = vmatmul.mubr.bf16.vlgmr.msra.gmra.mrb[0].mxu0 %v1642_v10  ;;  %1585 = vmatmul.mubr.bf16.vlgmr.msra.gmra.mrb[0].mxu1 %v1643_v11 }
  0x23   :  { %1556 = vmatprep.mubr.bf16.mxu0 %v1644_v12  ;;  %1588 = vmatprep.mubr.bf16.mxu1 %v1645_v13 }
  0x2a   :  { %1557 = vmatmul.mubr.bf16.gmra.mrb[4].mxu0 %v1646_v14  ;;  %1589 = vmatmul.mubr.bf16.gmra.mrb[4].mxu1 %v1647_v15 }
  0x2b   :  { %1560 = vmatprep.mubr.bf16.mxu0 %v1648_v16  ;;  %1592 = vmatprep.mubr.bf16.mxu1 %v1649_v17 }
  0x32   :  { %1561 = vmatmul.mubr.bf16.gmra.mrb[8].mxu0 %v1650_v18  ;;  %1593 = vmatmul.mubr.bf16.gmra.mrb[8].mxu1 %v1651_v19 }
  0x33   :  { %1564 = vmatprep.mubr.bf16.mxu0 %v1652_v20  ;;  %1596 = vmatprep.mubr.bf16.mxu1 %v1653_v21 }
  0x3a   :  { %1565 = vmatmul.mubr.bf16.gmra.mrb[12].mxu0 %v1654_v22  ;;  %1597 = vmatmul.mubr.bf16.gmra.mrb[12].mxu1 %v1655_v23 }
  0x3b   :  { %1568 = vmatprep.mubr.bf16.mxu0 %v1656_v24  ;;  %1600 = vmatprep.mubr.bf16.mxu1 %v1657_v25 }
  0x42   :  { %1569 = vmatmul.mubr.bf16.gmra.mrb[16].mxu0 %v1658_v26  ;;  %1601 = vmatmul.mubr.bf16.gmra.mrb[16].mxu1 %v1659_v27 }
  0x43   :  { %1572 = vmatprep.mubr.bf16.mxu0 %v1660_v28  ;;  %1604 = vmatprep.mubr.bf16.mxu1 %v1661_v29 }
  0x4a   :  { %1573 = vmatmul.mubr.bf16.gmra.mrb[20].mxu0 %v1662_v30  ;;  %1605 = vmatmul.mubr.bf16.gmra.mrb[20].mxu1 %v1663_v31 }
  0x4b   :  { %1576 = vmatprep.mubr.bf16.mxu0 %v1664_v32  ;;  %1608 = vmatprep.mubr.bf16.mxu1 %v1665_v33 }
  0x52   :  { %1577 = vmatmul.mubr.bf16.gmra.mrb[24].mxu0 %v1666_v34  ;;  %1609 = vmatmul.mubr.bf16.gmra.mrb[24].mxu1 %v1667_v35 }
  0x53   :  { %1580 = vmatprep.mubr.bf16.mxu0 %v1668_v36  ;;  %1612 = vmatprep.mubr.bf16.mxu1 %v1669_v37 }
  0x5a   :  { %1581 = vmatmul.mubr.bf16.gmra.mrb[28].mxu0 %v1670_v38  ;;  %1613 = vmatmul.mubr.bf16.gmra.mrb[28].mxu1 %v1671_v39 }
  0xf5   :  { %v1554_v40 = vpop.f32.mrb[0].mxu0  ;;  %v1586_v41 = vpop.f32.mrb[0].mxu1 }
  0xf6   :  { %vm623_vm0 = vcmp.gt.f32.partialorder %v1554_v40, 0.0  ;;  %v687_v42 = vmul.f32 0.2, %v1554_v40  ;;  %v719_v43 = vmul.f32 0.2, %v1586_v41  ;;  %vm655_vm1 = vcmp.gt.f32.partialorder %v1586_v41, 0.0 }
  0xf7   :  { %v366_v44 = vpop.f32.mrb[1].mxu0  ;;  %v494_v45 = vpop.f32.mrb[1].mxu1 }
  0xf8   :  { %v685_v46 = vmul.f32 0.2, %v366_v44  ;;  %v1555_v47 = vpop.f32.mrb[2].mxu0  ;;  %v1587_v48 = vpop.f32.mrb[2].mxu1  ;;  %v751_v49 = vsel %vm623_vm0, %v1554_v40, %v687_v42  ;;  %v717_v50 = vmul.f32 0.2, %v494_v45  ;;  %v783_v52 = vsel %vm655_vm1, %v1586_v41, %v719_v43 }
  0xf9   :  { %vm624_vm2 = vcmp.gt.f32.partialorder %v1555_v47, 0.0  ;;  %v688_v51 = vmul.f32 0.2, %v1555_v47  ;;  %vm621_vm3 = vcmp.gt.f32.partialorder %v366_v44, 0.0  ;;  %vm656_vm4 = vcmp.gt.f32.partialorder %v1587_v48, 0.0  ;;  %v369_v54 = vpop.f32.mrb[3].mxu0 }
  0xfa   :  { %v720_v53 = vmul.f32 0.2, %v1587_v48  ;;  %v497_v55 = vpop.f32.mrb[3].mxu1  ;;  %vm653_vm5 = vcmp.gt.f32.partialorder %v494_v45, 0.0  ;;  %vm622_vm6 = vcmp.gt.f32.partialorder %v369_v54, 0.0  ;;  %v749_v61 = vsel %vm621_vm3, %v366_v44, %v685_v46 }
  0xfb   :  { %v752_v56 = vsel %vm624_vm2, %v1555_v47, %v688_v51  ;;  %v686_v57 = vmul.f32 0.2, %v369_v54  ;;  %vm654_vm7 = vcmp.gt.f32.partialorder %v497_v55, 0.0  ;;  %v718_v60 = vmul.f32 0.2, %v497_v55 }
  0xfc   :  { %v1313_v58 = vpack.c.bf16 %v752_v56, %v751_v49  ;;  %v784_v59 = vsel %vm656_vm4, %v1587_v48, %v720_v53  ;;  %v781_v2 = vsel %vm653_vm5, %v494_v45, %v717_v50 }
  0xfd   :  { %v1393_v62 = vpack.c.bf16 %v784_v59, %v783_v52  ;;  %v750_v63 = vsel %vm622_vm6, %v369_v54, %v686_v57  ;;  %v1558_v0 = vpop.f32.mrb[4].mxu0  ;;  %v1590_v1 = vpop.f32.mrb[4].mxu1  ;;  %v782_v4 = vsel %vm654_vm7, %v497_v55, %v718_v60 }
  0xfe   :  { %1465 = vst [vmem:[%s1912_s2 + $0x8] sm:$0xff] %v1313_v58   ;;  %v1308_v3 = vpack.c.bf16 %v750_v63, %v749_v61  ;;  %v691_v5 = vmul.f32 0.2, %v1558_v0  ;;  %v382_v6 = vpop.f32.mrb[5].mxu0  ;;  %v510_v7 = vpop.f32.mrb[5].mxu1  ;;  %v1388_v8 = vpack.c.bf16 %v782_v4, %v781_v2  ;;  %vm627_vm8 = vcmp.gt.f32.partialorder %v1558_v0, 0.0 }
  0xff   :  { %1481 = vst [vmem:[%s1912_s2 + $0x88] sm:$0xff] %v1393_v62   ;;  %v723_v9 = vmul.f32 0.2, %v1590_v1  ;;  %v1559_v10 = vpop.f32.mrb[6].mxu0  ;;  %v1591_v11 = vpop.f32.mrb[6].mxu1  ;;  %vm659_vm9 = vcmp.gt.f32.partialorder %v1590_v1, 0.0 }
 0x100   :  { %1309 = vst [vmem:[%s1912_s2] sm:$0xff] %v1308_v3   ;;  %v689_v12 = vmul.f32 0.2, %v382_v6  ;;  %v721_v13 = vmul.f32 0.2, %v510_v7  ;;  %v385_v14 = vpop.f32.mrb[7].mxu0  ;;  %1480 = vst [vmem:[%s1912_s2 + $0x80] sm:$0xff] %v1388_v8   ;;  %v755_v17 = vsel %vm627_vm8, %v1558_v0, %v691_v5 }
 0x101   :  { %vm625_vm10 = vcmp.gt.f32.partialorder %v382_v6, 0.0  ;;  %vm628_vm11 = vcmp.gt.f32.partialorder %v1559_v10, 0.0  ;;  %v692_v15 = vmul.f32 0.2, %v1559_v10  ;;  %vm660_vm12 = vcmp.gt.f32.partialorder %v1591_v11, 0.0  ;;  %v513_v16 = vpop.f32.mrb[7].mxu1 }
 0x102   :  { %vm657_vm13 = vcmp.gt.f32.partialorder %v510_v7, 0.0  ;;  %v724_v18 = vmul.f32 0.2, %v1591_v11  ;;  %vm626_vm14 = vcmp.gt.f32.partialorder %v385_v14, 0.0  ;;  %v690_v20 = vmul.f32 0.2, %v385_v14 }
 0x103   :  { %v756_v19 = vsel %vm628_vm11, %v1559_v10, %v692_v15  ;;  %vm658_vm15 = vcmp.gt.f32.partialorder %v513_v16, 0.0  ;;  %v722_v21 = vmul.f32 0.2, %v513_v16  ;;  %v787_v22 = vsel %vm659_vm9, %v1590_v1, %v723_v9 }
 0x104   :  { %v753_v23 = vsel %vm625_vm10, %v382_v6, %v689_v12  ;;  %v1323_v24 = vpack.c.bf16 %v756_v19, %v755_v17  ;;  %v788_v25 = vsel %vm660_vm12, %v1591_v11, %v724_v18  ;;  %v785_v26 = vsel %vm657_vm13, %v510_v7, %v721_v13 }
 0x105   :  { %v1403_v27 = vpack.c.bf16 %v788_v25, %v787_v22  ;;  %v754_v28 = vsel %vm626_vm14, %v385_v14, %v690_v20  ;;  %v786_v29 = vsel %vm658_vm15, %v513_v16, %v722_v21  ;;  %v1562_v30 = vpop.f32.mrb[8].mxu0  ;;  %v1594_v31 = vpop.f32.mrb[8].mxu1 }
 0x106   :  { %1467 = vst [vmem:[%s1912_s2 + $0x18] sm:$0xff] %v1323_v24   ;;  %v1318_v32 = vpack.c.bf16 %v754_v28, %v753_v23  ;;  %v1398_v33 = vpack.c.bf16 %v786_v29, %v785_v26  ;;  %vm631_vm0 = vcmp.gt.f32.partialorder %v1562_v30, 0.0  ;;  %v695_v34 = vmul.f32 0.2, %v1562_v30  ;;  %v398_v35 = vpop.f32.mrb[9].mxu0  ;;  %v526_v36 = vpop.f32.mrb[9].mxu1 }
 0x107   :  { %1483 = vst [vmem:[%s1912_s2 + $0x98] sm:$0xff] %v1403_v27   ;;  %vm663_vm1 = vcmp.gt.f32.partialorder %v1594_v31, 0.0  ;;  %v727_v37 = vmul.f32 0.2, %v1594_v31  ;;  %v693_v38 = vmul.f32 0.2, %v398_v35 }
 0x108   :  { %1466 = vst [vmem:[%s1912_s2 + $0x10] sm:$0xff] %v1318_v32   ;;  %1482 = vst [vmem:[%s1912_s2 + $0x90] sm:$0xff] %v1398_v33   ;;  %v725_v39 = vmul.f32 0.2, %v526_v36  ;;  %v1563_v40 = vpop.f32.mrb[10].mxu0  ;;  %v1595_v41 = vpop.f32.mrb[10].mxu1  ;;  %v759_v42 = vsel %vm631_vm0, %v1562_v30, %v695_v34 }
 0x109   :  { %vm629_vm2 = vcmp.gt.f32.partialorder %v398_v35, 0.0  ;;  %vm632_vm3 = vcmp.gt.f32.partialorder %v1563_v40, 0.0  ;;  %v696_v43 = vmul.f32 0.2, %v1563_v40  ;;  %v401_v44 = vpop.f32.mrb[11].mxu0  ;;  %v529_v45 = vpop.f32.mrb[11].mxu1  ;;  %v791_v50 = vsel %vm663_vm1, %v1594_v31, %v727_v37 }
 0x10a   :  { %vm661_vm4 = vcmp.gt.f32.partialorder %v526_v36, 0.0  ;;  %vm664_vm5 = vcmp.gt.f32.partialorder %v1595_v41, 0.0  ;;  %v728_v46 = vmul.f32 0.2, %v1595_v41  ;;  %vm630_vm6 = vcmp.gt.f32.partialorder %v401_v44, 0.0 }
 0x10b   :  { %v760_v47 = vsel %vm632_vm3, %v1563_v40, %v696_v43  ;;  %v694_v48 = vmul.f32 0.2, %v401_v44  ;;  %vm662_vm7 = vcmp.gt.f32.partialorder %v529_v45, 0.0  ;;  %v726_v49 = vmul.f32 0.2, %v529_v45 }
 0x10c   :  { %v757_v51 = vsel %vm629_vm2, %v398_v35, %v693_v38  ;;  %v1333_v52 = vpack.c.bf16 %v760_v47, %v759_v42  ;;  %v792_v53 = vsel %vm664_vm5, %v1595_v41, %v728_v46  ;;  %v789_v54 = vsel %vm661_vm4, %v526_v36, %v725_v39 }
 0x10d   :  { %v1413_v55 = vpack.c.bf16 %v792_v53, %v791_v50  ;;  %v758_v56 = vsel %vm630_vm6, %v401_v44, %v694_v48  ;;  %v790_v57 = vsel %vm662_vm7, %v529_v45, %v726_v49  ;;  %v1566_v58 = vpop.f32.mrb[12].mxu0  ;;  %v1598_v59 = vpop.f32.mrb[12].mxu1 }
 0x10e   :  { %1469 = vst [vmem:[%s1912_s2 + $0x28] sm:$0xff] %v1333_v52   ;;  %v1328_v60 = vpack.c.bf16 %v758_v56, %v757_v51  ;;  %v1408_v61 = vpack.c.bf16 %v790_v57, %v789_v54  ;;  %vm635_vm8 = vcmp.gt.f32.partialorder %v1566_v58, 0.0  ;;  %v699_v62 = vmul.f32 0.2, %v1566_v58  ;;  %v414_v63 = vpop.f32.mrb[13].mxu0  ;;  %v542_v0 = vpop.f32.mrb[13].mxu1 }
 0x10f   :  { %1485 = vst [vmem:[%s1912_s2 + $0xa8] sm:$0xff] %v1413_v55   ;;  %vm667_vm9 = vcmp.gt.f32.partialorder %v1598_v59, 0.0  ;;  %v731_v1 = vmul.f32 0.2, %v1598_v59  ;;  %v697_v2 = vmul.f32 0.2, %v414_v63 }
 0x110   :  { %1468 = vst [vmem:[%s1912_s2 + $0x20] sm:$0xff] %v1328_v60   ;;  %1484 = vst [vmem:[%s1912_s2 + $0xa0] sm:$0xff] %v1408_v61   ;;  %v729_v3 = vmul.f32 0.2, %v542_v0  ;;  %v1567_v4 = vpop.f32.mrb[14].mxu0  ;;  %v1599_v5 = vpop.f32.mrb[14].mxu1  ;;  %v763_v6 = vsel %vm635_vm8, %v1566_v58, %v699_v62 }
 0x111   :  { %vm633_vm10 = vcmp.gt.f32.partialorder %v414_v63, 0.0  ;;  %vm636_vm11 = vcmp.gt.f32.partialorder %v1567_v4, 0.0  ;;  %v700_v7 = vmul.f32 0.2, %v1567_v4  ;;  %v417_v8 = vpop.f32.mrb[15].mxu0  ;;  %v545_v9 = vpop.f32.mrb[15].mxu1  ;;  %v795_v14 = vsel %vm667_vm9, %v1598_v59, %v731_v1 }
 0x112   :  { %vm665_vm12 = vcmp.gt.f32.partialorder %v542_v0, 0.0  ;;  %vm668_vm13 = vcmp.gt.f32.partialorder %v1599_v5, 0.0  ;;  %v732_v10 = vmul.f32 0.2, %v1599_v5  ;;  %vm634_vm14 = vcmp.gt.f32.partialorder %v417_v8, 0.0 }
 0x113   :  { %v764_v11 = vsel %vm636_vm11, %v1567_v4, %v700_v7  ;;  %v698_v12 = vmul.f32 0.2, %v417_v8  ;;  %vm666_vm15 = vcmp.gt.f32.partialorder %v545_v9, 0.0  ;;  %v730_v13 = vmul.f32 0.2, %v545_v9 }
 0x114   :  { %v761_v15 = vsel %vm633_vm10, %v414_v63, %v697_v2  ;;  %v1343_v16 = vpack.c.bf16 %v764_v11, %v763_v6  ;;  %v796_v17 = vsel %vm668_vm13, %v1599_v5, %v732_v10  ;;  %v793_v18 = vsel %vm665_vm12, %v542_v0, %v729_v3 }
 0x115   :  { %v1423_v19 = vpack.c.bf16 %v796_v17, %v795_v14  ;;  %v762_v20 = vsel %vm634_vm14, %v417_v8, %v698_v12  ;;  %v794_v21 = vsel %vm666_vm15, %v545_v9, %v730_v13  ;;  %v1570_v22 = vpop.f32.mrb[16].mxu0  ;;  %v1602_v23 = vpop.f32.mrb[16].mxu1 }
 0x116   :  { %1471 = vst [vmem:[%s1912_s2 + $0x38] sm:$0xff] %v1343_v16   ;;  %v1338_v24 = vpack.c.bf16 %v762_v20, %v761_v15  ;;  %v1418_v25 = vpack.c.bf16 %v794_v21, %v793_v18  ;;  %vm639_vm0 = vcmp.gt.f32.partialorder %v1570_v22, 0.0  ;;  %v703_v26 = vmul.f32 0.2, %v1570_v22  ;;  %v430_v27 = vpop.f32.mrb[17].mxu0  ;;  %v558_v28 = vpop.f32.mrb[17].mxu1 }
 0x117   :  { %1487 = vst [vmem:[%s1912_s2 + $0xb8] sm:$0xff] %v1423_v19   ;;  %vm671_vm1 = vcmp.gt.f32.partialorder %v1602_v23, 0.0  ;;  %v735_v29 = vmul.f32 0.2, %v1602_v23  ;;  %v701_v30 = vmul.f32 0.2, %v430_v27 }
 0x118   :  { %1470 = vst [vmem:[%s1912_s2 + $0x30] sm:$0xff] %v1338_v24   ;;  %1486 = vst [vmem:[%s1912_s2 + $0xb0] sm:$0xff] %v1418_v25   ;;  %v733_v31 = vmul.f32 0.2, %v558_v28  ;;  %v1571_v32 = vpop.f32.mrb[18].mxu0  ;;  %v1603_v33 = vpop.f32.mrb[18].mxu1  ;;  %v767_v34 = vsel %vm639_vm0, %v1570_v22, %v703_v26 }
 0x119   :  { %vm637_vm2 = vcmp.gt.f32.partialorder %v430_v27, 0.0  ;;  %vm640_vm3 = vcmp.gt.f32.partialorder %v1571_v32, 0.0  ;;  %v704_v35 = vmul.f32 0.2, %v1571_v32  ;;  %v433_v36 = vpop.f32.mrb[19].mxu0  ;;  %v561_v37 = vpop.f32.mrb[19].mxu1  ;;  %v799_v42 = vsel %vm671_vm1, %v1602_v23, %v735_v29 }
 0x11a   :  { %vm669_vm4 = vcmp.gt.f32.partialorder %v558_v28, 0.0  ;;  %vm672_vm5 = vcmp.gt.f32.partialorder %v1603_v33, 0.0  ;;  %v736_v38 = vmul.f32 0.2, %v1603_v33  ;;  %vm638_vm6 = vcmp.gt.f32.partialorder %v433_v36, 0.0 }
 0x11b   :  { %v768_v39 = vsel %vm640_vm3, %v1571_v32, %v704_v35  ;;  %v702_v40 = vmul.f32 0.2, %v433_v36  ;;  %vm670_vm7 = vcmp.gt.f32.partialorder %v561_v37, 0.0  ;;  %v734_v41 = vmul.f32 0.2, %v561_v37 }
 0x11c   :  { %v765_v43 = vsel %vm637_vm2, %v430_v27, %v701_v30  ;;  %v1353_v44 = vpack.c.bf16 %v768_v39, %v767_v34  ;;  %v800_v45 = vsel %vm672_vm5, %v1603_v33, %v736_v38  ;;  %v797_v46 = vsel %vm669_vm4, %v558_v28, %v733_v31 }
 0x11d   :  { %v1433_v47 = vpack.c.bf16 %v800_v45, %v799_v42  ;;  %v766_v48 = vsel %vm638_vm6, %v433_v36, %v702_v40  ;;  %v798_v49 = vsel %vm670_vm7, %v561_v37, %v734_v41  ;;  %v1574_v50 = vpop.f32.mrb[20].mxu0  ;;  %v1606_v51 = vpop.f32.mrb[20].mxu1 }
 0x11e   :  { %1473 = vst [vmem:[%s1912_s2 + $0x48] sm:$0xff] %v1353_v44   ;;  %v1348_v52 = vpack.c.bf16 %v766_v48, %v765_v43  ;;  %v1428_v53 = vpack.c.bf16 %v798_v49, %v797_v46  ;;  %vm643_vm8 = vcmp.gt.f32.partialorder %v1574_v50, 0.0  ;;  %v707_v54 = vmul.f32 0.2, %v1574_v50  ;;  %v446_v55 = vpop.f32.mrb[21].mxu0  ;;  %v574_v56 = vpop.f32.mrb[21].mxu1 }
 0x11f   :  { %1489 = vst [vmem:[%s1912_s2 + $0xc8] sm:$0xff] %v1433_v47   ;;  %vm675_vm9 = vcmp.gt.f32.partialorder %v1606_v51, 0.0  ;;  %v739_v57 = vmul.f32 0.2, %v1606_v51  ;;  %v705_v58 = vmul.f32 0.2, %v446_v55 }
 0x120   :  { %1472 = vst [vmem:[%s1912_s2 + $0x40] sm:$0xff] %v1348_v52   ;;  %1488 = vst [vmem:[%s1912_s2 + $0xc0] sm:$0xff] %v1428_v53   ;;  %v737_v59 = vmul.f32 0.2, %v574_v56  ;;  %v1575_v60 = vpop.f32.mrb[22].mxu0  ;;  %v1607_v61 = vpop.f32.mrb[22].mxu1  ;;  %v771_v62 = vsel %vm643_vm8, %v1574_v50, %v707_v54 }
 0x121   :  { %vm641_vm10 = vcmp.gt.f32.partialorder %v446_v55, 0.0  ;;  %vm644_vm11 = vcmp.gt.f32.partialorder %v1575_v60, 0.0  ;;  %v708_v63 = vmul.f32 0.2, %v1575_v60  ;;  %v449_v0 = vpop.f32.mrb[23].mxu0  ;;  %v577_v1 = vpop.f32.mrb[23].mxu1  ;;  %v803_v6 = vsel %vm675_vm9, %v1606_v51, %v739_v57 }
 0x122   :  { %vm673_vm12 = vcmp.gt.f32.partialorder %v574_v56, 0.0  ;;  %vm676_vm13 = vcmp.gt.f32.partialorder %v1607_v61, 0.0  ;;  %v740_v2 = vmul.f32 0.2, %v1607_v61  ;;  %vm642_vm14 = vcmp.gt.f32.partialorder %v449_v0, 0.0 }
 0x123   :  { %v772_v3 = vsel %vm644_vm11, %v1575_v60, %v708_v63  ;;  %v706_v4 = vmul.f32 0.2, %v449_v0  ;;  %vm674_vm15 = vcmp.gt.f32.partialorder %v577_v1, 0.0  ;;  %v738_v5 = vmul.f32 0.2, %v577_v1 }
 0x124   :  { %v769_v7 = vsel %vm641_vm10, %v446_v55, %v705_v58  ;;  %v1363_v8 = vpack.c.bf16 %v772_v3, %v771_v62  ;;  %v804_v9 = vsel %vm676_vm13, %v1607_v61, %v740_v2  ;;  %v801_v10 = vsel %vm673_vm12, %v574_v56, %v737_v59 }
 0x125   :  { %v1443_v11 = vpack.c.bf16 %v804_v9, %v803_v6  ;;  %v770_v12 = vsel %vm642_vm14, %v449_v0, %v706_v4  ;;  %v802_v13 = vsel %vm674_vm15, %v577_v1, %v738_v5  ;;  %v1578_v14 = vpop.f32.mrb[24].mxu0  ;;  %v1610_v15 = vpop.f32.mrb[24].mxu1 }
 0x126   :  { %1475 = vst [vmem:[%s1912_s2 + $0x58] sm:$0xff] %v1363_v8   ;;  %v1358_v16 = vpack.c.bf16 %v770_v12, %v769_v7  ;;  %v1438_v17 = vpack.c.bf16 %v802_v13, %v801_v10  ;;  %vm647_vm0 = vcmp.gt.f32.partialorder %v1578_v14, 0.0  ;;  %v711_v18 = vmul.f32 0.2, %v1578_v14  ;;  %v462_v19 = vpop.f32.mrb[25].mxu0  ;;  %v590_v20 = vpop.f32.mrb[25].mxu1 }
 0x127   :  { %1491 = vst [vmem:[%s1912_s2 + $0xd8] sm:$0xff] %v1443_v11   ;;  %vm679_vm1 = vcmp.gt.f32.partialorder %v1610_v15, 0.0  ;;  %v743_v21 = vmul.f32 0.2, %v1610_v15  ;;  %v709_v22 = vmul.f32 0.2, %v462_v19 }
 0x128   :  { %1474 = vst [vmem:[%s1912_s2 + $0x50] sm:$0xff] %v1358_v16   ;;  %1490 = vst [vmem:[%s1912_s2 + $0xd0] sm:$0xff] %v1438_v17   ;;  %v741_v23 = vmul.f32 0.2, %v590_v20  ;;  %v1579_v24 = vpop.f32.mrb[26].mxu0  ;;  %v1611_v25 = vpop.f32.mrb[26].mxu1  ;;  %v775_v26 = vsel %vm647_vm0, %v1578_v14, %v711_v18 }
 0x129   :  { %vm645_vm2 = vcmp.gt.f32.partialorder %v462_v19, 0.0  ;;  %vm648_vm3 = vcmp.gt.f32.partialorder %v1579_v24, 0.0  ;;  %v712_v27 = vmul.f32 0.2, %v1579_v24  ;;  %v465_v28 = vpop.f32.mrb[27].mxu0  ;;  %v593_v29 = vpop.f32.mrb[27].mxu1  ;;  %v807_v34 = vsel %vm679_vm1, %v1610_v15, %v743_v21 }
 0x12a   :  { %vm677_vm4 = vcmp.gt.f32.partialorder %v590_v20, 0.0  ;;  %vm680_vm5 = vcmp.gt.f32.partialorder %v1611_v25, 0.0  ;;  %v744_v30 = vmul.f32 0.2, %v1611_v25  ;;  %vm646_vm6 = vcmp.gt.f32.partialorder %v465_v28, 0.0 }
 0x12b   :  { %v776_v31 = vsel %vm648_vm3, %v1579_v24, %v712_v27  ;;  %v710_v32 = vmul.f32 0.2, %v465_v28  ;;  %vm678_vm7 = vcmp.gt.f32.partialorder %v593_v29, 0.0  ;;  %v742_v33 = vmul.f32 0.2, %v593_v29 }
 0x12c   :  { %v773_v35 = vsel %vm645_vm2, %v462_v19, %v709_v22  ;;  %v1373_v36 = vpack.c.bf16 %v776_v31, %v775_v26  ;;  %v808_v37 = vsel %vm680_vm5, %v1611_v25, %v744_v30  ;;  %v805_v38 = vsel %vm677_vm4, %v590_v20, %v741_v23 }
 0x12d   :  { %v1453_v39 = vpack.c.bf16 %v808_v37, %v807_v34  ;;  %v774_v40 = vsel %vm646_vm6, %v465_v28, %v710_v32  ;;  %v806_v41 = vsel %vm678_vm7, %v593_v29, %v742_v33  ;;  %v1582_v42 = vpop.f32.mrb[28].mxu0  ;;  %v1614_v43 = vpop.f32.mrb[28].mxu1 }
 0x12e   :  { %1477 = vst [vmem:[%s1912_s2 + $0x68] sm:$0xff] %v1373_v36   ;;  %v1368_v44 = vpack.c.bf16 %v774_v40, %v773_v35  ;;  %v1448_v45 = vpack.c.bf16 %v806_v41, %v805_v38  ;;  %vm651_vm8 = vcmp.gt.f32.partialorder %v1582_v42, 0.0  ;;  %v715_v46 = vmul.f32 0.2, %v1582_v42  ;;  %v478_v47 = vpop.f32.mrb[29].mxu0  ;;  %v606_v48 = vpop.f32.mrb[29].mxu1 }
 0x12f   :  { %1493 = vst [vmem:[%s1912_s2 + $0xe8] sm:$0xff] %v1453_v39   ;;  %vm683_vm9 = vcmp.gt.f32.partialorder %v1614_v43, 0.0  ;;  %v747_v49 = vmul.f32 0.2, %v1614_v43  ;;  %v713_v50 = vmul.f32 0.2, %v478_v47 }
 0x130   :  { %1476 = vst [vmem:[%s1912_s2 + $0x60] sm:$0xff] %v1368_v44   ;;  %1492 = vst [vmem:[%s1912_s2 + $0xe0] sm:$0xff] %v1448_v45   ;;  %v745_v51 = vmul.f32 0.2, %v606_v48  ;;  %v1583_v52 = vpop.f32.mrb[30].mxu0  ;;  %v1615_v53 = vpop.f32.mrb[30].mxu1  ;;  %v779_v54 = vsel %vm651_vm8, %v1582_v42, %v715_v46 }
 0x131   :  { %vm649_vm10 = vcmp.gt.f32.partialorder %v478_v47, 0.0  ;;  %vm652_vm11 = vcmp.gt.f32.partialorder %v1583_v52, 0.0  ;;  %v716_v55 = vmul.f32 0.2, %v1583_v52  ;;  %v481_v56 = vpop.f32.mrb[31].mxu0  ;;  %v609_v57 = vpop.f32.mrb[31].mxu1  ;;  %v811_v62 = vsel %vm683_vm9, %v1614_v43, %v747_v49 }
 0x132   :  { %vm681_vm12 = vcmp.gt.f32.partialorder %v606_v48, 0.0  ;;  %vm684_vm13 = vcmp.gt.f32.partialorder %v1615_v53, 0.0  ;;  %v748_v58 = vmul.f32 0.2, %v1615_v53  ;;  %vm650_vm14 = vcmp.gt.f32.partialorder %v481_v56, 0.0 }
 0x133   :  { %v780_v59 = vsel %vm652_vm11, %v1583_v52, %v716_v55  ;;  %v714_v60 = vmul.f32 0.2, %v481_v56  ;;  %vm682_vm15 = vcmp.gt.f32.partialorder %v609_v57, 0.0  ;;  %v746_v61 = vmul.f32 0.2, %v609_v57 }
 0x134   :  { %v777_v63 = vsel %vm649_vm10, %v478_v47, %v713_v50  ;;  %v1383_v0 = vpack.c.bf16 %v780_v59, %v779_v54  ;;  %v812_v1 = vsel %vm684_vm13, %v1615_v53, %v748_v58  ;;  %v809_v2 = vsel %vm681_vm12, %v606_v48, %v745_v51 }
 0x135   :  { %v1463_v3 = vpack.c.bf16 %v812_v1, %v811_v62  ;;  %v778_v4 = vsel %vm650_vm14, %v481_v56, %v714_v60  ;;  %v810_v5 = vsel %vm682_vm15, %v609_v57, %v746_v61 }
 0x136   :  { %1479 = vst [vmem:[%s1912_s2 + $0x78] sm:$0xff] %v1383_v0   ;;  %v1378_v6 = vpack.c.bf16 %v778_v4, %v777_v63  ;;  %v1458_v7 = vpack.c.bf16 %v810_v5, %v809_v2 }
 0x137   :  { %1495 = vst [vmem:[%s1912_s2 + $0xf8] sm:$0xff] %v1463_v3  }
 0x138   :  { %1478 = vst [vmem:[%s1912_s2 + $0x70] sm:$0xff] %v1378_v6   ;;  %1494 = vst [vmem:[%s1912_s2 + $0xf0] sm:$0xff] %v1458_v7  }

// kernel: discriminator_forward.8
= control target key start
LH: loop header
LB: loop body
LE: loop exit
PB: predicated region body
PF: predicated region fallthrough
CT: control target
= control target key end

     0   :  { %s423_s0 = inlined_call_operand.vmem [shape: f32[128,128], index: 0, kind: input, shape index: {}]   ;;  %s424_s1 = inlined_call_operand.vmem [shape: f32[1,128], index: 1, kind: input, shape index: {}]   ;;  %s425_s2 = inlined_call_operand.vmem [shape: f32[1,128], index: 2, kind: input, shape index: {}]   ;;  %s426_s3 = inlined_call_operand.vmem [shape: bf16[128,128], index: 3, kind: output, shape index: {}]  }
   0x1   :  { %v14_v0 = vld [vmem:[%s423_s0] sm:$0xff]  ;;  %v15_v1 = vld [vmem:[%s423_s0 + $0x8] sm:$0xff]  ;;  %v16_v6 = vld [vmem:[%s423_s0 + $0x10] sm:$0xff] }
   0x2   :  { %v318_v2 = vld [vmem:[%s424_s1] ss:$0 sm:$0xff]  ;;  %v17_v7 = vld [vmem:[%s423_s0 + $0x18] sm:$0xff]  ;;  %v19_v11 = vld [vmem:[%s423_s0 + $0x28] sm:$0xff] }
   0x3   :  { %v37_v3 = vmul.f32 %v318_v2, %v14_v0  ;;  %v38_v4 = vmul.f32 %v318_v2, %v15_v1  ;;  %v325_v5 = vld [vmem:[%s425_s2] ss:$0 sm:$0xff]  ;;  %v39_v8 = vmul.f32 %v318_v2, %v16_v6  ;;  %v40_v9 = vmul.f32 %v318_v2, %v17_v7  ;;  %v20_v12 = vld [vmem:[%s423_s0 + $0x30] sm:$0xff]  ;;  %v21_v17 = vld [vmem:[%s423_s0 + $0x38] sm:$0xff] }
   0x4   :  { %v18_v10 = vld [vmem:[%s423_s0 + $0x20] sm:$0xff]  ;;  %v42_v16 = vmul.f32 %v318_v2, %v19_v11  ;;  %v43_v20 = vmul.f32 %v318_v2, %v20_v12  ;;  %v44_v21 = vmul.f32 %v318_v2, %v21_v17  ;;  %v23_v35 = vld [vmem:[%s423_s0 + $0x48] sm:$0xff]  ;;  %v24_v36 = vld [vmem:[%s423_s0 + $0x50] sm:$0xff] }
   0x5   :  { %v60_v13 = vadd.f32 %v325_v5, %v37_v3  ;;  %v61_v14 = vadd.f32 %v325_v5, %v38_v4  ;;  %v41_v15 = vmul.f32 %v318_v2, %v18_v10  ;;  %v62_v18 = vadd.f32 %v325_v5, %v39_v8  ;;  %v22_v34 = vld [vmem:[%s423_s0 + $0x40] sm:$0xff]  ;;  %v25_v42 = vld [vmem:[%s423_s0 + $0x58] sm:$0xff]  ;;  %v27_v48 = vld [vmem:[%s423_s0 + $0x68] sm:$0xff] }
   0x6   :  { %v63_v19 = vadd.f32 %v325_v5, %v40_v9  ;;  %v65_v29 = vadd.f32 %v325_v5, %v42_v16  ;;  %v66_v33 = vadd.f32 %v325_v5, %v43_v20  ;;  %v67_v40 = vadd.f32 %v325_v5, %v44_v21  ;;  %v26_v47 = vld [vmem:[%s423_s0 + $0x60] sm:$0xff]  ;;  %v28_v60 = vld [vmem:[%s423_s0 + $0x70] sm:$0xff]  ;;  %v29_v7 = vld [vmem:[%s423_s0 + $0x78] sm:$0xff] }
   0x7   :  { %vm76_vm0 = vcmp.gt.f32.partialorder %v60_v13, 0.0  ;;  %vm77_vm1 = vcmp.gt.f32.partialorder %v61_v14, 0.0  ;;  %v92_v22 = vmul.f32 0.2, %v60_v13  ;;  %v93_v23 = vmul.f32 0.2, %v61_v14 }
   0x8   :  { %vm78_vm2 = vcmp.gt.f32.partialorder %v62_v18, 0.0  ;;  %vm79_vm3 = vcmp.gt.f32.partialorder %v63_v19, 0.0  ;;  %v94_v24 = vmul.f32 0.2, %v62_v18  ;;  %v95_v25 = vmul.f32 0.2, %v63_v19 }
   0x9   :  { %v108_v26 = vsel %vm76_vm0, %v60_v13, %v92_v22  ;;  %v109_v27 = vsel %vm77_vm1, %v61_v14, %v93_v23  ;;  %v64_v28 = vadd.f32 %v325_v5, %v41_v15  ;;  %vm81_vm5 = vcmp.gt.f32.partialorder %v65_v29, 0.0 }
   0xa   :  { %v245_v30 = vpack.c.bf16 %v109_v27, %v108_v26  ;;  %v110_v31 = vsel %vm78_vm2, %v62_v18, %v94_v24  ;;  %v111_v32 = vsel %vm79_vm3, %v63_v19, %v95_v25  ;;  %v97_v39 = vmul.f32 0.2, %v65_v29 }
   0xb   :  { %v250_v37 = vpack.c.bf16 %v111_v32, %v110_v31  ;;  %vm80_vm4 = vcmp.gt.f32.partialorder %v64_v28, 0.0  ;;  %v96_v38 = vmul.f32 0.2, %v64_v28  ;;  %vm82_vm6 = vcmp.gt.f32.partialorder %v66_v33, 0.0 }
   0xc   :  { %246 = vst [vmem:[%s426_s3] sm:$0xff] %v245_v30   ;;  %v98_v41 = vmul.f32 0.2, %v66_v33  ;;  %v45_v44 = vmul.f32 %v318_v2, %v22_v34  ;;  %v46_v45 = vmul.f32 %v318_v2, %v23_v35  ;;  %v47_v46 = vmul.f32 %v318_v2, %v24_v36 }
   0xd   :  { %282 = vst [vmem:[%s426_s3 + $0x8] sm:$0xff] %v250_v37   ;;  %v112_v43 = vsel %vm80_vm4, %v64_v28, %v96_v38  ;;  %v113_v49 = vsel %vm81_vm5, %v65_v29, %v97_v39  ;;  %vm83_vm7 = vcmp.gt.f32.partialorder %v67_v40, 0.0  ;;  %v99_v50 = vmul.f32 0.2, %v67_v40 }
   0xe   :  { %v114_v51 = vsel %vm82_vm6, %v66_v33, %v98_v41  ;;  %v255_v52 = vpack.c.bf16 %v113_v49, %v112_v43  ;;  %v68_v53 = vadd.f32 %v325_v5, %v45_v44  ;;  %v69_v54 = vadd.f32 %v325_v5, %v46_v45 }
   0xf   :  { %v48_v55 = vmul.f32 %v318_v2, %v25_v42  ;;  %v115_v56 = vsel %vm83_vm7, %v67_v40, %v99_v50  ;;  %v70_v57 = vadd.f32 %v325_v5, %v47_v46  ;;  %v49_v58 = vmul.f32 %v318_v2, %v26_v47 }
  0x10   :  { %v50_v59 = vmul.f32 %v318_v2, %v27_v48  ;;  %283 = vst [vmem:[%s426_s3 + $0x10] sm:$0xff] %v255_v52   ;;  %v260_v61 = vpack.c.bf16 %v115_v56, %v114_v51  ;;  %vm84_vm8 = vcmp.gt.f32.partialorder %v68_v53, 0.0  ;;  %vm85_vm9 = vcmp.gt.f32.partialorder %v69_v54, 0.0 }
  0x11   :  { %v100_v62 = vmul.f32 0.2, %v68_v53  ;;  %v101_v63 = vmul.f32 0.2, %v69_v54  ;;  %v71_v0 = vadd.f32 %v325_v5, %v48_v55  ;;  %vm86_vm10 = vcmp.gt.f32.partialorder %v70_v57, 0.0 }
  0x12   :  { %v102_v1 = vmul.f32 0.2, %v70_v57  ;;  %284 = vst [vmem:[%s426_s3 + $0x18] sm:$0xff] %v260_v61   ;;  %v72_v4 = vadd.f32 %v325_v5, %v49_v58  ;;  %v73_v6 = vadd.f32 %v325_v5, %v50_v59  ;;  %v51_v8 = vmul.f32 %v318_v2, %v28_v60 }
  0x13   :  { %v116_v3 = vsel %vm84_vm8, %v68_v53, %v100_v62  ;;  %v117_v9 = vsel %vm85_vm9, %v69_v54, %v101_v63  ;;  %vm87_vm11 = vcmp.gt.f32.partialorder %v71_v0, 0.0  ;;  %v103_v10 = vmul.f32 0.2, %v71_v0 }
  0x14   :  { %v118_v11 = vsel %vm86_vm10, %v70_v57, %v102_v1  ;;  %v265_v12 = vpack.c.bf16 %v117_v9, %v116_v3  ;;  %vm88_vm12 = vcmp.gt.f32.partialorder %v72_v4, 0.0  ;;  %vm89_vm13 = vcmp.gt.f32.partialorder %v73_v6, 0.0 }
  0x15   :  { %v104_v13 = vmul.f32 0.2, %v72_v4  ;;  %v119_v14 = vsel %vm87_vm11, %v71_v0, %v103_v10  ;;  %v105_v15 = vmul.f32 0.2, %v73_v6  ;;  %v52_v16 = vmul.f32 %v318_v2, %v29_v7 }
  0x16   :  { %v74_v17 = vadd.f32 %v325_v5, %v51_v8  ;;  %285 = vst [vmem:[%s426_s3 + $0x20] sm:$0xff] %v265_v12   ;;  %v270_v18 = vpack.c.bf16 %v119_v14, %v118_v11 }
  0x17   :  { %v120_v19 = vsel %vm88_vm12, %v72_v4, %v104_v13  ;;  %v121_v20 = vsel %vm89_vm13, %v73_v6, %v105_v15  ;;  %v75_v21 = vadd.f32 %v325_v5, %v52_v16 }
  0x18   :  { %vm90_vm14 = vcmp.gt.f32.partialorder %v74_v17, 0.0  ;;  %v106_v22 = vmul.f32 0.2, %v74_v17  ;;  %286 = vst [vmem:[%s426_s3 + $0x28] sm:$0xff] %v270_v18   ;;  %v275_v23 = vpack.c.bf16 %v121_v20, %v120_v19 }
  0x19   :  { %vm91_vm15 = vcmp.gt.f32.partialorder %v75_v21, 0.0  ;;  %v107_v2 = vmul.f32 0.2, %v75_v21 }
  0x1a   :  { %v122_v24 = vsel %vm90_vm14, %v74_v17, %v106_v22  ;;  %287 = vst [vmem:[%s426_s3 + $0x30] sm:$0xff] %v275_v23  }
  0x1b   :  { %v123_v25 = vsel %vm91_vm15, %v75_v21, %v107_v2 }
  0x1c   :  { %v280_v26 = vpack.c.bf16 %v123_v25, %v122_v24 }
  0x1e   :  { %288 = vst [vmem:[%s426_s3 + $0x38] sm:$0xff] %v280_v26  }

// kernel: discriminator_forward.7
= control target key start
LH: loop header
LB: loop body
LE: loop exit
PB: predicated region body
PF: predicated region fallthrough
CT: control target
= control target key end

     0   :  { %vm1372_vm0 = vcmask 1040384   ;;  %vm1374_vm1 = vcmask 1041408   ;;  %s2336_s1 = inlined_call_operand.vmem [shape: bf16[1024,128], index: 1, kind: input, shape index: {}]   ;;  %s2337_s0 = inlined_call_operand.vmem [shape: bf16[128,1024], index: 0, kind: input, shape index: {}]   ;;  %s2338_s2 = inlined_call_operand.vmem [shape: f32[128,128], index: 2, kind: output, shape index: {0}]   ;;  %s2339_s3 = inlined_call_operand.vmem [shape: f32[8,128], index: 3, kind: output, shape index: {1}]  }
   0x1   :  { %v1769_v0 = vld [vmem:[%s2336_s1 + $0x40] sm:$0xff]   ;;  %v1773_v4 = vld [vmem:[%s2336_s1 + $0x48] sm:$0xff]   ;;  %v1777_v8 = vld [vmem:[%s2336_s1 + $0x50] sm:$0xff]  }
   0x2   :  { %v1770_v1 = vld [vmem:[%s2336_s1 + $0xc0] sm:$0xff]   ;;  %1513 = vmatprep.subr.bf16.mxu0 %v1769_v0  ;;  %v1774_v5 = vld [vmem:[%s2336_s1 + $0xc8] sm:$0xff]   ;;  %v1778_v9 = vld [vmem:[%s2336_s1 + $0xd0] sm:$0xff]  }
   0x3   :  { %v1771_v2 = vld [vmem:[%s2336_s1] sm:$0xff]   ;;  %1577 = vmatprep.subr.bf16.mxu1 %v1770_v1  ;;  %v1775_v6 = vld [vmem:[%s2336_s1 + $0x8] sm:$0xff]   ;;  %v1779_v10 = vld [vmem:[%s2336_s1 + $0x10] sm:$0xff]  }
   0x4   :  { %v1772_v3 = vld [vmem:[%s2336_s1 + $0x80] sm:$0xff]   ;;  %1514 = vmatpush3.bf16.msra.mxu0 %v1771_v2  ;;  %v1776_v7 = vld [vmem:[%s2336_s1 + $0x88] sm:$0xff]   ;;  %v1780_v11 = vld [vmem:[%s2336_s1 + $0x90] sm:$0xff]  }
   0x5   :  { %1578 = vmatpush3.bf16.msra.mxu1 %v1772_v3  ;;  %1515 = vmatprep.subr.bf16.mxu0 %v1773_v4  ;;  %v1781_v12 = vld [vmem:[%s2336_s1 + $0x58] sm:$0xff]   ;;  %v1785_v16 = vld [vmem:[%s2336_s1 + $0x60] sm:$0xff]   ;;  %v1789_v20 = vld [vmem:[%s2336_s1 + $0x68] sm:$0xff]  }
   0x6   :  { %1579 = vmatprep.subr.bf16.mxu1 %v1774_v5  ;;  %v1782_v13 = vld [vmem:[%s2336_s1 + $0xd8] sm:$0xff]   ;;  %v1786_v17 = vld [vmem:[%s2336_s1 + $0xe0] sm:$0xff]   ;;  %v1790_v21 = vld [vmem:[%s2336_s1 + $0xe8] sm:$0xff]  }
   0x7   :  { %v1783_v14 = vld [vmem:[%s2336_s1 + $0x18] sm:$0xff]   ;;  %v1787_v18 = vld [vmem:[%s2336_s1 + $0x20] sm:$0xff]   ;;  %v1791_v22 = vld [vmem:[%s2336_s1 + $0x28] sm:$0xff]  }
   0x8   :  { %1516 = vmatpush3.bf16.msra.mxu0 %v1775_v6  ;;  %v1784_v15 = vld [vmem:[%s2336_s1 + $0x98] sm:$0xff]   ;;  %v1788_v19 = vld [vmem:[%s2336_s1 + $0xa0] sm:$0xff]   ;;  %v1792_v23 = vld [vmem:[%s2336_s1 + $0xa8] sm:$0xff]  }
   0x9   :  { %1580 = vmatpush3.bf16.msra.mxu1 %v1776_v7  ;;  %1517 = vmatprep.subr.bf16.mxu0 %v1777_v8  ;;  %v1793_v24 = vld [vmem:[%s2336_s1 + $0x70] sm:$0xff]   ;;  %v1797_v28 = vld [vmem:[%s2336_s1 + $0x78] sm:$0xff]   ;;  %v14_v32 = vld [vmem:[%s2337_s0] sm:$0xff] }
   0xa   :  { %1581 = vmatprep.subr.bf16.mxu1 %v1778_v9  ;;  %v1794_v25 = vld [vmem:[%s2336_s1 + $0xf0] sm:$0xff]   ;;  %v1798_v29 = vld [vmem:[%s2336_s1 + $0xf8] sm:$0xff]   ;;  %v18_v33 = vld [vmem:[%s2337_s0 + $0x20] sm:$0xff] }
   0xb   :  { %v1795_v26 = vld [vmem:[%s2336_s1 + $0x30] sm:$0xff]   ;;  %v1799_v30 = vld [vmem:[%s2336_s1 + $0x38] sm:$0xff]   ;;  %v15_v34 = vld [vmem:[%s2337_s0 + $0x8] sm:$0xff]  ;;  %v1385_v35 = vcombine.low %v14_v32, %v18_v33  ;;  %v1386_v36 = vcombine.high %v14_v32, %v18_v33 }
   0xc   :  { %1518 = vmatpush3.bf16.msra.mxu0 %v1779_v10  ;;  %v1796_v27 = vld [vmem:[%s2336_s1 + $0xb0] sm:$0xff]   ;;  %v1800_v31 = vld [vmem:[%s2336_s1 + $0xb8] sm:$0xff]   ;;  %v19_v37 = vld [vmem:[%s2337_s0 + $0x28] sm:$0xff] }
   0xd   :  { %1582 = vmatpush3.bf16.msra.mxu1 %v1780_v11  ;;  %1519 = vmatprep.subr.bf16.mxu0 %v1781_v12  ;;  %v1387_v38 = vcombine.low %v15_v34, %v19_v37  ;;  %v1388_v39 = vcombine.high %v15_v34, %v19_v37  ;;  %v1801_v40 = vld [vmem:[%s2336_s1 + $0x140] sm:$0xff]   ;;  %v23_v47 = vld [vmem:[%s2337_s0 + $0x48] sm:$0xff]  ;;  %v1809_v62 = vld [vmem:[%s2336_s1 + $0x150] sm:$0xff]  }
   0xe   :  { %1583 = vmatprep.subr.bf16.mxu1 %v1782_v13  ;;  %942 = vmatprep.mubr.bf16.mxu0 %v1386_v36  ;;  %v1802_v41 = vld [vmem:[%s2336_s1 + $0x100] sm:$0xff]   ;;  %v27_v48 = vld [vmem:[%s2337_s0 + $0x68] sm:$0xff]  ;;  %v1810_v63 = vld [vmem:[%s2336_s1 + $0x110] sm:$0xff]  }
   0xf   :  { %1039 = vmatprep.mubr.bf16.mxu1 %v1388_v39  ;;  %v1803_v42 = vld [vmem:[%s2336_s1 + $0x1c0] sm:$0xff]   ;;  %v1396_v49 = vcombine.high %v23_v47, %v27_v48  ;;  %v1805_v50 = vld [vmem:[%s2336_s1 + $0x148] sm:$0xff]   ;;  %v1395_v53 = vcombine.low %v23_v47, %v27_v48  ;;  %v1811_v0 = vld [vmem:[%s2336_s1 + $0x1d0] sm:$0xff]  }
  0x10   :  { %1520 = vmatpush3.bf16.msra.mxu0 %v1783_v14  ;;  %v1804_v43 = vld [vmem:[%s2336_s1 + $0x180] sm:$0xff]   ;;  %v1806_v52 = vld [vmem:[%s2336_s1 + $0x108] sm:$0xff]   ;;  %v1812_v1 = vld [vmem:[%s2336_s1 + $0x190] sm:$0xff]  }
  0x11   :  { %1584 = vmatpush3.bf16.msra.mxu1 %v1784_v15  ;;  %1521 = vmatprep.subr.bf16.mxu0 %v1785_v16  ;;  %v22_v44 = vld [vmem:[%s2337_s0 + $0x40] sm:$0xff]  ;;  %v1807_v54 = vld [vmem:[%s2336_s1 + $0x1c8] sm:$0xff]   ;;  %v1813_v10 = vld [vmem:[%s2336_s1 + $0x158] sm:$0xff]  }
  0x12   :  { %1585 = vmatprep.subr.bf16.mxu1 %v1786_v17  ;;  %v26_v45 = vld [vmem:[%s2337_s0 + $0x60] sm:$0xff]  ;;  %v1808_v55 = vld [vmem:[%s2336_s1 + $0x188] sm:$0xff]   ;;  %v1814_v11 = vld [vmem:[%s2336_s1 + $0x118] sm:$0xff]  }
  0x13   :  { %v1394_v46 = vcombine.high %v22_v44, %v26_v45  ;;  %v1393_v51 = vcombine.low %v22_v44, %v26_v45  ;;  %v30_v56 = vld [vmem:[%s2337_s0 + $0x80] sm:$0xff]  ;;  %v31_v58 = vld [vmem:[%s2337_s0 + $0x88] sm:$0xff]  ;;  %v1815_v12 = vld [vmem:[%s2336_s1 + $0x1d8] sm:$0xff]  }
  0x14   :  { %1522 = vmatpush3.bf16.msra.mxu0 %v1787_v18  ;;  %v34_v57 = vld [vmem:[%s2337_s0 + $0xa0] sm:$0xff]  ;;  %v35_v59 = vld [vmem:[%s2337_s0 + $0xa8] sm:$0xff]  ;;  %v1816_v13 = vld [vmem:[%s2336_s1 + $0x198] sm:$0xff]  }
  0x15   :  { %1586 = vmatpush3.bf16.msra.mxu1 %v1788_v19  ;;  %1523 = vmatprep.subr.bf16.mxu0 %v1789_v20  ;;  %v1402_v60 = vcombine.high %v30_v56, %v34_v57  ;;  %v1404_v61 = vcombine.high %v31_v58, %v35_v59  ;;  %v1401_v2 = vcombine.low %v30_v56, %v34_v57  ;;  %v38_v3 = vld [vmem:[%s2337_s0 + $0xc0] sm:$0xff]  ;;  %v39_v5 = vld [vmem:[%s2337_s0 + $0xc8] sm:$0xff]  ;;  %v1826_v39 = vld [vmem:[%s2336_s1 + $0x130] sm:$0xff]  }
  0x16   :  { %1587 = vmatprep.subr.bf16.mxu1 %v1790_v21  ;;  %v42_v4 = vld [vmem:[%s2337_s0 + $0xe0] sm:$0xff]  ;;  %v1403_v6 = vcombine.low %v31_v58, %v35_v59  ;;  %v43_v8 = vld [vmem:[%s2337_s0 + $0xe8] sm:$0xff]  ;;  %v1830_v48 = vld [vmem:[%s2336_s1 + $0x138] sm:$0xff]  }
  0x17   :  { %v1410_v7 = vcombine.high %v38_v3, %v42_v4  ;;  %v1412_v9 = vcombine.high %v39_v5, %v43_v8  ;;  %v46_v14 = vld [vmem:[%s2337_s0 + $0x100] sm:$0xff]  ;;  %v47_v16 = vld [vmem:[%s2337_s0 + $0x108] sm:$0xff]  ;;  %v1409_v19 = vcombine.low %v38_v3, %v42_v4  ;;  %v1411_v21 = vcombine.low %v39_v5, %v43_v8  ;;  %v25_v8 = vld [vmem:[%s2337_s0 + $0x58] sm:$0xff] }
  0x18   :  { %1524 = vmatpush3.bf16.msra.mxu0 %v1791_v22  ;;  %v50_v15 = vld [vmem:[%s2337_s0 + $0x120] sm:$0xff]  ;;  %v51_v17 = vld [vmem:[%s2337_s0 + $0x128] sm:$0xff] }
  0x19   :  { %1588 = vmatpush3.bf16.msra.mxu1 %v1792_v23  ;;  %1525 = vmatprep.subr.bf16.mxu0 %v1793_v24  ;;  %v1817_v18 = vld [vmem:[%s2336_s1 + $0x160] sm:$0xff]   ;;  %v1418_v22 = vcombine.high %v46_v14, %v50_v15  ;;  %v1420_v24 = vcombine.high %v47_v16, %v51_v17  ;;  %v1823_v32 = vld [vmem:[%s2336_s1 + $0x1e8] sm:$0xff]   ;;  %v1417_v34 = vcombine.low %v46_v14, %v50_v15  ;;  %v32_v14 = vld [vmem:[%s2337_s0 + $0x90] sm:$0xff] }
  0x1a   :  { %1589 = vmatprep.subr.bf16.mxu1 %v1794_v25  ;;  %v1818_v20 = vld [vmem:[%s2336_s1 + $0x120] sm:$0xff]   ;;  %v1824_v33 = vld [vmem:[%s2336_s1 + $0x1a8] sm:$0xff]   ;;  %v36_v15 = vld [vmem:[%s2337_s0 + $0xb0] sm:$0xff] }
  0x1b   :  { %v1819_v23 = vld [vmem:[%s2336_s1 + $0x1e0] sm:$0xff]   ;;  %v63_v44 = vld [vmem:[%s2337_s0 + $0x188] sm:$0xff] }
  0x1c   :  { %1526 = vmatpush3.bf16.msra.mxu0 %v1795_v26  ;;  %v1820_v25 = vld [vmem:[%s2336_s1 + $0x1a0] sm:$0xff]   ;;  %v67_v45 = vld [vmem:[%s2337_s0 + $0x1a8] sm:$0xff] }
  0x1d   :  { %1590 = vmatpush3.bf16.msra.mxu1 %v1796_v27  ;;  %1527 = vmatprep.subr.bf16.mxu0 %v1797_v28  ;;  %v54_v26 = vld [vmem:[%s2337_s0 + $0x140] sm:$0xff]  ;;  %v1821_v28 = vld [vmem:[%s2336_s1 + $0x168] sm:$0xff]   ;;  %v1435_v59 = vcombine.low %v63_v44, %v67_v45 }
  0x1e   :  { %1591 = vmatprep.subr.bf16.mxu1 %v1798_v29  ;;  %v58_v27 = vld [vmem:[%s2337_s0 + $0x160] sm:$0xff]  ;;  %v55_v29 = vld [vmem:[%s2337_s0 + $0x148] sm:$0xff] }
  0x1f   :  { %v1426_v36 = vcombine.high %v54_v26, %v58_v27  ;;  %v1425_v47 = vcombine.low %v54_v26, %v58_v27  ;;  %v71_v56 = vld [vmem:[%s2337_s0 + $0x1c8] sm:$0xff]  ;;  %v1405_v26 = vcombine.low %v32_v14, %v36_v15 }
  0x20   :  { %1528 = vmatpush3.bf16.msra.mxu0 %v1799_v30  ;;  %v59_v30 = vld [vmem:[%s2337_s0 + $0x168] sm:$0xff] }
  0x21   :  { %1592 = vmatpush3.bf16.msra.mxu1 %v1800_v31  ;;  %1641 = vmatprep.subr.bf16.mxu0 %v1801_v40  ;;  %v1822_v31 = vld [vmem:[%s2336_s1 + $0x128] sm:$0xff]   ;;  %v1428_v37 = vcombine.high %v55_v29, %v59_v30  ;;  %v1827_v40 = vld [vmem:[%s2336_s1 + $0x1f0] sm:$0xff]  }
  0x22   :  { %1705 = vmatprep.subr.bf16.mxu1 %v1803_v42  ;;  %v66_v42 = vld [vmem:[%s2337_s0 + $0x1a0] sm:$0xff]  ;;  %v75_v57 = vld [vmem:[%s2337_s0 + $0x1e8] sm:$0xff] }
  0x23   :  { %943 = vmatmul.mubr.bf16.vlgmr.msra.gmra.mrb[0].mxu0 %v1385_v35  ;;  %v1419_v35 = vcombine.low %v47_v16, %v51_v17  ;;  %v1443_v3 = vcombine.low %v71_v56, %v75_v57  ;;  %v33_v16 = vld [vmem:[%s2337_s0 + $0x98] sm:$0xff] }
  0x24   :  { %1040 = vmatmul.mubr.bf16.vlgmr.msra.gmra.mrb[0].mxu1 %v1387_v38  ;;  %1642 = vmatpush3.bf16.msra.mxu0 %v1802_v41  ;;  %v1825_v38 = vld [vmem:[%s2336_s1 + $0x170] sm:$0xff]   ;;  %v62_v41 = vld [vmem:[%s2337_s0 + $0x180] sm:$0xff]  ;;  %v37_v17 = vld [vmem:[%s2337_s0 + $0xb8] sm:$0xff] }
  0x25   :  { %1706 = vmatpush3.bf16.msra.mxu1 %v1804_v43  ;;  %950 = vmatprep.mubr.bf16.mxu0 %v1394_v46  ;;  %v1828_v43 = vld [vmem:[%s2336_s1 + $0x1b0] sm:$0xff]   ;;  %v1829_v46 = vld [vmem:[%s2336_s1 + $0x178] sm:$0xff]   ;;  %v1433_v58 = vcombine.low %v62_v41, %v66_v42  ;;  %v1407_v27 = vcombine.low %v33_v16, %v37_v17 }
  0x26   :  { %1047 = vmatprep.mubr.bf16.mxu1 %v1396_v49  ;;  %1643 = vmatprep.subr.bf16.mxu0 %v1805_v50  ;;  %v1427_v49 = vcombine.low %v55_v29, %v59_v30  ;;  %v1434_v50 = vcombine.high %v62_v41, %v66_v42  ;;  %v48_v30 = vld [vmem:[%s2337_s0 + $0x110] sm:$0xff]  ;;  %v61_v41 = vld [vmem:[%s2337_s0 + $0x178] sm:$0xff] }
  0x27   :  { %1707 = vmatprep.subr.bf16.mxu1 %v1807_v54  ;;  %v70_v54 = vld [vmem:[%s2337_s0 + $0x1c0] sm:$0xff] }
  0x28   :  { %1644 = vmatpush3.bf16.msra.mxu0 %v1806_v52  ;;  %v1436_v52 = vcombine.high %v63_v44, %v67_v45 }
  0x29   :  { %1708 = vmatpush3.bf16.msra.mxu1 %v1808_v55  ;;  %1645 = vmatprep.subr.bf16.mxu0 %v1809_v62  ;;  %v74_v55 = vld [vmem:[%s2337_s0 + $0x1e0] sm:$0xff]  ;;  %v16_v62 = vld [vmem:[%s2337_s0 + $0x10] sm:$0xff] }
  0x2a   :  { %1709 = vmatprep.subr.bf16.mxu1 %v1811_v0  ;;  %v17_v0 = vld [vmem:[%s2337_s0 + $0x18] sm:$0xff] }
  0x2b   :  { %951 = vmatmul.mubr.bf16.gmra.mrb[4].mxu0 %v1393_v51  ;;  %v1831_v51 = vld [vmem:[%s2336_s1 + $0x1f8] sm:$0xff]  }
  0x2c   :  { %1048 = vmatmul.mubr.bf16.gmra.mrb[4].mxu1 %v1395_v53  ;;  %958 = vmatprep.mubr.bf16.mxu0 %v1402_v60  ;;  %v1832_v53 = vld [vmem:[%s2336_s1 + $0x1b8] sm:$0xff]   ;;  %v1442_v60 = vcombine.high %v70_v54, %v74_v55 }
  0x2d   :  { %1055 = vmatprep.mubr.bf16.mxu1 %v1404_v61  ;;  %1646 = vmatpush3.bf16.msra.mxu0 %v1810_v63  ;;  %v1444_v61 = vcombine.high %v71_v56, %v75_v57  ;;  %v20_v63 = vld [vmem:[%s2337_s0 + $0x30] sm:$0xff]  ;;  %v73_v56 = vld [vmem:[%s2337_s0 + $0x1d8] sm:$0xff] }
  0x2e   :  { %1710 = vmatpush3.bf16.msra.mxu1 %v1812_v1  ;;  %1647 = vmatprep.subr.bf16.mxu0 %v1813_v10  ;;  %v21_v1 = vld [vmem:[%s2337_s0 + $0x38] sm:$0xff]  ;;  %v1390_v4 = vcombine.high %v16_v62, %v20_v63  ;;  %v1389_v10 = vcombine.low %v16_v62, %v20_v63 }
  0x2f   :  { %1711 = vmatprep.subr.bf16.mxu1 %v1815_v12  ;;  %v1392_v5 = vcombine.high %v17_v0, %v21_v1  ;;  %v77_v57 = vld [vmem:[%s2337_s0 + $0x1f8] sm:$0xff] }
  0x30   :  { %v1447_v63 = vcombine.low %v73_v56, %v77_v57 }
  0x31   :  { %1648 = vmatpush3.bf16.msra.mxu0 %v1814_v11  ;;  %v1391_v11 = vcombine.low %v17_v0, %v21_v1 }
  0x32   :  { %1712 = vmatpush3.bf16.msra.mxu1 %v1816_v13  ;;  %1649 = vmatprep.subr.bf16.mxu0 %v1817_v18 }
  0x33   :  { %959 = vmatmul.mubr.bf16.gmra.mrb[8].mxu0 %v1401_v2  ;;  %1713 = vmatprep.subr.bf16.mxu1 %v1819_v23  ;;  %v1441_v2 = vcombine.low %v70_v54, %v74_v55  ;;  %v44_v23 = vld [vmem:[%s2337_s0 + $0xf0] sm:$0xff] }
  0x34   :  { %1056 = vmatmul.mubr.bf16.gmra.mrb[8].mxu1 %v1403_v6  ;;  %966 = vmatprep.mubr.bf16.mxu0 %v1410_v7  ;;  %v24_v6 = vld [vmem:[%s2337_s0 + $0x50] sm:$0xff] }
  0x35   :  { %1063 = vmatprep.mubr.bf16.mxu1 %v1412_v9  ;;  %1650 = vmatpush3.bf16.msra.mxu0 %v1818_v20  ;;  %v28_v7 = vld [vmem:[%s2337_s0 + $0x70] sm:$0xff]  ;;  %v29_v9 = vld [vmem:[%s2337_s0 + $0x78] sm:$0xff]  ;;  %v1406_v20 = vcombine.high %v32_v14, %v36_v15 }
  0x36   :  { %1714 = vmatpush3.bf16.msra.mxu1 %v1820_v25  ;;  %1651 = vmatprep.subr.bf16.mxu0 %v1821_v28  ;;  %v1398_v12 = vcombine.high %v24_v6, %v28_v7  ;;  %v1400_v13 = vcombine.high %v25_v8, %v29_v9  ;;  %v1397_v18 = vcombine.low %v24_v6, %v28_v7  ;;  %v45_v25 = vld [vmem:[%s2337_s0 + $0xf8] sm:$0xff]  ;;  %v72_v54 = vld [vmem:[%s2337_s0 + $0x1d0] sm:$0xff] }
  0x37   :  { %1715 = vmatprep.subr.bf16.mxu1 %v1823_v32  ;;  %v49_v32 = vld [vmem:[%s2337_s0 + $0x118] sm:$0xff]  ;;  %v76_v55 = vld [vmem:[%s2337_s0 + $0x1f0] sm:$0xff] }
  0x38   :  { %v1445_v62 = vcombine.low %v72_v54, %v76_v55 }
  0x39   :  { %1652 = vmatpush3.bf16.msra.mxu0 %v1822_v31  ;;  %v52_v31 = vld [vmem:[%s2337_s0 + $0x130] sm:$0xff] }
  0x3a   :  { %1716 = vmatpush3.bf16.msra.mxu1 %v1824_v33  ;;  %1653 = vmatprep.subr.bf16.mxu0 %v1825_v38  ;;  %v53_v33 = vld [vmem:[%s2337_s0 + $0x138] sm:$0xff]  ;;  %v56_v38 = vld [vmem:[%s2337_s0 + $0x150] sm:$0xff]  ;;  %v1421_v42 = vcombine.low %v48_v30, %v52_v31 }
  0x3b   :  { %967 = vmatmul.mubr.bf16.gmra.mrb[12].mxu0 %v1409_v19  ;;  %1717 = vmatprep.subr.bf16.mxu1 %v1827_v40  ;;  %v1399_v19 = vcombine.low %v25_v8, %v29_v9  ;;  %v57_v40 = vld [vmem:[%s2337_s0 + $0x158] sm:$0xff] }
  0x3c   :  { %1064 = vmatmul.mubr.bf16.gmra.mrb[12].mxu1 %v1411_v21  ;;  %974 = vmatprep.mubr.bf16.mxu0 %v1418_v22  ;;  %v1408_v21 = vcombine.high %v33_v16, %v37_v17  ;;  %v40_v22 = vld [vmem:[%s2337_s0 + $0xd0] sm:$0xff]  ;;  %v1432_v45 = vcombine.high %v57_v40, %v61_v41 }
  0x3d   :  { %1071 = vmatprep.mubr.bf16.mxu1 %v1420_v24  ;;  %1654 = vmatpush3.bf16.msra.mxu0 %v1826_v39  ;;  %v41_v24 = vld [vmem:[%s2337_s0 + $0xd8] sm:$0xff]  ;;  %v1414_v28 = vcombine.high %v40_v22, %v44_v23  ;;  %v60_v39 = vld [vmem:[%s2337_s0 + $0x170] sm:$0xff] }
  0x3e   :  { %1718 = vmatpush3.bf16.msra.mxu1 %v1828_v43  ;;  %1655 = vmatprep.subr.bf16.mxu0 %v1829_v46  ;;  %v1416_v29 = vcombine.high %v41_v24, %v45_v25  ;;  %v1423_v43 = vcombine.low %v49_v32, %v53_v33  ;;  %v1430_v44 = vcombine.high %v56_v38, %v60_v39  ;;  %v64_v46 = vld [vmem:[%s2337_s0 + $0x190] sm:$0xff] }
  0x3f   :  { %1719 = vmatprep.subr.bf16.mxu1 %v1831_v51  ;;  %v1431_v51 = vcombine.low %v57_v40, %v61_v41 }
  0x41   :  { %1656 = vmatpush3.bf16.msra.mxu0 %v1830_v48  ;;  %v65_v48 = vld [vmem:[%s2337_s0 + $0x198] sm:$0xff] }
  0x42   :  { %1720 = vmatpush3.bf16.msra.mxu1 %v1832_v53 }
  0x43   :  { %975 = vmatmul.mubr.bf16.gmra.mrb[16].mxu0 %v1417_v34  ;;  %v1413_v34 = vcombine.low %v40_v22, %v44_v23 }
  0x44   :  { %1072 = vmatmul.mubr.bf16.gmra.mrb[16].mxu1 %v1419_v35  ;;  %982 = vmatprep.mubr.bf16.mxu0 %v1426_v36  ;;  %v1415_v35 = vcombine.low %v41_v24, %v45_v25  ;;  %v1422_v36 = vcombine.high %v48_v30, %v52_v31 }
  0x45   :  { %1079 = vmatprep.mubr.bf16.mxu1 %v1428_v37  ;;  %v1424_v37 = vcombine.high %v49_v32, %v53_v33 }
  0x4b   :  { %983 = vmatmul.mubr.bf16.gmra.mrb[20].mxu0 %v1425_v47  ;;  %v68_v47 = vld [vmem:[%s2337_s0 + $0x1b0] sm:$0xff] }
  0x4c   :  { %1080 = vmatmul.mubr.bf16.gmra.mrb[20].mxu1 %v1427_v49  ;;  %990 = vmatprep.mubr.bf16.mxu0 %v1434_v50  ;;  %v69_v49 = vld [vmem:[%s2337_s0 + $0x1b8] sm:$0xff]  ;;  %v1429_v50 = vcombine.low %v56_v38, %v60_v39 }
  0x4d   :  { %1087 = vmatprep.mubr.bf16.mxu1 %v1436_v52  ;;  %v1438_v52 = vcombine.high %v64_v46, %v68_v47  ;;  %v1440_v53 = vcombine.high %v65_v48, %v69_v49 }
  0x53   :  { %991 = vmatmul.mubr.bf16.gmra.mrb[24].mxu0 %v1433_v58  ;;  %v1437_v58 = vcombine.low %v64_v46, %v68_v47 }
  0x54   :  { %1088 = vmatmul.mubr.bf16.gmra.mrb[24].mxu1 %v1435_v59  ;;  %998 = vmatprep.mubr.bf16.mxu0 %v1442_v60  ;;  %v1439_v59 = vcombine.low %v65_v48, %v69_v49  ;;  %v1446_v60 = vcombine.high %v72_v54, %v76_v55 }
  0x55   :  { %1095 = vmatprep.mubr.bf16.mxu1 %v1444_v61  ;;  %v1448_v61 = vcombine.high %v73_v56, %v77_v57 }
  0x5b   :  { %999 = vmatmul.mubr.bf16.gmra.mrb[28].mxu0 %v1441_v2 }
  0x5c   :  { %1096 = vmatmul.mubr.bf16.gmra.mrb[28].mxu1 %v1443_v3  ;;  %1136 = vmatprep.mubr.bf16.mxu0 %v1390_v4 }
  0x5d   :  { %1233 = vmatprep.mubr.bf16.mxu1 %v1392_v5 }
  0x63   :  { %1137 = vmatmul.mubr.bf16.vlgmr.msra.gmra.mrb[32].mxu0 %v1389_v10 }
  0x64   :  { %1234 = vmatmul.mubr.bf16.vlgmr.msra.gmra.mrb[32].mxu1 %v1391_v11  ;;  %1144 = vmatprep.mubr.bf16.mxu0 %v1398_v12 }
  0x65   :  { %1241 = vmatprep.mubr.bf16.mxu1 %v1400_v13 }
  0x6b   :  { %1145 = vmatmul.mubr.bf16.gmra.mrb[36].mxu0 %v1397_v18 }
  0x6c   :  { %1242 = vmatmul.mubr.bf16.gmra.mrb[36].mxu1 %v1399_v19  ;;  %1152 = vmatprep.mubr.bf16.mxu0 %v1406_v20 }
  0x6d   :  { %1249 = vmatprep.mubr.bf16.mxu1 %v1408_v21 }
  0x73   :  { %1153 = vmatmul.mubr.bf16.gmra.mrb[40].mxu0 %v1405_v26 }
  0x74   :  { %1250 = vmatmul.mubr.bf16.gmra.mrb[40].mxu1 %v1407_v27  ;;  %1160 = vmatprep.mubr.bf16.mxu0 %v1414_v28 }
  0x75   :  { %1257 = vmatprep.mubr.bf16.mxu1 %v1416_v29 }
  0x7b   :  { %1161 = vmatmul.mubr.bf16.gmra.mrb[44].mxu0 %v1413_v34 }
  0x7c   :  { %1258 = vmatmul.mubr.bf16.gmra.mrb[44].mxu1 %v1415_v35  ;;  %1168 = vmatprep.mubr.bf16.mxu0 %v1422_v36 }
  0x7d   :  { %1265 = vmatprep.mubr.bf16.mxu1 %v1424_v37 }
  0x83   :  { %1169 = vmatmul.mubr.bf16.gmra.mrb[48].mxu0 %v1421_v42 }
  0x84   :  { %1266 = vmatmul.mubr.bf16.gmra.mrb[48].mxu1 %v1423_v43  ;;  %1176 = vmatprep.mubr.bf16.mxu0 %v1430_v44 }
  0x85   :  { %1273 = vmatprep.mubr.bf16.mxu1 %v1432_v45 }
  0x8b   :  { %1177 = vmatmul.mubr.bf16.gmra.mrb[52].mxu0 %v1429_v50 }
  0x8c   :  { %1274 = vmatmul.mubr.bf16.gmra.mrb[52].mxu1 %v1431_v51  ;;  %1184 = vmatprep.mubr.bf16.mxu0 %v1438_v52 }
  0x8d   :  { %1281 = vmatprep.mubr.bf16.mxu1 %v1440_v53 }
  0x93   :  { %1185 = vmatmul.mubr.bf16.gmra.mrb[56].mxu0 %v1437_v58 }
  0x94   :  { %1282 = vmatmul.mubr.bf16.gmra.mrb[56].mxu1 %v1439_v59  ;;  %1192 = vmatprep.mubr.bf16.mxu0 %v1446_v60 }
  0x95   :  { %1289 = vmatprep.mubr.bf16.mxu1 %v1448_v61 }
  0x9b   :  { %1193 = vmatmul.mubr.bf16.gmra.mrb[60].mxu0 %v1445_v62 }
  0x9c   :  { %1290 = vmatmul.mubr.bf16.gmra.mrb[60].mxu1 %v1447_v63 }
  0xf6   :  { %v1529_v0 = vpop.f32.mrb[0].mxu0 }
  0xf7   :  { %v1593_v1 = vpop.f32.mrb[0].mxu1  ;;  %v1530_v2 = vpop.f32.mrb[1].mxu0 }
  0xf8   :  { %v1531_v3 = vadd.f32 %v1530_v2, %v1529_v0  ;;  %v1594_v4 = vpop.f32.mrb[1].mxu1  ;;  %v1532_v5 = vpop.f32.mrb[2].mxu0 }
  0xf9   :  { %v1595_v6 = vadd.f32 %v1594_v4, %v1593_v1  ;;  %v1596_v7 = vpop.f32.mrb[2].mxu1  ;;  %v1533_v8 = vpop.f32.mrb[3].mxu0 }
  0xfa   :  { %v1534_v9 = vadd.f32 %v1533_v8, %v1532_v5  ;;  %v1597_v10 = vpop.f32.mrb[3].mxu1 }
  0xfb   :  { %v2237_v11 = vadd.f32 %v1595_v6, %v1531_v3  ;;  %v1598_v12 = vadd.f32 %v1597_v10, %v1596_v7 }
  0xfd   :  { %v2239_v13 = vadd.f32 %v1598_v12, %v1534_v9 }
  0xfe   :  { %v1535_v14 = vpop.f32.mrb[4].mxu0 }
  0xff   :  { %v1599_v15 = vpop.f32.mrb[4].mxu1  ;;  %v1536_v16 = vpop.f32.mrb[5].mxu0 }
 0x100   :  { %v1537_v17 = vadd.f32 %v1536_v16, %v1535_v14  ;;  %v1600_v18 = vpop.f32.mrb[5].mxu1  ;;  %v1538_v19 = vpop.f32.mrb[6].mxu0 }
 0x101   :  { %v1601_v20 = vadd.f32 %v1600_v18, %v1599_v15  ;;  %v1602_v21 = vpop.f32.mrb[6].mxu1  ;;  %v1539_v22 = vpop.f32.mrb[7].mxu0 }
 0x102   :  { %v1540_v23 = vadd.f32 %v1539_v22, %v1538_v19  ;;  %v1603_v24 = vpop.f32.mrb[7].mxu1 }
 0x103   :  { %v2241_v25 = vadd.f32 %v1601_v20, %v1537_v17  ;;  %v1604_v26 = vadd.f32 %v1603_v24, %v1602_v21 }
 0x105   :  { %v2243_v27 = vadd.f32 %v1604_v26, %v1540_v23 }
 0x106   :  { %v1541_v28 = vpop.f32.mrb[8].mxu0 }
 0x107   :  { %v1605_v29 = vpop.f32.mrb[8].mxu1  ;;  %v1542_v30 = vpop.f32.mrb[9].mxu0 }
 0x108   :  { %v1543_v31 = vadd.f32 %v1542_v30, %v1541_v28  ;;  %v1606_v32 = vpop.f32.mrb[9].mxu1  ;;  %v1544_v33 = vpop.f32.mrb[10].mxu0 }
 0x109   :  { %v1607_v34 = vadd.f32 %v1606_v32, %v1605_v29  ;;  %v1608_v35 = vpop.f32.mrb[10].mxu1  ;;  %v1545_v36 = vpop.f32.mrb[11].mxu0 }
 0x10a   :  { %v1546_v37 = vadd.f32 %v1545_v36, %v1544_v33  ;;  %v1609_v38 = vpop.f32.mrb[11].mxu1 }
 0x10b   :  { %v2245_v39 = vadd.f32 %v1607_v34, %v1543_v31  ;;  %v1610_v40 = vadd.f32 %v1609_v38, %v1608_v35 }
 0x10d   :  { %v2247_v41 = vadd.f32 %v1610_v40, %v1546_v37 }
 0x10e   :  { %v1547_v42 = vpop.f32.mrb[12].mxu0 }
 0x10f   :  { %v1611_v43 = vpop.f32.mrb[12].mxu1  ;;  %v1548_v44 = vpop.f32.mrb[13].mxu0 }
 0x110   :  { %v1549_v45 = vadd.f32 %v1548_v44, %v1547_v42  ;;  %v1612_v46 = vpop.f32.mrb[13].mxu1  ;;  %v1550_v47 = vpop.f32.mrb[14].mxu0 }
 0x111   :  { %v1613_v48 = vadd.f32 %v1612_v46, %v1611_v43  ;;  %v1614_v49 = vpop.f32.mrb[14].mxu1  ;;  %v1551_v50 = vpop.f32.mrb[15].mxu0 }
 0x112   :  { %v1552_v51 = vadd.f32 %v1551_v50, %v1550_v47  ;;  %v1615_v52 = vpop.f32.mrb[15].mxu1 }
 0x113   :  { %v2249_v53 = vadd.f32 %v1613_v48, %v1549_v45  ;;  %v1616_v54 = vadd.f32 %v1615_v52, %v1614_v49 }
 0x115   :  { %v2251_v55 = vadd.f32 %v1616_v54, %v1552_v51 }
 0x116   :  { %v1553_v56 = vpop.f32.mrb[16].mxu0 }
 0x117   :  { %v1617_v57 = vpop.f32.mrb[16].mxu1  ;;  %v1554_v58 = vpop.f32.mrb[17].mxu0 }
 0x118   :  { %v1555_v59 = vadd.f32 %v1554_v58, %v1553_v56  ;;  %v1618_v60 = vpop.f32.mrb[17].mxu1  ;;  %v1556_v61 = vpop.f32.mrb[18].mxu0 }
 0x119   :  { %v1619_v62 = vadd.f32 %v1618_v60, %v1617_v57  ;;  %v1620_v63 = vpop.f32.mrb[18].mxu1  ;;  %v1557_v0 = vpop.f32.mrb[19].mxu0 }
 0x11a   :  { %v1558_v1 = vadd.f32 %v1557_v0, %v1556_v61  ;;  %v1621_v2 = vpop.f32.mrb[19].mxu1 }
 0x11b   :  { %v2253_v3 = vadd.f32 %v1619_v62, %v1555_v59  ;;  %v1622_v4 = vadd.f32 %v1621_v2, %v1620_v63 }
 0x11d   :  { %v2255_v5 = vadd.f32 %v1622_v4, %v1558_v1 }
 0x11e   :  { %v1559_v6 = vpop.f32.mrb[20].mxu0 }
 0x11f   :  { %v1623_v7 = vpop.f32.mrb[20].mxu1  ;;  %v1560_v8 = vpop.f32.mrb[21].mxu0 }
 0x120   :  { %v1561_v9 = vadd.f32 %v1560_v8, %v1559_v6  ;;  %v1624_v10 = vpop.f32.mrb[21].mxu1  ;;  %v1562_v12 = vpop.f32.mrb[22].mxu0 }
 0x121   :  { %v1625_v14 = vadd.f32 %v1624_v10, %v1623_v7  ;;  %v1626_v15 = vpop.f32.mrb[22].mxu1  ;;  %v1563_v16 = vpop.f32.mrb[23].mxu0 }
 0x122   :  { %v1564_v17 = vadd.f32 %v1563_v16, %v1562_v12  ;;  %v1627_v18 = vpop.f32.mrb[23].mxu1 }
 0x123   :  { %v2257_v19 = vadd.f32 %v1625_v14, %v1561_v9  ;;  %v1628_v20 = vadd.f32 %v1627_v18, %v1626_v15 }
 0x125   :  { %v2259_v21 = vadd.f32 %v1628_v20, %v1564_v17 }
 0x126   :  { %v1565_v22 = vpop.f32.mrb[24].mxu0 }
 0x127   :  { %v1629_v23 = vpop.f32.mrb[24].mxu1  ;;  %v1566_v24 = vpop.f32.mrb[25].mxu0 }
 0x128   :  { %v1567_v26 = vadd.f32 %v1566_v24, %v1565_v22  ;;  %v1630_v28 = vpop.f32.mrb[25].mxu1  ;;  %v1568_v29 = vpop.f32.mrb[26].mxu0 }
 0x129   :  { %v1631_v30 = vadd.f32 %v1630_v28, %v1629_v23  ;;  %v1632_v31 = vpop.f32.mrb[26].mxu1  ;;  %v1569_v32 = vpop.f32.mrb[27].mxu0 }
 0x12a   :  { %v1570_v33 = vadd.f32 %v1569_v32, %v1568_v29  ;;  %v1633_v34 = vpop.f32.mrb[27].mxu1 }
 0x12b   :  { %v2261_v35 = vadd.f32 %v1631_v30, %v1567_v26  ;;  %v1634_v36 = vadd.f32 %v1633_v34, %v1632_v31 }
 0x12d   :  { %v2263_v37 = vadd.f32 %v1634_v36, %v1570_v33 }
 0x12e   :  { %v1571_v38 = vpop.f32.mrb[28].mxu0 }
 0x12f   :  { %v1635_v40 = vpop.f32.mrb[28].mxu1  ;;  %v1572_v42 = vpop.f32.mrb[29].mxu0 }
 0x130   :  { %v1573_v43 = vadd.f32 %v1572_v42, %v1571_v38  ;;  %v1636_v44 = vpop.f32.mrb[29].mxu1  ;;  %v1574_v45 = vpop.f32.mrb[30].mxu0 }
 0x131   :  { %v1637_v46 = vadd.f32 %v1636_v44, %v1635_v40  ;;  %v1638_v47 = vpop.f32.mrb[30].mxu1  ;;  %v1575_v48 = vpop.f32.mrb[31].mxu0 }
 0x132   :  { %v1576_v49 = vadd.f32 %v1575_v48, %v1574_v45  ;;  %v1639_v50 = vpop.f32.mrb[31].mxu1 }
 0x133   :  { %v2265_v51 = vadd.f32 %v1637_v46, %v1573_v43  ;;  %v1640_v52 = vadd.f32 %v1639_v50, %v1638_v47 }
 0x135   :  { %v2267_v54 = vadd.f32 %v1640_v52, %v1576_v49 }
 0x136   :  { %v1657_v56 = vpop.f32.mrb[32].mxu0 }
 0x137   :  { %v1721_v57 = vpop.f32.mrb[32].mxu1  ;;  %v1658_v58 = vpop.f32.mrb[33].mxu0 }
 0x138   :  { %v1659_v59 = vadd.f32 %v1658_v58, %v1657_v56  ;;  %v1722_v60 = vpop.f32.mrb[33].mxu1  ;;  %v1660_v61 = vpop.f32.mrb[34].mxu0 }
 0x139   :  { %v1723_v62 = vadd.f32 %v1722_v60, %v1721_v57  ;;  %v1724_v63 = vpop.f32.mrb[34].mxu1  ;;  %v1661_v0 = vpop.f32.mrb[35].mxu0 }
 0x13a   :  { %v1139_v1 = vadd.f32 %v1659_v59, %v2237_v11  ;;  %v1662_v2 = vadd.f32 %v1661_v0, %v1660_v61  ;;  %v1725_v4 = vpop.f32.mrb[35].mxu1 }
 0x13b   :  { %v1726_v6 = vadd.f32 %v1725_v4, %v1724_v63 }
 0x13c   :  { %v1236_v7 = vadd.f32 %v1723_v62, %v1139_v1  ;;  %v1142_v8 = vadd.f32 %v1662_v2, %v2239_v13 }
 0x13e   :  { %1298 = vst [vmem:[%s2338_s2] sm:$0xff] %v1236_v7  ;;  %v1239_v9 = vadd.f32 %v1726_v6, %v1142_v8  ;;  %v1663_v10 = vpop.f32.mrb[36].mxu0  ;;  %v1335_v15 = vmul.f32 %v1236_v7, %v1236_v7 }
 0x13f   :  { %v1727_v12 = vpop.f32.mrb[36].mxu1  ;;  %v1664_v14 = vpop.f32.mrb[37].mxu0 }
 0x140   :  { %1299 = vst [vmem:[%s2338_s2 + $0x8] sm:$0xff] %v1239_v9  ;;  %v1314_v11 = vadd.f32 %v1239_v9, %v1236_v7  ;;  %v1336_v16 = vmul.f32 %v1239_v9, %v1239_v9  ;;  %v1665_v17 = vadd.f32 %v1664_v14, %v1663_v10  ;;  %v1728_v18 = vpop.f32.mrb[37].mxu1  ;;  %v1666_v20 = vpop.f32.mrb[38].mxu0 }
 0x141   :  { %v1729_v22 = vadd.f32 %v1728_v18, %v1727_v12  ;;  %v1730_v13 = vpop.f32.mrb[38].mxu1  ;;  %v1667_v23 = vpop.f32.mrb[39].mxu0 }
 0x142   :  { %v1351_v24 = vadd.f32 %v1336_v16, %v1335_v15  ;;  %v1147_v26 = vadd.f32 %v1665_v17, %v2241_v25  ;;  %v1668_v28 = vadd.f32 %v1667_v23, %v1666_v20  ;;  %v1731_v29 = vpop.f32.mrb[39].mxu1 }
 0x143   :  { %v1732_v30 = vadd.f32 %v1731_v29, %v1730_v13 }
 0x144   :  { %v1244_v31 = vadd.f32 %v1729_v22, %v1147_v26  ;;  %v1150_v32 = vadd.f32 %v1668_v28, %v2243_v27 }
 0x146   :  { %1300 = vst [vmem:[%s2338_s2 + $0x10] sm:$0xff] %v1244_v31  ;;  %v1315_v33 = vadd.f32 %v1314_v11, %v1244_v31  ;;  %v1337_v34 = vmul.f32 %v1244_v31, %v1244_v31  ;;  %v1247_v36 = vadd.f32 %v1732_v30, %v1150_v32  ;;  %v1669_v38 = vpop.f32.mrb[40].mxu0 }
 0x147   :  { %v1733_v40 = vpop.f32.mrb[40].mxu1  ;;  %v1670_v42 = vpop.f32.mrb[41].mxu0 }
 0x148   :  { %v1352_v43 = vadd.f32 %v1351_v24, %v1337_v34  ;;  %1301 = vst [vmem:[%s2338_s2 + $0x18] sm:$0xff] %v1247_v36  ;;  %v1316_v25 = vadd.f32 %v1315_v33, %v1247_v36  ;;  %v1338_v44 = vmul.f32 %v1247_v36, %v1247_v36  ;;  %v1671_v45 = vadd.f32 %v1670_v42, %v1669_v38  ;;  %v1734_v46 = vpop.f32.mrb[41].mxu1  ;;  %v1672_v27 = vpop.f32.mrb[42].mxu0 }
 0x149   :  { %v1735_v47 = vadd.f32 %v1734_v46, %v1733_v40  ;;  %v1736_v48 = vpop.f32.mrb[42].mxu1  ;;  %v1673_v49 = vpop.f32.mrb[43].mxu0 }
 0x14a   :  { %v1353_v50 = vadd.f32 %v1352_v43, %v1338_v44  ;;  %v1155_v52 = vadd.f32 %v1671_v45, %v2245_v39  ;;  %v1674_v56 = vadd.f32 %v1673_v49, %v1672_v27  ;;  %v1737_v57 = vpop.f32.mrb[43].mxu1 }
 0x14b   :  { %v1738_v58 = vadd.f32 %v1737_v57, %v1736_v48 }
 0x14c   :  { %v1252_v59 = vadd.f32 %v1735_v47, %v1155_v52  ;;  %v1158_v60 = vadd.f32 %v1674_v56, %v2247_v41 }
 0x14e   :  { %1302 = vst [vmem:[%s2338_s2 + $0x20] sm:$0xff] %v1252_v59  ;;  %v1317_v61 = vadd.f32 %v1316_v25, %v1252_v59  ;;  %v1339_v62 = vmul.f32 %v1252_v59, %v1252_v59  ;;  %v1255_v63 = vadd.f32 %v1738_v58, %v1158_v60  ;;  %v1675_v0 = vpop.f32.mrb[44].mxu0 }
 0x14f   :  { %v1739_v1 = vpop.f32.mrb[44].mxu1  ;;  %v1676_v2 = vpop.f32.mrb[45].mxu0 }
 0x150   :  { %v1354_v4 = vadd.f32 %v1353_v50, %v1339_v62  ;;  %1303 = vst [vmem:[%s2338_s2 + $0x28] sm:$0xff] %v1255_v63  ;;  %v1318_v39 = vadd.f32 %v1317_v61, %v1255_v63  ;;  %v1340_v6 = vmul.f32 %v1255_v63, %v1255_v63  ;;  %v1677_v7 = vadd.f32 %v1676_v2, %v1675_v0  ;;  %v1740_v8 = vpop.f32.mrb[45].mxu1  ;;  %v1678_v41 = vpop.f32.mrb[46].mxu0 }
 0x151   :  { %v1741_v9 = vadd.f32 %v1740_v8, %v1739_v1  ;;  %v1742_v10 = vpop.f32.mrb[46].mxu1  ;;  %v1679_v12 = vpop.f32.mrb[47].mxu0 }
 0x152   :  { %v1355_v14 = vadd.f32 %v1354_v4, %v1340_v6  ;;  %v1163_v15 = vadd.f32 %v1677_v7, %v2249_v53  ;;  %v1680_v11 = vadd.f32 %v1679_v12, %v1678_v41  ;;  %v1743_v16 = vpop.f32.mrb[47].mxu1 }
 0x153   :  { %v1744_v17 = vadd.f32 %v1743_v16, %v1742_v10 }
 0x154   :  { %v1260_v18 = vadd.f32 %v1741_v9, %v1163_v15  ;;  %v1166_v20 = vadd.f32 %v1680_v11, %v2251_v55 }
 0x156   :  { %1304 = vst [vmem:[%s2338_s2 + $0x30] sm:$0xff] %v1260_v18  ;;  %v1319_v22 = vadd.f32 %v1318_v39, %v1260_v18  ;;  %v1341_v13 = vmul.f32 %v1260_v18, %v1260_v18  ;;  %v1263_v23 = vadd.f32 %v1744_v17, %v1166_v20  ;;  %v1681_v24 = vpop.f32.mrb[48].mxu0 }
 0x157   :  { %v1745_v26 = vpop.f32.mrb[48].mxu1  ;;  %v1682_v28 = vpop.f32.mrb[49].mxu0 }
 0x158   :  { %v1356_v29 = vadd.f32 %v1355_v14, %v1341_v13  ;;  %1305 = vst [vmem:[%s2338_s2 + $0x38] sm:$0xff] %v1263_v23  ;;  %v1320_v53 = vadd.f32 %v1319_v22, %v1263_v23  ;;  %v1342_v30 = vmul.f32 %v1263_v23, %v1263_v23  ;;  %v1683_v31 = vadd.f32 %v1682_v28, %v1681_v24  ;;  %v1746_v32 = vpop.f32.mrb[49].mxu1  ;;  %v1684_v55 = vpop.f32.mrb[50].mxu0 }
 0x159   :  { %v1747_v33 = vadd.f32 %v1746_v32, %v1745_v26  ;;  %v1748_v34 = vpop.f32.mrb[50].mxu1  ;;  %v1685_v36 = vpop.f32.mrb[51].mxu0 }
 0x15a   :  { %v1357_v38 = vadd.f32 %v1356_v29, %v1342_v30  ;;  %v1171_v40 = vadd.f32 %v1683_v31, %v2253_v3  ;;  %v1686_v42 = vadd.f32 %v1685_v36, %v1684_v55  ;;  %v1749_v43 = vpop.f32.mrb[51].mxu1 }
 0x15b   :  { %v1750_v25 = vadd.f32 %v1749_v43, %v1748_v34 }
 0x15c   :  { %v1268_v44 = vadd.f32 %v1747_v33, %v1171_v40  ;;  %v1174_v45 = vadd.f32 %v1686_v42, %v2255_v5 }
 0x15e   :  { %1306 = vst [vmem:[%s2338_s2 + $0x40] sm:$0xff] %v1268_v44  ;;  %v1321_v46 = vadd.f32 %v1320_v53, %v1268_v44  ;;  %v1343_v27 = vmul.f32 %v1268_v44, %v1268_v44  ;;  %v1271_v47 = vadd.f32 %v1750_v25, %v1174_v45  ;;  %v1687_v48 = vpop.f32.mrb[52].mxu0 }
 0x15f   :  { %v1751_v49 = vpop.f32.mrb[52].mxu1  ;;  %v1688_v50 = vpop.f32.mrb[53].mxu0 }
 0x160   :  { %v1358_v52 = vadd.f32 %v1357_v38, %v1343_v27  ;;  %1307 = vst [vmem:[%s2338_s2 + $0x48] sm:$0xff] %v1271_v47  ;;  %v1322_v3 = vadd.f32 %v1321_v46, %v1271_v47  ;;  %v1344_v56 = vmul.f32 %v1271_v47, %v1271_v47  ;;  %v1689_v57 = vadd.f32 %v1688_v50, %v1687_v48  ;;  %v1752_v58 = vpop.f32.mrb[53].mxu1  ;;  %v1690_v5 = vpop.f32.mrb[54].mxu0 }
 0x161   :  { %v1753_v59 = vadd.f32 %v1752_v58, %v1751_v49  ;;  %v1754_v60 = vpop.f32.mrb[54].mxu1  ;;  %v1691_v61 = vpop.f32.mrb[55].mxu0 }
 0x162   :  { %v1359_v62 = vadd.f32 %v1358_v52, %v1344_v56  ;;  %v1179_v63 = vadd.f32 %v1689_v57, %v2257_v19  ;;  %v1692_v0 = vadd.f32 %v1691_v61, %v1690_v5  ;;  %v1755_v1 = vpop.f32.mrb[55].mxu1 }
 0x163   :  { %v1756_v2 = vadd.f32 %v1755_v1, %v1754_v60 }
 0x164   :  { %v1276_v4 = vadd.f32 %v1753_v59, %v1179_v63  ;;  %v1182_v39 = vadd.f32 %v1692_v0, %v2259_v21 }
 0x166   :  { %1308 = vst [vmem:[%s2338_s2 + $0x50] sm:$0xff] %v1276_v4  ;;  %v1323_v6 = vadd.f32 %v1322_v3, %v1276_v4  ;;  %v1345_v7 = vmul.f32 %v1276_v4, %v1276_v4  ;;  %v1279_v8 = vadd.f32 %v1756_v2, %v1182_v39  ;;  %v1693_v41 = vpop.f32.mrb[56].mxu0 }
 0x167   :  { %v1757_v9 = vpop.f32.mrb[56].mxu1  ;;  %v1694_v10 = vpop.f32.mrb[57].mxu0 }
 0x168   :  { %v1360_v12 = vadd.f32 %v1359_v62, %v1345_v7  ;;  %1309 = vst [vmem:[%s2338_s2 + $0x58] sm:$0xff] %v1279_v8  ;;  %v1324_v19 = vadd.f32 %v1323_v6, %v1279_v8  ;;  %v1346_v14 = vmul.f32 %v1279_v8, %v1279_v8  ;;  %v1695_v15 = vadd.f32 %v1694_v10, %v1693_v41  ;;  %v1758_v11 = vpop.f32.mrb[57].mxu1  ;;  %v1696_v21 = vpop.f32.mrb[58].mxu0 }
 0x169   :  { %v1759_v16 = vadd.f32 %v1758_v11, %v1757_v9  ;;  %v1760_v17 = vpop.f32.mrb[58].mxu1  ;;  %v1697_v18 = vpop.f32.mrb[59].mxu0 }
 0x16a   :  { %v1361_v20 = vadd.f32 %v1360_v12, %v1346_v14  ;;  %v1187_v22 = vadd.f32 %v1695_v15, %v2261_v35  ;;  %v1698_v13 = vadd.f32 %v1697_v18, %v1696_v21  ;;  %v1761_v23 = vpop.f32.mrb[59].mxu1 }
 0x16b   :  { %v1762_v24 = vadd.f32 %v1761_v23, %v1760_v17 }
 0x16c   :  { %v1284_v26 = vadd.f32 %v1759_v16, %v1187_v22  ;;  %v1190_v28 = vadd.f32 %v1698_v13, %v2263_v37 }
 0x16e   :  { %1310 = vst [vmem:[%s2338_s2 + $0x60] sm:$0xff] %v1284_v26  ;;  %v1325_v29 = vadd.f32 %v1324_v19, %v1284_v26  ;;  %v1347_v53 = vmul.f32 %v1284_v26, %v1284_v26  ;;  %v1287_v30 = vadd.f32 %v1762_v24, %v1190_v28  ;;  %v1699_v31 = vpop.f32.mrb[60].mxu0 }
 0x16f   :  { %v1763_v32 = vpop.f32.mrb[60].mxu1  ;;  %v1700_v55 = vpop.f32.mrb[61].mxu0 }
 0x170   :  { %v1362_v33 = vadd.f32 %v1361_v20, %v1347_v53  ;;  %1311 = vst [vmem:[%s2338_s2 + $0x68] sm:$0xff] %v1287_v30  ;;  %v1326_v35 = vadd.f32 %v1325_v29, %v1287_v30  ;;  %v1348_v34 = vmul.f32 %v1287_v30, %v1287_v30  ;;  %v1701_v36 = vadd.f32 %v1700_v55, %v1699_v31  ;;  %v1764_v38 = vpop.f32.mrb[61].mxu1  ;;  %v1702_v37 = vpop.f32.mrb[62].mxu0 }
 0x171   :  { %v1765_v40 = vadd.f32 %v1764_v38, %v1763_v32  ;;  %v1766_v42 = vpop.f32.mrb[62].mxu1  ;;  %v1703_v43 = vpop.f32.mrb[63].mxu0 }
 0x172   :  { %v1363_v25 = vadd.f32 %v1362_v33, %v1348_v34  ;;  %v1195_v44 = vadd.f32 %v1701_v36, %v2265_v51  ;;  %v1704_v45 = vadd.f32 %v1703_v43, %v1702_v37  ;;  %v1767_v46 = vpop.f32.mrb[63].mxu1 }
 0x173   :  { %v1768_v27 = vadd.f32 %v1767_v46, %v1766_v42 }
 0x174   :  { %v1292_v47 = vadd.f32 %v1765_v40, %v1195_v44  ;;  %v1198_v48 = vadd.f32 %v1704_v45, %v2267_v54 }
 0x176   :  { %1312 = vst [vmem:[%s2338_s2 + $0x70] sm:$0xff] %v1292_v47  ;;  %v1327_v49 = vadd.f32 %v1326_v35, %v1292_v47  ;;  %v1349_v50 = vmul.f32 %v1292_v47, %v1292_v47  ;;  %v1295_v52 = vadd.f32 %v1768_v27, %v1198_v48 }
 0x178   :  { %v1364_v3 = vadd.f32 %v1363_v25, %v1349_v50  ;;  %1313 = vst [vmem:[%s2338_s2 + $0x78] sm:$0xff] %v1295_v52  ;;  %v1328_v56 = vadd.f32 %v1327_v49, %v1295_v52  ;;  %v1350_v51 = vmul.f32 %v1295_v52, %v1295_v52 }
 0x17a   :  { %v1329_v57 = vrot.slane %v1328_v56, 4  ;;  %v1365_v58 = vadd.f32 %v1364_v3, %v1350_v51 }
 0x17c   :  { %v1330_v5 = vadd.f32 %v1329_v57, %v1328_v56  ;;  %v1366_v59 = vrot.slane %v1365_v58, 4 }
 0x17e   :  { %v1331_v60 = vrot.slane %v1330_v5, 2  ;;  %v1367_v54 = vadd.f32 %v1366_v59, %v1365_v58 }
 0x180   :  { %v1332_v61 = vadd.f32 %v1331_v60, %v1330_v5  ;;  %v1368_v62 = vrot.slane %v1367_v54, 2 }
 0x182   :  { %v1333_v63 = vrot.slane %v1332_v61, 1  ;;  %v1369_v0 = vadd.f32 %v1368_v62, %v1367_v54 }
 0x184   :  { %v1370_v1 = vrot.slane %v1369_v0, 1  ;;  %v1334_v2 = vadd.f32 %v1333_v63, %v1332_v61 }
 0x186   :  { %v1371_v4 = vadd.f32 %v1370_v1, %v1369_v0 }
 0x188   :  { %v1373_v39 = vsel %vm1372_vm0, %v1334_v2, %v1371_v4 }
 0x189   :  { %v1375_v6 = vsel %vm1374_vm1, %v1373_v39, 0.0 }
 0x18a   :  { %1376 = vst [vmem:[%s2339_s3] sm:$0xff] %v1375_v6 }

// kernel: discriminator_forward.9
= control target key start
LH: loop header
LB: loop body
LE: loop exit
PB: predicated region body
PF: predicated region fallthrough
CT: control target
= control target key end

     0   :  { %vm2217_vm0 = vcmask 1040384   ;;  %vm2220_vm1 = vcmask 1041408   ;;  %s3923_s1 = inlined_call_operand.vmem [shape: bf16[2048,256], index: 1, kind: input, shape index: {}]   ;;  %s3924_s0 = inlined_call_operand.vmem [shape: bf16[32,2048], index: 0, kind: input, shape index: {}]   ;;  %s3925_s2 = inlined_call_operand.vmem [shape: f32[32,256], index: 2, kind: output, shape index: {0}]   ;;  %s3926_s3 = inlined_call_operand.vmem [shape: f32[8,256], index: 3, kind: output, shape index: {1}]  }
   0x1   :  { %v2577_v0 = vld [vmem:[%s3923_s1 + $0x4] ss:$8 sps:$4 sm:$0xff]   ;;  %v2581_v2 = vld [vmem:[%s3923_s1] ss:$8 sps:$4 sm:$0xff]   ;;  %v2583_v4 = vld [vmem:[%s3923_s1 + $0x14] ss:$8 sps:$4 sm:$0xff]  }
   0x2   :  { %v2579_v1 = vld [vmem:[%s3923_s1 + $0x404] ss:$8 sps:$4 sm:$0xff]   ;;  %1741 = vmatprep.subr.bf16.mxu1 %v2577_v0  ;;  %v2582_v3 = vld [vmem:[%s3923_s1 + $0x400] ss:$8 sps:$4 sm:$0xff]   ;;  %v2585_v5 = vld [vmem:[%s3923_s1 + $0x414] ss:$8 sps:$4 sm:$0xff]  }
   0x3   :  { %1953 = vmatprep.subr.bf16.mxu0 %v2579_v1  ;;  %1742 = vmatpush1.bf16.msra.mxu1 %v2581_v2  ;;  %v2587_v6 = vld [vmem:[%s3923_s1 + $0x10] ss:$8 sps:$4 sm:$0xff]   ;;  %v2589_v8 = vld [vmem:[%s3923_s1 + $0x24] ss:$8 sps:$4 sm:$0xff]   ;;  %v2593_v10 = vld [vmem:[%s3923_s1 + $0x20] ss:$8 sps:$4 sm:$0xff]  }
   0x4   :  { %1954 = vmatpush1.bf16.msra.mxu0 %v2582_v3  ;;  %1743 = vmatprep.subr.bf16.mxu1 %v2583_v4  ;;  %v2588_v7 = vld [vmem:[%s3923_s1 + $0x410] ss:$8 sps:$4 sm:$0xff]   ;;  %v2591_v9 = vld [vmem:[%s3923_s1 + $0x424] ss:$8 sps:$4 sm:$0xff]   ;;  %v2594_v11 = vld [vmem:[%s3923_s1 + $0x420] ss:$8 sps:$4 sm:$0xff]  }
   0x5   :  { %1955 = vmatprep.subr.bf16.mxu0 %v2585_v5  ;;  %v2595_v12 = vld [vmem:[%s3923_s1 + $0x34] ss:$8 sps:$4 sm:$0xff]   ;;  %v2599_v14 = vld [vmem:[%s3923_s1 + $0x30] ss:$8 sps:$4 sm:$0xff]   ;;  %v2601_v16 = vld [vmem:[%s3923_s1 + $0x44] ss:$8 sps:$4 sm:$0xff]  }
   0x6   :  { %v2597_v13 = vld [vmem:[%s3923_s1 + $0x434] ss:$8 sps:$4 sm:$0xff]   ;;  %v2600_v15 = vld [vmem:[%s3923_s1 + $0x430] ss:$8 sps:$4 sm:$0xff]   ;;  %v2603_v17 = vld [vmem:[%s3923_s1 + $0x444] ss:$8 sps:$4 sm:$0xff]  }
   0x7   :  { %1744 = vmatpush1.bf16.msra.mxu1 %v2587_v6  ;;  %v2605_v18 = vld [vmem:[%s3923_s1 + $0x40] ss:$8 sps:$4 sm:$0xff]   ;;  %v2607_v20 = vld [vmem:[%s3923_s1 + $0x54] ss:$8 sps:$4 sm:$0xff]   ;;  %v2611_v22 = vld [vmem:[%s3923_s1 + $0x50] ss:$8 sps:$4 sm:$0xff]  }
   0x8   :  { %1956 = vmatpush1.bf16.msra.mxu0 %v2588_v7  ;;  %1745 = vmatprep.subr.bf16.mxu1 %v2589_v8  ;;  %v2606_v19 = vld [vmem:[%s3923_s1 + $0x440] ss:$8 sps:$4 sm:$0xff]   ;;  %v2609_v21 = vld [vmem:[%s3923_s1 + $0x454] ss:$8 sps:$4 sm:$0xff]   ;;  %v2612_v23 = vld [vmem:[%s3923_s1 + $0x450] ss:$8 sps:$4 sm:$0xff]  }
   0x9   :  { %1957 = vmatprep.subr.bf16.mxu0 %v2591_v9  ;;  %v2613_v24 = vld [vmem:[%s3923_s1 + $0x64] ss:$8 sps:$4 sm:$0xff]   ;;  %v2617_v26 = vld [vmem:[%s3923_s1 + $0x60] ss:$8 sps:$4 sm:$0xff]   ;;  %v2619_v28 = vld [vmem:[%s3923_s1 + $0x74] ss:$8 sps:$4 sm:$0xff]  }
   0xa   :  { %v2615_v25 = vld [vmem:[%s3923_s1 + $0x464] ss:$8 sps:$4 sm:$0xff]   ;;  %v2618_v27 = vld [vmem:[%s3923_s1 + $0x460] ss:$8 sps:$4 sm:$0xff]   ;;  %v2621_v29 = vld [vmem:[%s3923_s1 + $0x474] ss:$8 sps:$4 sm:$0xff]  }
   0xb   :  { %1746 = vmatpush1.bf16.msra.mxu1 %v2593_v10  ;;  %v2623_v30 = vld [vmem:[%s3923_s1 + $0x70] ss:$8 sps:$4 sm:$0xff]   ;;  %v2625_v32 = vld [vmem:[%s3923_s1 + $0x84] ss:$8 sps:$4 sm:$0xff]   ;;  %v2629_v34 = vld [vmem:[%s3923_s1 + $0x80] ss:$8 sps:$4 sm:$0xff]  }
   0xc   :  { %1958 = vmatpush1.bf16.msra.mxu0 %v2594_v11  ;;  %1747 = vmatprep.subr.bf16.mxu1 %v2595_v12  ;;  %v2624_v31 = vld [vmem:[%s3923_s1 + $0x470] ss:$8 sps:$4 sm:$0xff]   ;;  %v2627_v33 = vld [vmem:[%s3923_s1 + $0x484] ss:$8 sps:$4 sm:$0xff]   ;;  %v2630_v35 = vld [vmem:[%s3923_s1 + $0x480] ss:$8 sps:$4 sm:$0xff]  }
   0xd   :  { %1959 = vmatprep.subr.bf16.mxu0 %v2597_v13  ;;  %v2631_v36 = vld [vmem:[%s3923_s1 + $0x94] ss:$8 sps:$4 sm:$0xff]   ;;  %v2635_v38 = vld [vmem:[%s3923_s1 + $0x90] ss:$8 sps:$4 sm:$0xff]   ;;  %v2637_v40 = vld [vmem:[%s3923_s1 + $0xa4] ss:$8 sps:$4 sm:$0xff]  }
   0xe   :  { %v2633_v37 = vld [vmem:[%s3923_s1 + $0x494] ss:$8 sps:$4 sm:$0xff]   ;;  %v2636_v39 = vld [vmem:[%s3923_s1 + $0x490] ss:$8 sps:$4 sm:$0xff]   ;;  %v2639_v41 = vld [vmem:[%s3923_s1 + $0x4a4] ss:$8 sps:$4 sm:$0xff]  }
   0xf   :  { %1748 = vmatpush1.bf16.msra.mxu1 %v2599_v14  ;;  %v2641_v42 = vld [vmem:[%s3923_s1 + $0xa0] ss:$8 sps:$4 sm:$0xff]   ;;  %v2643_v44 = vld [vmem:[%s3923_s1 + $0xb4] ss:$8 sps:$4 sm:$0xff]   ;;  %v2647_v46 = vld [vmem:[%s3923_s1 + $0xb0] ss:$8 sps:$4 sm:$0xff]  }
  0x10   :  { %1960 = vmatpush1.bf16.msra.mxu0 %v2600_v15  ;;  %1749 = vmatprep.subr.bf16.mxu1 %v2601_v16  ;;  %v2642_v43 = vld [vmem:[%s3923_s1 + $0x4a0] ss:$8 sps:$4 sm:$0xff]   ;;  %v2645_v45 = vld [vmem:[%s3923_s1 + $0x4b4] ss:$8 sps:$4 sm:$0xff]   ;;  %v2648_v47 = vld [vmem:[%s3923_s1 + $0x4b0] ss:$8 sps:$4 sm:$0xff]  }
  0x11   :  { %1961 = vmatprep.subr.bf16.mxu0 %v2603_v17  ;;  %v13_v48 = vld [vmem:[%s3924_s0] sm:$0xff]  ;;  %v2655_v58 = vld [vmem:[%s3923_s1 + $0xd4] ss:$8 sps:$4 sm:$0xff]   ;;  %v2659_v60 = vld [vmem:[%s3923_s1 + $0xd0] ss:$8 sps:$4 sm:$0xff]  }
  0x12   :  { %v21_v49 = vld [vmem:[%s3924_s0 + $0x40] sm:$0xff]  ;;  %v2657_v59 = vld [vmem:[%s3923_s1 + $0x4d4] ss:$8 sps:$4 sm:$0xff]   ;;  %v2660_v61 = vld [vmem:[%s3923_s1 + $0x4d0] ss:$8 sps:$4 sm:$0xff]  }
  0x13   :  { %1750 = vmatpush1.bf16.msra.mxu1 %v2605_v18  ;;  %v2649_v50 = vld [vmem:[%s3923_s1 + $0xc4] ss:$8 sps:$4 sm:$0xff]   ;;  %v2234_v52 = vcombine.high %v13_v48, %v21_v49  ;;  %v2653_v56 = vld [vmem:[%s3923_s1 + $0xc0] ss:$8 sps:$4 sm:$0xff]   ;;  %v2667_v2 = vld [vmem:[%s3923_s1 + $0xf4] ss:$8 sps:$4 sm:$0xff]   ;;  %v2233_v8 = vcombine.low %v13_v48, %v21_v49 }
  0x14   :  { %1962 = vmatpush1.bf16.msra.mxu0 %v2606_v19  ;;  %1751 = vmatprep.subr.bf16.mxu1 %v2607_v20  ;;  %v2651_v51 = vld [vmem:[%s3923_s1 + $0x4c4] ss:$8 sps:$4 sm:$0xff]   ;;  %v2654_v57 = vld [vmem:[%s3923_s1 + $0x4c0] ss:$8 sps:$4 sm:$0xff]   ;;  %v2669_v3 = vld [vmem:[%s3923_s1 + $0x4f4] ss:$8 sps:$4 sm:$0xff]  }
  0x15   :  { %1963 = vmatprep.subr.bf16.mxu0 %v2609_v21  ;;  %v17_v53 = vld [vmem:[%s3924_s0 + $0x20] sm:$0xff]  ;;  %1773 = vmatprep.mubr.bf16.mxu1 %v2234_v52  ;;  %v2671_v4 = vld [vmem:[%s3923_s1 + $0xf0] ss:$8 sps:$4 sm:$0xff]   ;;  %v2681_v12 = vld [vmem:[%s3923_s1 + $0x114] ss:$8 sps:$4 sm:$0xff]  }
  0x16   :  { %v25_v54 = vld [vmem:[%s3924_s0 + $0x60] sm:$0xff]  ;;  %v2672_v5 = vld [vmem:[%s3923_s1 + $0x4f0] ss:$8 sps:$4 sm:$0xff]   ;;  %v2684_v13 = vld [vmem:[%s3923_s1 + $0x514] ss:$8 sps:$4 sm:$0xff]  }
  0x17   :  { %1752 = vmatpush1.bf16.msra.mxu1 %v2611_v22  ;;  %v2242_v55 = vcombine.high %v17_v53, %v25_v54  ;;  %v2661_v62 = vld [vmem:[%s3923_s1 + $0xe4] ss:$8 sps:$4 sm:$0xff]   ;;  %v2665_v0 = vld [vmem:[%s3923_s1 + $0xe0] ss:$8 sps:$4 sm:$0xff]   ;;  %v2241_v10 = vcombine.low %v17_v53, %v25_v54  ;;  %v2679_v14 = vld [vmem:[%s3923_s1 + $0x110] ss:$8 sps:$4 sm:$0xff]  }
  0x18   :  { %1964 = vmatpush1.bf16.msra.mxu0 %v2612_v23  ;;  %1753 = vmatprep.subr.bf16.mxu1 %v2613_v24  ;;  %v2663_v63 = vld [vmem:[%s3923_s1 + $0x4e4] ss:$8 sps:$4 sm:$0xff]   ;;  %v2666_v1 = vld [vmem:[%s3923_s1 + $0x4e0] ss:$8 sps:$4 sm:$0xff]   ;;  %v2682_v15 = vld [vmem:[%s3923_s1 + $0x510] ss:$8 sps:$4 sm:$0xff]  }
  0x19   :  { %1965 = vmatprep.subr.bf16.mxu0 %v2615_v25  ;;  %1985 = vmatprep.mubr.bf16.mxu0 %v2242_v55  ;;  %v2675_v6 = vld [vmem:[%s3923_s1 + $0x104] ss:$8 sps:$4 sm:$0xff]   ;;  %v2673_v9 = vld [vmem:[%s3923_s1 + $0x100] ss:$8 sps:$4 sm:$0xff]   ;;  %v2693_v20 = vld [vmem:[%s3923_s1 + $0x134] ss:$8 sps:$4 sm:$0xff]  }
  0x1a   :  { %v2678_v7 = vld [vmem:[%s3923_s1 + $0x504] ss:$8 sps:$4 sm:$0xff]   ;;  %v2676_v11 = vld [vmem:[%s3923_s1 + $0x500] ss:$8 sps:$4 sm:$0xff]   ;;  %v2696_v21 = vld [vmem:[%s3923_s1 + $0x534] ss:$8 sps:$4 sm:$0xff]  }
  0x1b   :  { %1754 = vmatpush1.bf16.msra.mxu1 %v2617_v26  ;;  %v2687_v16 = vld [vmem:[%s3923_s1 + $0x124] ss:$8 sps:$4 sm:$0xff]   ;;  %v2685_v18 = vld [vmem:[%s3923_s1 + $0x120] ss:$8 sps:$4 sm:$0xff]   ;;  %v2691_v22 = vld [vmem:[%s3923_s1 + $0x130] ss:$8 sps:$4 sm:$0xff]  }
  0x1c   :  { %1966 = vmatpush1.bf16.msra.mxu0 %v2618_v27  ;;  %1755 = vmatprep.subr.bf16.mxu1 %v2619_v28  ;;  %v2690_v17 = vld [vmem:[%s3923_s1 + $0x524] ss:$8 sps:$4 sm:$0xff]   ;;  %v2688_v19 = vld [vmem:[%s3923_s1 + $0x520] ss:$8 sps:$4 sm:$0xff]   ;;  %v2694_v23 = vld [vmem:[%s3923_s1 + $0x530] ss:$8 sps:$4 sm:$0xff]  }
  0x1d   :  { %1967 = vmatprep.subr.bf16.mxu0 %v2621_v29  ;;  %v2699_v24 = vld [vmem:[%s3923_s1 + $0x144] ss:$8 sps:$4 sm:$0xff]   ;;  %v2697_v26 = vld [vmem:[%s3923_s1 + $0x140] ss:$8 sps:$4 sm:$0xff]   ;;  %v2705_v28 = vld [vmem:[%s3923_s1 + $0x154] ss:$8 sps:$4 sm:$0xff]  }
  0x1e   :  { %v2702_v25 = vld [vmem:[%s3923_s1 + $0x544] ss:$8 sps:$4 sm:$0xff]   ;;  %v2700_v27 = vld [vmem:[%s3923_s1 + $0x540] ss:$8 sps:$4 sm:$0xff]   ;;  %v2708_v29 = vld [vmem:[%s3923_s1 + $0x554] ss:$8 sps:$4 sm:$0xff]  }
  0x1f   :  { %1756 = vmatpush1.bf16.msra.mxu1 %v2623_v30  ;;  %v29_v30 = vld [vmem:[%s3924_s0 + $0x80] sm:$0xff]  ;;  %v3302_v49 = vld [vmem:[%s3924_s0 + $0x28] sm:$0xff]  ;;  %v2718_v52 = vld [vmem:[%s3923_s1 + $0x570] ss:$8 sps:$4 sm:$0xff]  }
  0x20   :  { %1968 = vmatpush1.bf16.msra.mxu0 %v2624_v31  ;;  %1757 = vmatprep.subr.bf16.mxu1 %v2625_v32  ;;  %v37_v31 = vld [vmem:[%s3924_s0 + $0xc0] sm:$0xff]  ;;  %v2703_v32 = vld [vmem:[%s3923_s1 + $0x150] ss:$8 sps:$4 sm:$0xff]  }
  0x21   :  { %1969 = vmatprep.subr.bf16.mxu0 %v2627_v33  ;;  %v2250_v33 = vcombine.high %v29_v30, %v37_v31  ;;  %v2723_v54 = vld [vmem:[%s3923_s1 + $0x184] ss:$8 sps:$4 sm:$0xff]  }
  0x22   :  { %v2726_v55 = vld [vmem:[%s3923_s1 + $0x584] ss:$8 sps:$4 sm:$0xff]  }
  0x23   :  { %1758 = vmatpush1.bf16.msra.mxu1 %v2629_v34  ;;  %v2706_v34 = vld [vmem:[%s3923_s1 + $0x550] ss:$8 sps:$4 sm:$0xff]  }
  0x24   :  { %1970 = vmatpush1.bf16.msra.mxu0 %v2630_v35  ;;  %1759 = vmatprep.subr.bf16.mxu1 %v2631_v36  ;;  %v33_v35 = vld [vmem:[%s3924_s0 + $0xa0] sm:$0xff] }
  0x25   :  { %1971 = vmatprep.subr.bf16.mxu0 %v2633_v37  ;;  %v41_v36 = vld [vmem:[%s3924_s0 + $0xe0] sm:$0xff]  ;;  %v2249_v37 = vcombine.low %v29_v30, %v37_v31  ;;  %v2777_v30 = vld [vmem:[%s3923_s1 + $0x214] ss:$8 sps:$4 sm:$0xff]  }
  0x26   :  { %v2780_v31 = vld [vmem:[%s3923_s1 + $0x614] ss:$8 sps:$4 sm:$0xff]  }
  0x27   :  { %1760 = vmatpush1.bf16.msra.mxu1 %v2635_v38  ;;  %v2711_v38 = vld [vmem:[%s3923_s1 + $0x164] ss:$8 sps:$4 sm:$0xff]  }
  0x28   :  { %1972 = vmatpush1.bf16.msra.mxu0 %v2636_v39  ;;  %1761 = vmatprep.subr.bf16.mxu1 %v2637_v40  ;;  %v2258_v39 = vcombine.high %v33_v35, %v41_v36  ;;  %v2257_v40 = vcombine.low %v33_v35, %v41_v36  ;;  %v2775_v36 = vld [vmem:[%s3923_s1 + $0x210] ss:$8 sps:$4 sm:$0xff]  }
  0x29   :  { %1973 = vmatprep.subr.bf16.mxu0 %v2639_v41  ;;  %v2714_v41 = vld [vmem:[%s3923_s1 + $0x564] ss:$8 sps:$4 sm:$0xff]  }
  0x2b   :  { %1762 = vmatpush1.bf16.msra.mxu1 %v2641_v42  ;;  %v2709_v42 = vld [vmem:[%s3923_s1 + $0x160] ss:$8 sps:$4 sm:$0xff]  }
  0x2c   :  { %1974 = vmatpush1.bf16.msra.mxu0 %v2642_v43  ;;  %1763 = vmatprep.subr.bf16.mxu1 %v2643_v44  ;;  %v2712_v43 = vld [vmem:[%s3923_s1 + $0x560] ss:$8 sps:$4 sm:$0xff]  }
  0x2d   :  { %1975 = vmatprep.subr.bf16.mxu0 %v2645_v45  ;;  %v3284_v44 = vld [vmem:[%s3924_s0 + $0x8] sm:$0xff] }
  0x2e   :  { %v3289_v45 = vld [vmem:[%s3924_s0 + $0x48] sm:$0xff] }
  0x2f   :  { %1764 = vmatpush1.bf16.msra.mxu1 %v2647_v46  ;;  %v2717_v46 = vld [vmem:[%s3923_s1 + $0x174] ss:$8 sps:$4 sm:$0xff]   ;;  %v2236_v48 = vcombine.high %v3284_v44, %v3289_v45 }
  0x30   :  { %1976 = vmatpush1.bf16.msra.mxu0 %v2648_v47  ;;  %1765 = vmatprep.subr.bf16.mxu1 %v2649_v50  ;;  %v2720_v47 = vld [vmem:[%s3923_s1 + $0x574] ss:$8 sps:$4 sm:$0xff]   ;;  %v3307_v50 = vld [vmem:[%s3924_s0 + $0x68] sm:$0xff] }
  0x31   :  { %1977 = vmatprep.subr.bf16.mxu0 %v2651_v51  ;;  %v2715_v51 = vld [vmem:[%s3923_s1 + $0x170] ss:$8 sps:$4 sm:$0xff]   ;;  %v2244_v53 = vcombine.high %v3302_v49, %v3307_v50 }
  0x33   :  { %1766 = vmatpush1.bf16.msra.mxu1 %v2653_v56  ;;  %v2721_v56 = vld [vmem:[%s3923_s1 + $0x180] ss:$8 sps:$4 sm:$0xff]  }
  0x34   :  { %1978 = vmatpush1.bf16.msra.mxu0 %v2654_v57  ;;  %1767 = vmatprep.subr.bf16.mxu1 %v2655_v58  ;;  %v2724_v57 = vld [vmem:[%s3923_s1 + $0x580] ss:$8 sps:$4 sm:$0xff]   ;;  %v2729_v58 = vld [vmem:[%s3923_s1 + $0x194] ss:$8 sps:$4 sm:$0xff]  }
  0x35   :  { %1979 = vmatprep.subr.bf16.mxu0 %v2657_v59  ;;  %v2732_v59 = vld [vmem:[%s3923_s1 + $0x594] ss:$8 sps:$4 sm:$0xff]  }
  0x37   :  { %1768 = vmatpush1.bf16.msra.mxu1 %v2659_v60  ;;  %v2727_v60 = vld [vmem:[%s3923_s1 + $0x190] ss:$8 sps:$4 sm:$0xff]  }
  0x38   :  { %1980 = vmatpush1.bf16.msra.mxu0 %v2660_v61  ;;  %1769 = vmatprep.subr.bf16.mxu1 %v2661_v62  ;;  %v2730_v61 = vld [vmem:[%s3923_s1 + $0x590] ss:$8 sps:$4 sm:$0xff]   ;;  %v2735_v62 = vld [vmem:[%s3923_s1 + $0x1a4] ss:$8 sps:$4 sm:$0xff]  }
  0x39   :  { %1981 = vmatprep.subr.bf16.mxu0 %v2663_v63  ;;  %v2738_v63 = vld [vmem:[%s3923_s1 + $0x5a4] ss:$8 sps:$4 sm:$0xff]  }
  0x3b   :  { %1770 = vmatpush1.bf16.msra.mxu1 %v2665_v0  ;;  %v2733_v0 = vld [vmem:[%s3923_s1 + $0x1a0] ss:$8 sps:$4 sm:$0xff]  }
  0x3c   :  { %1982 = vmatpush1.bf16.msra.mxu0 %v2666_v1  ;;  %1771 = vmatprep.subr.bf16.mxu1 %v2667_v2  ;;  %v2736_v1 = vld [vmem:[%s3923_s1 + $0x5a0] ss:$8 sps:$4 sm:$0xff]   ;;  %v2741_v2 = vld [vmem:[%s3923_s1 + $0x1b4] ss:$8 sps:$4 sm:$0xff]  }
  0x3d   :  { %1983 = vmatprep.subr.bf16.mxu0 %v2669_v3  ;;  %v2744_v3 = vld [vmem:[%s3923_s1 + $0x5b4] ss:$8 sps:$4 sm:$0xff]  }
  0x3f   :  { %1772 = vmatpush1.bf16.msra.mxu1 %v2671_v4  ;;  %v2739_v4 = vld [vmem:[%s3923_s1 + $0x1b0] ss:$8 sps:$4 sm:$0xff]  }
  0x40   :  { %1984 = vmatpush1.bf16.msra.mxu0 %v2672_v5  ;;  %1794 = vmatprep.subr.bf16.mxu1 %v2675_v6  ;;  %v2742_v5 = vld [vmem:[%s3923_s1 + $0x5b0] ss:$8 sps:$4 sm:$0xff]   ;;  %v2747_v6 = vld [vmem:[%s3923_s1 + $0x1c4] ss:$8 sps:$4 sm:$0xff]  }
  0x41   :  { %2006 = vmatprep.subr.bf16.mxu0 %v2678_v7  ;;  %v2750_v7 = vld [vmem:[%s3923_s1 + $0x5c4] ss:$8 sps:$4 sm:$0xff]  }
  0x42   :  { %1774 = vmatmul.mubr.bf16.vlgmr.msra.gmra.mrb[0].mxu1 %v2233_v8  ;;  %v2745_v8 = vld [vmem:[%s3923_s1 + $0x1c0] ss:$8 sps:$4 sm:$0xff]  }
  0x43   :  { %1986 = vmatmul.mubr.bf16.vlgmr.msra.gmra.mrb[0].mxu0 %v2241_v10  ;;  %1795 = vmatpush1.bf16.msra.mxu1 %v2673_v9  ;;  %v2748_v9 = vld [vmem:[%s3923_s1 + $0x5c0] ss:$8 sps:$4 sm:$0xff]   ;;  %v2753_v10 = vld [vmem:[%s3923_s1 + $0x1d4] ss:$8 sps:$4 sm:$0xff]  }
  0x44   :  { %2007 = vmatpush1.bf16.msra.mxu0 %v2676_v11  ;;  %1796 = vmatprep.subr.bf16.mxu1 %v2681_v12  ;;  %v2756_v11 = vld [vmem:[%s3923_s1 + $0x5d4] ss:$8 sps:$4 sm:$0xff]   ;;  %v2751_v12 = vld [vmem:[%s3923_s1 + $0x1d0] ss:$8 sps:$4 sm:$0xff]  }
  0x45   :  { %2008 = vmatprep.subr.bf16.mxu0 %v2684_v13  ;;  %1783 = vmatprep.mubr.bf16.mxu1 %v2250_v33  ;;  %v2754_v13 = vld [vmem:[%s3923_s1 + $0x5d0] ss:$8 sps:$4 sm:$0xff]   ;;  %v42_v33 = vld [vmem:[%s3924_s0 + $0xe8] sm:$0xff] }
  0x46   :  { %1995 = vmatprep.mubr.bf16.mxu0 %v2258_v39  ;;  %v2786_v39 = vld [vmem:[%s3923_s1 + $0x624] ss:$8 sps:$4 sm:$0xff]  }
  0x47   :  { %1797 = vmatpush1.bf16.msra.mxu1 %v2679_v14  ;;  %v2759_v14 = vld [vmem:[%s3923_s1 + $0x1e4] ss:$8 sps:$4 sm:$0xff]  }
  0x48   :  { %2009 = vmatpush1.bf16.msra.mxu0 %v2682_v15  ;;  %1798 = vmatprep.subr.bf16.mxu1 %v2687_v16  ;;  %v2762_v15 = vld [vmem:[%s3923_s1 + $0x5e4] ss:$8 sps:$4 sm:$0xff]   ;;  %v2757_v16 = vld [vmem:[%s3923_s1 + $0x1e0] ss:$8 sps:$4 sm:$0xff]  }
  0x49   :  { %2010 = vmatprep.subr.bf16.mxu0 %v2690_v17  ;;  %v2760_v17 = vld [vmem:[%s3923_s1 + $0x5e0] ss:$8 sps:$4 sm:$0xff]  }
  0x4a   :  { %1784 = vmatmul.mubr.bf16.gmra.mrb[4].mxu1 %v2249_v37  ;;  %v2778_v37 = vld [vmem:[%s3923_s1 + $0x610] ss:$8 sps:$4 sm:$0xff]  }
  0x4b   :  { %1799 = vmatpush1.bf16.msra.mxu1 %v2685_v18  ;;  %1996 = vmatmul.mubr.bf16.gmra.mrb[4].mxu0 %v2257_v40  ;;  %v2765_v18 = vld [vmem:[%s3923_s1 + $0x1f4] ss:$8 sps:$4 sm:$0xff]   ;;  %v2781_v40 = vld [vmem:[%s3923_s1 + $0x220] ss:$8 sps:$4 sm:$0xff]  }
  0x4c   :  { %2011 = vmatpush1.bf16.msra.mxu0 %v2688_v19  ;;  %1800 = vmatprep.subr.bf16.mxu1 %v2693_v20  ;;  %v2768_v19 = vld [vmem:[%s3923_s1 + $0x5f4] ss:$8 sps:$4 sm:$0xff]   ;;  %v2763_v20 = vld [vmem:[%s3923_s1 + $0x1f0] ss:$8 sps:$4 sm:$0xff]  }
  0x4d   :  { %2012 = vmatprep.subr.bf16.mxu0 %v2696_v21  ;;  %1826 = vmatprep.mubr.bf16.mxu1 %v2236_v48  ;;  %v2766_v21 = vld [vmem:[%s3923_s1 + $0x5f0] ss:$8 sps:$4 sm:$0xff]   ;;  %v2789_v48 = vld [vmem:[%s3923_s1 + $0x234] ss:$8 sps:$4 sm:$0xff]  }
  0x4e   :  { %2038 = vmatprep.mubr.bf16.mxu0 %v2244_v53  ;;  %v2790_v53 = vld [vmem:[%s3923_s1 + $0x630] ss:$8 sps:$4 sm:$0xff]  }
  0x4f   :  { %1801 = vmatpush1.bf16.msra.mxu1 %v2691_v22  ;;  %v2771_v22 = vld [vmem:[%s3923_s1 + $0x204] ss:$8 sps:$4 sm:$0xff]  }
  0x50   :  { %2013 = vmatpush1.bf16.msra.mxu0 %v2694_v23  ;;  %1802 = vmatprep.subr.bf16.mxu1 %v2699_v24  ;;  %v2774_v23 = vld [vmem:[%s3923_s1 + $0x604] ss:$8 sps:$4 sm:$0xff]   ;;  %v2769_v24 = vld [vmem:[%s3923_s1 + $0x200] ss:$8 sps:$4 sm:$0xff]  }
  0x51   :  { %2014 = vmatprep.subr.bf16.mxu0 %v2702_v25  ;;  %v2772_v25 = vld [vmem:[%s3923_s1 + $0x600] ss:$8 sps:$4 sm:$0xff]  }
  0x53   :  { %1803 = vmatpush1.bf16.msra.mxu1 %v2697_v26  ;;  %v30_v26 = vld [vmem:[%s3924_s0 + $0x88] sm:$0xff] }
  0x54   :  { %2015 = vmatpush1.bf16.msra.mxu0 %v2700_v27  ;;  %1804 = vmatprep.subr.bf16.mxu1 %v2705_v28  ;;  %v2235_v27 = vcombine.low %v3284_v44, %v3289_v45  ;;  %v2243_v28 = vcombine.low %v3302_v49, %v3307_v50  ;;  %v3473_v45 = vld [vmem:[%s3924_s0 + $0x50] sm:$0xff] }
  0x55   :  { %2016 = vmatprep.subr.bf16.mxu0 %v2708_v29  ;;  %v38_v29 = vld [vmem:[%s3924_s0 + $0xc8] sm:$0xff]  ;;  %v2792_v49 = vld [vmem:[%s3923_s1 + $0x634] ss:$8 sps:$4 sm:$0xff]  }
  0x57   :  { %1805 = vmatpush1.bf16.msra.mxu1 %v2703_v32  ;;  %v34_v32 = vld [vmem:[%s3924_s0 + $0xa8] sm:$0xff] }
  0x58   :  { %2017 = vmatpush1.bf16.msra.mxu0 %v2706_v34  ;;  %1806 = vmatprep.subr.bf16.mxu1 %v2711_v38  ;;  %v2252_v34 = vcombine.high %v30_v26, %v38_v29  ;;  %v2260_v35 = vcombine.high %v34_v32, %v42_v33  ;;  %v2783_v38 = vld [vmem:[%s3923_s1 + $0x224] ss:$8 sps:$4 sm:$0xff]   ;;  %v2259_v44 = vcombine.low %v34_v32, %v42_v33  ;;  %v2853_v32 = vld [vmem:[%s3923_s1 + $0x2e0] ss:$8 sps:$4 sm:$0xff]  }
  0x59   :  { %2018 = vmatprep.subr.bf16.mxu0 %v2714_v41  ;;  %v2784_v41 = vld [vmem:[%s3923_s1 + $0x620] ss:$8 sps:$4 sm:$0xff]  }
  0x5a   :  { %v2856_v33 = vld [vmem:[%s3923_s1 + $0x6e0] ss:$8 sps:$4 sm:$0xff]  }
  0x5b   :  { %1807 = vmatpush1.bf16.msra.mxu1 %v2709_v42  ;;  %v3468_v42 = vld [vmem:[%s3924_s0 + $0x10] sm:$0xff] }
  0x5c   :  { %2019 = vmatpush1.bf16.msra.mxu0 %v2712_v43  ;;  %1808 = vmatprep.subr.bf16.mxu1 %v2717_v46  ;;  %v2251_v43 = vcombine.low %v30_v26, %v38_v29  ;;  %v3478_v46 = vld [vmem:[%s3924_s0 + $0x30] sm:$0xff]  ;;  %v2238_v50 = vcombine.high %v3468_v42, %v3473_v45 }
  0x5d   :  { %2020 = vmatprep.subr.bf16.mxu0 %v2720_v47  ;;  %v3483_v47 = vld [vmem:[%s3924_s0 + $0x70] sm:$0xff] }
  0x5e   :  { %v2849_v26 = vld [vmem:[%s3923_s1 + $0x2d4] ss:$8 sps:$4 sm:$0xff]   ;;  %v2850_v29 = vld [vmem:[%s3923_s1 + $0x6d0] ss:$8 sps:$4 sm:$0xff]  }
  0x5f   :  { %1809 = vmatpush1.bf16.msra.mxu1 %v2715_v51  ;;  %v2246_v51 = vcombine.high %v3478_v46, %v3483_v47 }
  0x60   :  { %2021 = vmatpush1.bf16.msra.mxu0 %v2718_v52  ;;  %1810 = vmatprep.subr.bf16.mxu1 %v2723_v54  ;;  %v2787_v52 = vld [vmem:[%s3923_s1 + $0x230] ss:$8 sps:$4 sm:$0xff]   ;;  %v2795_v54 = vld [vmem:[%s3923_s1 + $0x244] ss:$8 sps:$4 sm:$0xff]  }
  0x61   :  { %2022 = vmatprep.subr.bf16.mxu0 %v2726_v55  ;;  %v2798_v55 = vld [vmem:[%s3923_s1 + $0x644] ss:$8 sps:$4 sm:$0xff]  }
  0x63   :  { %1811 = vmatpush1.bf16.msra.mxu1 %v2721_v56  ;;  %v2793_v56 = vld [vmem:[%s3923_s1 + $0x240] ss:$8 sps:$4 sm:$0xff]  }
  0x64   :  { %2023 = vmatpush1.bf16.msra.mxu0 %v2724_v57  ;;  %1812 = vmatprep.subr.bf16.mxu1 %v2729_v58  ;;  %v2796_v57 = vld [vmem:[%s3923_s1 + $0x640] ss:$8 sps:$4 sm:$0xff]   ;;  %v2801_v58 = vld [vmem:[%s3923_s1 + $0x254] ss:$8 sps:$4 sm:$0xff]  }
  0x65   :  { %2024 = vmatprep.subr.bf16.mxu0 %v2732_v59  ;;  %v2804_v59 = vld [vmem:[%s3923_s1 + $0x654] ss:$8 sps:$4 sm:$0xff]  }
  0x67   :  { %1813 = vmatpush1.bf16.msra.mxu1 %v2727_v60  ;;  %v2799_v60 = vld [vmem:[%s3923_s1 + $0x250] ss:$8 sps:$4 sm:$0xff]  }
  0x68   :  { %2025 = vmatpush1.bf16.msra.mxu0 %v2730_v61  ;;  %1814 = vmatprep.subr.bf16.mxu1 %v2735_v62  ;;  %v2802_v61 = vld [vmem:[%s3923_s1 + $0x650] ss:$8 sps:$4 sm:$0xff]   ;;  %v2807_v62 = vld [vmem:[%s3923_s1 + $0x264] ss:$8 sps:$4 sm:$0xff]  }
  0x69   :  { %2026 = vmatprep.subr.bf16.mxu0 %v2738_v63  ;;  %v2810_v63 = vld [vmem:[%s3923_s1 + $0x664] ss:$8 sps:$4 sm:$0xff]  }
  0x6b   :  { %1815 = vmatpush1.bf16.msra.mxu1 %v2733_v0  ;;  %v2805_v0 = vld [vmem:[%s3923_s1 + $0x260] ss:$8 sps:$4 sm:$0xff]  }
  0x6c   :  { %2027 = vmatpush1.bf16.msra.mxu0 %v2736_v1  ;;  %1816 = vmatprep.subr.bf16.mxu1 %v2741_v2  ;;  %v2808_v1 = vld [vmem:[%s3923_s1 + $0x660] ss:$8 sps:$4 sm:$0xff]   ;;  %v2813_v2 = vld [vmem:[%s3923_s1 + $0x274] ss:$8 sps:$4 sm:$0xff]  }
  0x6d   :  { %2028 = vmatprep.subr.bf16.mxu0 %v2744_v3  ;;  %v2816_v3 = vld [vmem:[%s3923_s1 + $0x674] ss:$8 sps:$4 sm:$0xff]  }
  0x6f   :  { %1817 = vmatpush1.bf16.msra.mxu1 %v2739_v4  ;;  %v2811_v4 = vld [vmem:[%s3923_s1 + $0x270] ss:$8 sps:$4 sm:$0xff]  }
  0x70   :  { %2029 = vmatpush1.bf16.msra.mxu0 %v2742_v5  ;;  %1818 = vmatprep.subr.bf16.mxu1 %v2747_v6  ;;  %v2814_v5 = vld [vmem:[%s3923_s1 + $0x670] ss:$8 sps:$4 sm:$0xff]   ;;  %v2819_v6 = vld [vmem:[%s3923_s1 + $0x284] ss:$8 sps:$4 sm:$0xff]  }
  0x71   :  { %2030 = vmatprep.subr.bf16.mxu0 %v2750_v7  ;;  %v2822_v7 = vld [vmem:[%s3923_s1 + $0x684] ss:$8 sps:$4 sm:$0xff]  }
  0x73   :  { %1819 = vmatpush1.bf16.msra.mxu1 %v2745_v8  ;;  %v2817_v8 = vld [vmem:[%s3923_s1 + $0x280] ss:$8 sps:$4 sm:$0xff]  }
  0x74   :  { %2031 = vmatpush1.bf16.msra.mxu0 %v2748_v9  ;;  %1820 = vmatprep.subr.bf16.mxu1 %v2753_v10  ;;  %v2820_v9 = vld [vmem:[%s3923_s1 + $0x680] ss:$8 sps:$4 sm:$0xff]   ;;  %v2825_v10 = vld [vmem:[%s3923_s1 + $0x294] ss:$8 sps:$4 sm:$0xff]  }
  0x75   :  { %2032 = vmatprep.subr.bf16.mxu0 %v2756_v11  ;;  %v2828_v11 = vld [vmem:[%s3923_s1 + $0x694] ss:$8 sps:$4 sm:$0xff]  }
  0x77   :  { %1821 = vmatpush1.bf16.msra.mxu1 %v2751_v12  ;;  %v2823_v12 = vld [vmem:[%s3923_s1 + $0x290] ss:$8 sps:$4 sm:$0xff]  }
  0x78   :  { %2033 = vmatpush1.bf16.msra.mxu0 %v2754_v13  ;;  %1822 = vmatprep.subr.bf16.mxu1 %v2759_v14  ;;  %v2826_v13 = vld [vmem:[%s3923_s1 + $0x690] ss:$8 sps:$4 sm:$0xff]   ;;  %v2831_v14 = vld [vmem:[%s3923_s1 + $0x2a4] ss:$8 sps:$4 sm:$0xff]  }
  0x79   :  { %2034 = vmatprep.subr.bf16.mxu0 %v2762_v15  ;;  %v2834_v15 = vld [vmem:[%s3923_s1 + $0x6a4] ss:$8 sps:$4 sm:$0xff]  }
  0x7b   :  { %1823 = vmatpush1.bf16.msra.mxu1 %v2757_v16  ;;  %v2829_v16 = vld [vmem:[%s3923_s1 + $0x2a0] ss:$8 sps:$4 sm:$0xff]  }
  0x7c   :  { %2035 = vmatpush1.bf16.msra.mxu0 %v2760_v17  ;;  %1824 = vmatprep.subr.bf16.mxu1 %v2765_v18  ;;  %v2832_v17 = vld [vmem:[%s3923_s1 + $0x6a0] ss:$8 sps:$4 sm:$0xff]   ;;  %v2837_v18 = vld [vmem:[%s3923_s1 + $0x2b4] ss:$8 sps:$4 sm:$0xff]  }
  0x7d   :  { %2036 = vmatprep.subr.bf16.mxu0 %v2768_v19  ;;  %v2840_v19 = vld [vmem:[%s3923_s1 + $0x6b4] ss:$8 sps:$4 sm:$0xff]  }
  0x7f   :  { %1825 = vmatpush1.bf16.msra.mxu1 %v2763_v20  ;;  %v2835_v20 = vld [vmem:[%s3923_s1 + $0x2b0] ss:$8 sps:$4 sm:$0xff]  }
  0x80   :  { %2037 = vmatpush1.bf16.msra.mxu0 %v2766_v21  ;;  %1847 = vmatprep.subr.bf16.mxu1 %v2771_v22  ;;  %v2838_v21 = vld [vmem:[%s3923_s1 + $0x6b0] ss:$8 sps:$4 sm:$0xff]   ;;  %v2843_v22 = vld [vmem:[%s3923_s1 + $0x2c4] ss:$8 sps:$4 sm:$0xff]  }
  0x81   :  { %2059 = vmatprep.subr.bf16.mxu0 %v2774_v23  ;;  %v2846_v23 = vld [vmem:[%s3923_s1 + $0x6c4] ss:$8 sps:$4 sm:$0xff]  }
  0x82   :  { %1827 = vmatmul.mubr.bf16.vlgmr.msra.gmra.mrb[0].mxu1 %v2235_v27  ;;  %v2852_v27 = vld [vmem:[%s3923_s1 + $0x6d4] ss:$8 sps:$4 sm:$0xff]  }
  0x83   :  { %2039 = vmatmul.mubr.bf16.vlgmr.msra.gmra.mrb[0].mxu0 %v2243_v28  ;;  %1848 = vmatpush1.bf16.msra.mxu1 %v2769_v24  ;;  %v2841_v24 = vld [vmem:[%s3923_s1 + $0x2c0] ss:$8 sps:$4 sm:$0xff]   ;;  %v2847_v28 = vld [vmem:[%s3923_s1 + $0x2d0] ss:$8 sps:$4 sm:$0xff]  }
  0x84   :  { %2060 = vmatpush1.bf16.msra.mxu0 %v2772_v25  ;;  %1849 = vmatprep.subr.bf16.mxu1 %v2777_v30  ;;  %v2844_v25 = vld [vmem:[%s3923_s1 + $0x6c0] ss:$8 sps:$4 sm:$0xff]   ;;  %v2855_v30 = vld [vmem:[%s3923_s1 + $0x2e4] ss:$8 sps:$4 sm:$0xff]  }
  0x85   :  { %2061 = vmatprep.subr.bf16.mxu0 %v2780_v31  ;;  %1836 = vmatprep.mubr.bf16.mxu1 %v2252_v34  ;;  %v2858_v31 = vld [vmem:[%s3923_s1 + $0x6e4] ss:$8 sps:$4 sm:$0xff]   ;;  %v2861_v34 = vld [vmem:[%s3923_s1 + $0x2f4] ss:$8 sps:$4 sm:$0xff]  }
  0x86   :  { %2048 = vmatprep.mubr.bf16.mxu0 %v2260_v35  ;;  %v2864_v35 = vld [vmem:[%s3923_s1 + $0x6f4] ss:$8 sps:$4 sm:$0xff]  }
  0x87   :  { %1850 = vmatpush1.bf16.msra.mxu1 %v2775_v36  ;;  %v2859_v36 = vld [vmem:[%s3923_s1 + $0x2f0] ss:$8 sps:$4 sm:$0xff]  }
  0x88   :  { %2062 = vmatpush1.bf16.msra.mxu0 %v2778_v37  ;;  %1851 = vmatprep.subr.bf16.mxu1 %v2783_v38  ;;  %v2862_v37 = vld [vmem:[%s3923_s1 + $0x6f0] ss:$8 sps:$4 sm:$0xff]   ;;  %v2867_v38 = vld [vmem:[%s3923_s1 + $0x304] ss:$8 sps:$4 sm:$0xff]  }
  0x89   :  { %2063 = vmatprep.subr.bf16.mxu0 %v2786_v39  ;;  %v2870_v39 = vld [vmem:[%s3923_s1 + $0x704] ss:$8 sps:$4 sm:$0xff]  }
  0x8a   :  { %1837 = vmatmul.mubr.bf16.gmra.mrb[4].mxu1 %v2251_v43  ;;  %v2245_v43 = vcombine.low %v3478_v46, %v3483_v47  ;;  %v2873_v46 = vld [vmem:[%s3923_s1 + $0x314] ss:$8 sps:$4 sm:$0xff]  }
  0x8b   :  { %2049 = vmatmul.mubr.bf16.gmra.mrb[4].mxu0 %v2259_v44  ;;  %1852 = vmatpush1.bf16.msra.mxu1 %v2781_v40  ;;  %v31_v40 = vld [vmem:[%s3924_s0 + $0x90] sm:$0xff] }
  0x8c   :  { %2064 = vmatpush1.bf16.msra.mxu0 %v2784_v41  ;;  %1853 = vmatprep.subr.bf16.mxu1 %v2789_v48  ;;  %v2237_v41 = vcombine.low %v3468_v42, %v3473_v45  ;;  %v39_v44 = vld [vmem:[%s3924_s0 + $0xd0] sm:$0xff]  ;;  %v2865_v42 = vld [vmem:[%s3923_s1 + $0x300] ss:$8 sps:$4 sm:$0xff]  }
  0x8d   :  { %2065 = vmatprep.subr.bf16.mxu0 %v2792_v49  ;;  %1879 = vmatprep.mubr.bf16.mxu1 %v2238_v50  ;;  %v35_v48 = vld [vmem:[%s3924_s0 + $0xb0] sm:$0xff]  ;;  %v2868_v45 = vld [vmem:[%s3923_s1 + $0x700] ss:$8 sps:$4 sm:$0xff]   ;;  %v2254_v50 = vcombine.high %v31_v40, %v39_v44 }
  0x8e   :  { %2091 = vmatprep.mubr.bf16.mxu0 %v2246_v51  ;;  %v43_v49 = vld [vmem:[%s3924_s0 + $0xf0] sm:$0xff] }
  0x8f   :  { %1854 = vmatpush1.bf16.msra.mxu1 %v2787_v52  ;;  %v2876_v47 = vld [vmem:[%s3923_s1 + $0x714] ss:$8 sps:$4 sm:$0xff]   ;;  %v2262_v51 = vcombine.high %v35_v48, %v43_v49  ;;  %v2871_v52 = vld [vmem:[%s3923_s1 + $0x310] ss:$8 sps:$4 sm:$0xff]  }
  0x90   :  { %2066 = vmatpush1.bf16.msra.mxu0 %v2790_v53  ;;  %1855 = vmatprep.subr.bf16.mxu1 %v2795_v54  ;;  %v2874_v53 = vld [vmem:[%s3923_s1 + $0x710] ss:$8 sps:$4 sm:$0xff]   ;;  %v2879_v54 = vld [vmem:[%s3923_s1 + $0x324] ss:$8 sps:$4 sm:$0xff]  }
  0x91   :  { %2067 = vmatprep.subr.bf16.mxu0 %v2798_v55  ;;  %v2882_v55 = vld [vmem:[%s3923_s1 + $0x724] ss:$8 sps:$4 sm:$0xff]  }
  0x93   :  { %1856 = vmatpush1.bf16.msra.mxu1 %v2793_v56  ;;  %v3694_v56 = vld [vmem:[%s3924_s0 + $0x18] sm:$0xff] }
  0x94   :  { %2068 = vmatpush1.bf16.msra.mxu0 %v2796_v57  ;;  %1857 = vmatprep.subr.bf16.mxu1 %v2801_v58  ;;  %v2253_v57 = vcombine.low %v31_v40, %v39_v44  ;;  %v2261_v58 = vcombine.low %v35_v48, %v43_v49  ;;  %v2937_v40 = vld [vmem:[%s3923_s1 + $0x3c0] ss:$8 sps:$4 sm:$0xff]   ;;  %v2948_v44 = vld [vmem:[%s3923_s1 + $0x7d4] ss:$8 sps:$4 sm:$0xff]   ;;  %v2943_v48 = vld [vmem:[%s3923_s1 + $0x3d0] ss:$8 sps:$4 sm:$0xff]  }
  0x95   :  { %2069 = vmatprep.subr.bf16.mxu0 %v2804_v59  ;;  %v3699_v59 = vld [vmem:[%s3924_s0 + $0x58] sm:$0xff] }
  0x96   :  { %v2946_v49 = vld [vmem:[%s3923_s1 + $0x7d0] ss:$8 sps:$4 sm:$0xff]  }
  0x97   :  { %1858 = vmatpush1.bf16.msra.mxu1 %v2799_v60  ;;  %v3704_v60 = vld [vmem:[%s3924_s0 + $0x38] sm:$0xff] }
  0x98   :  { %2070 = vmatpush1.bf16.msra.mxu0 %v2802_v61  ;;  %1859 = vmatprep.subr.bf16.mxu1 %v2807_v62  ;;  %v3709_v61 = vld [vmem:[%s3924_s0 + $0x78] sm:$0xff]  ;;  %v2877_v62 = vld [vmem:[%s3923_s1 + $0x320] ss:$8 sps:$4 sm:$0xff]  }
  0x99   :  { %2071 = vmatprep.subr.bf16.mxu0 %v2810_v63  ;;  %v2880_v63 = vld [vmem:[%s3923_s1 + $0x720] ss:$8 sps:$4 sm:$0xff]  }
  0x9b   :  { %1860 = vmatpush1.bf16.msra.mxu1 %v2805_v0  ;;  %v2885_v0 = vld [vmem:[%s3923_s1 + $0x334] ss:$8 sps:$4 sm:$0xff]  }
  0x9c   :  { %2072 = vmatpush1.bf16.msra.mxu0 %v2808_v1  ;;  %1861 = vmatprep.subr.bf16.mxu1 %v2813_v2  ;;  %v2888_v1 = vld [vmem:[%s3923_s1 + $0x734] ss:$8 sps:$4 sm:$0xff]   ;;  %v2240_v2 = vcombine.high %v3694_v56, %v3699_v59 }
  0x9d   :  { %2073 = vmatprep.subr.bf16.mxu0 %v2816_v3  ;;  %v2248_v3 = vcombine.high %v3704_v60, %v3709_v61 }
  0x9f   :  { %1862 = vmatpush1.bf16.msra.mxu1 %v2811_v4  ;;  %v2883_v4 = vld [vmem:[%s3923_s1 + $0x330] ss:$8 sps:$4 sm:$0xff]  }
  0xa0   :  { %2074 = vmatpush1.bf16.msra.mxu0 %v2814_v5  ;;  %1863 = vmatprep.subr.bf16.mxu1 %v2819_v6  ;;  %v2886_v5 = vld [vmem:[%s3923_s1 + $0x730] ss:$8 sps:$4 sm:$0xff]   ;;  %v2891_v6 = vld [vmem:[%s3923_s1 + $0x344] ss:$8 sps:$4 sm:$0xff]  }
  0xa1   :  { %2075 = vmatprep.subr.bf16.mxu0 %v2822_v7  ;;  %v2894_v7 = vld [vmem:[%s3923_s1 + $0x744] ss:$8 sps:$4 sm:$0xff]  }
  0xa3   :  { %1864 = vmatpush1.bf16.msra.mxu1 %v2817_v8  ;;  %v2889_v8 = vld [vmem:[%s3923_s1 + $0x340] ss:$8 sps:$4 sm:$0xff]  }
  0xa4   :  { %2076 = vmatpush1.bf16.msra.mxu0 %v2820_v9  ;;  %1865 = vmatprep.subr.bf16.mxu1 %v2825_v10  ;;  %v2892_v9 = vld [vmem:[%s3923_s1 + $0x740] ss:$8 sps:$4 sm:$0xff]   ;;  %v2897_v10 = vld [vmem:[%s3923_s1 + $0x354] ss:$8 sps:$4 sm:$0xff]  }
  0xa5   :  { %2077 = vmatprep.subr.bf16.mxu0 %v2828_v11  ;;  %v2900_v11 = vld [vmem:[%s3923_s1 + $0x754] ss:$8 sps:$4 sm:$0xff]  }
  0xa7   :  { %1866 = vmatpush1.bf16.msra.mxu1 %v2823_v12  ;;  %v2895_v12 = vld [vmem:[%s3923_s1 + $0x350] ss:$8 sps:$4 sm:$0xff]  }
  0xa8   :  { %2078 = vmatpush1.bf16.msra.mxu0 %v2826_v13  ;;  %1867 = vmatprep.subr.bf16.mxu1 %v2831_v14  ;;  %v2898_v13 = vld [vmem:[%s3923_s1 + $0x750] ss:$8 sps:$4 sm:$0xff]   ;;  %v2903_v14 = vld [vmem:[%s3923_s1 + $0x364] ss:$8 sps:$4 sm:$0xff]  }
  0xa9   :  { %2079 = vmatprep.subr.bf16.mxu0 %v2834_v15  ;;  %v2906_v15 = vld [vmem:[%s3923_s1 + $0x764] ss:$8 sps:$4 sm:$0xff]  }
  0xab   :  { %1868 = vmatpush1.bf16.msra.mxu1 %v2829_v16  ;;  %v2901_v16 = vld [vmem:[%s3923_s1 + $0x360] ss:$8 sps:$4 sm:$0xff]  }
  0xac   :  { %2080 = vmatpush1.bf16.msra.mxu0 %v2832_v17  ;;  %1869 = vmatprep.subr.bf16.mxu1 %v2837_v18  ;;  %v2904_v17 = vld [vmem:[%s3923_s1 + $0x760] ss:$8 sps:$4 sm:$0xff]   ;;  %v2909_v18 = vld [vmem:[%s3923_s1 + $0x374] ss:$8 sps:$4 sm:$0xff]  }
  0xad   :  { %2081 = vmatprep.subr.bf16.mxu0 %v2840_v19  ;;  %v2912_v19 = vld [vmem:[%s3923_s1 + $0x774] ss:$8 sps:$4 sm:$0xff]  }
  0xaf   :  { %1870 = vmatpush1.bf16.msra.mxu1 %v2835_v20  ;;  %v2907_v20 = vld [vmem:[%s3923_s1 + $0x370] ss:$8 sps:$4 sm:$0xff]  }
  0xb0   :  { %2082 = vmatpush1.bf16.msra.mxu0 %v2838_v21  ;;  %1871 = vmatprep.subr.bf16.mxu1 %v2843_v22  ;;  %v2910_v21 = vld [vmem:[%s3923_s1 + $0x770] ss:$8 sps:$4 sm:$0xff]   ;;  %v2915_v22 = vld [vmem:[%s3923_s1 + $0x384] ss:$8 sps:$4 sm:$0xff]  }
  0xb1   :  { %2083 = vmatprep.subr.bf16.mxu0 %v2846_v23  ;;  %v2918_v23 = vld [vmem:[%s3923_s1 + $0x784] ss:$8 sps:$4 sm:$0xff]  }
  0xb3   :  { %1872 = vmatpush1.bf16.msra.mxu1 %v2841_v24  ;;  %v2913_v24 = vld [vmem:[%s3923_s1 + $0x380] ss:$8 sps:$4 sm:$0xff]  }
  0xb4   :  { %2084 = vmatpush1.bf16.msra.mxu0 %v2844_v25  ;;  %1873 = vmatprep.subr.bf16.mxu1 %v2849_v26  ;;  %v2916_v25 = vld [vmem:[%s3923_s1 + $0x780] ss:$8 sps:$4 sm:$0xff]   ;;  %v2921_v26 = vld [vmem:[%s3923_s1 + $0x394] ss:$8 sps:$4 sm:$0xff]  }
  0xb5   :  { %2085 = vmatprep.subr.bf16.mxu0 %v2852_v27  ;;  %v2924_v27 = vld [vmem:[%s3923_s1 + $0x794] ss:$8 sps:$4 sm:$0xff]  }
  0xb7   :  { %1874 = vmatpush1.bf16.msra.mxu1 %v2847_v28  ;;  %v2919_v28 = vld [vmem:[%s3923_s1 + $0x390] ss:$8 sps:$4 sm:$0xff]  }
  0xb8   :  { %2086 = vmatpush1.bf16.msra.mxu0 %v2850_v29  ;;  %1875 = vmatprep.subr.bf16.mxu1 %v2855_v30  ;;  %v2922_v29 = vld [vmem:[%s3923_s1 + $0x790] ss:$8 sps:$4 sm:$0xff]   ;;  %v2927_v30 = vld [vmem:[%s3923_s1 + $0x3a4] ss:$8 sps:$4 sm:$0xff]  }
  0xb9   :  { %2087 = vmatprep.subr.bf16.mxu0 %v2858_v31  ;;  %v2930_v31 = vld [vmem:[%s3923_s1 + $0x7a4] ss:$8 sps:$4 sm:$0xff]  }
  0xbb   :  { %1876 = vmatpush1.bf16.msra.mxu1 %v2853_v32  ;;  %v2925_v32 = vld [vmem:[%s3923_s1 + $0x3a0] ss:$8 sps:$4 sm:$0xff]  }
  0xbc   :  { %2088 = vmatpush1.bf16.msra.mxu0 %v2856_v33  ;;  %1877 = vmatprep.subr.bf16.mxu1 %v2861_v34  ;;  %v2928_v33 = vld [vmem:[%s3923_s1 + $0x7a0] ss:$8 sps:$4 sm:$0xff]   ;;  %v2933_v34 = vld [vmem:[%s3923_s1 + $0x3b4] ss:$8 sps:$4 sm:$0xff]  }
  0xbd   :  { %2089 = vmatprep.subr.bf16.mxu0 %v2864_v35  ;;  %v2936_v35 = vld [vmem:[%s3923_s1 + $0x7b4] ss:$8 sps:$4 sm:$0xff]  }
  0xbf   :  { %1878 = vmatpush1.bf16.msra.mxu1 %v2859_v36  ;;  %v2931_v36 = vld [vmem:[%s3923_s1 + $0x3b0] ss:$8 sps:$4 sm:$0xff]  }
  0xc0   :  { %2090 = vmatpush1.bf16.msra.mxu0 %v2862_v37  ;;  %1900 = vmatprep.subr.bf16.mxu1 %v2867_v38  ;;  %v2934_v37 = vld [vmem:[%s3923_s1 + $0x7b0] ss:$8 sps:$4 sm:$0xff]   ;;  %v2939_v38 = vld [vmem:[%s3923_s1 + $0x3c4] ss:$8 sps:$4 sm:$0xff]  }
  0xc1   :  { %2112 = vmatprep.subr.bf16.mxu0 %v2870_v39  ;;  %v2942_v39 = vld [vmem:[%s3923_s1 + $0x7c4] ss:$8 sps:$4 sm:$0xff]  }
  0xc2   :  { %1880 = vmatmul.mubr.bf16.vlgmr.msra.gmra.mrb[0].mxu1 %v2237_v41  ;;  %v2940_v41 = vld [vmem:[%s3923_s1 + $0x7c0] ss:$8 sps:$4 sm:$0xff]  }
  0xc3   :  { %2092 = vmatmul.mubr.bf16.vlgmr.msra.gmra.mrb[0].mxu0 %v2245_v43  ;;  %1901 = vmatpush1.bf16.msra.mxu1 %v2865_v42  ;;  %v2945_v43 = vld [vmem:[%s3923_s1 + $0x3d4] ss:$8 sps:$4 sm:$0xff]   ;;  %v2951_v42 = vld [vmem:[%s3923_s1 + $0x3e4] ss:$8 sps:$4 sm:$0xff]  }
  0xc4   :  { %2113 = vmatpush1.bf16.msra.mxu0 %v2868_v45  ;;  %1902 = vmatprep.subr.bf16.mxu1 %v2873_v46  ;;  %v2954_v45 = vld [vmem:[%s3923_s1 + $0x7e4] ss:$8 sps:$4 sm:$0xff]   ;;  %v2949_v46 = vld [vmem:[%s3923_s1 + $0x3e0] ss:$8 sps:$4 sm:$0xff]  }
  0xc5   :  { %2114 = vmatprep.subr.bf16.mxu0 %v2876_v47  ;;  %1889 = vmatprep.mubr.bf16.mxu1 %v2254_v50  ;;  %v2952_v47 = vld [vmem:[%s3923_s1 + $0x7e0] ss:$8 sps:$4 sm:$0xff]   ;;  %v2957_v50 = vld [vmem:[%s3923_s1 + $0x3f4] ss:$8 sps:$4 sm:$0xff]  }
  0xc6   :  { %2101 = vmatprep.mubr.bf16.mxu0 %v2262_v51  ;;  %v2960_v51 = vld [vmem:[%s3923_s1 + $0x7f4] ss:$8 sps:$4 sm:$0xff]  }
  0xc7   :  { %1903 = vmatpush1.bf16.msra.mxu1 %v2871_v52  ;;  %v2955_v52 = vld [vmem:[%s3923_s1 + $0x3f0] ss:$8 sps:$4 sm:$0xff]  }
  0xc8   :  { %2115 = vmatpush1.bf16.msra.mxu0 %v2874_v53  ;;  %1904 = vmatprep.subr.bf16.mxu1 %v2879_v54  ;;  %v2958_v53 = vld [vmem:[%s3923_s1 + $0x7f0] ss:$8 sps:$4 sm:$0xff]  }
  0xc9   :  { %2116 = vmatprep.subr.bf16.mxu0 %v2882_v55  ;;  %v32_v54 = vld [vmem:[%s3924_s0 + $0x98] sm:$0xff] }
  0xca   :  { %1890 = vmatmul.mubr.bf16.gmra.mrb[4].mxu1 %v2253_v57  ;;  %v40_v55 = vld [vmem:[%s3924_s0 + $0xd8] sm:$0xff] }
  0xcb   :  { %2102 = vmatmul.mubr.bf16.gmra.mrb[4].mxu0 %v2261_v58  ;;  %1905 = vmatpush1.bf16.msra.mxu1 %v2877_v62  ;;  %v36_v57 = vld [vmem:[%s3924_s0 + $0xb8] sm:$0xff]  ;;  %v2239_v62 = vcombine.low %v3694_v56, %v3699_v59 }
  0xcc   :  { %2117 = vmatpush1.bf16.msra.mxu0 %v2880_v63  ;;  %1906 = vmatprep.subr.bf16.mxu1 %v2885_v0  ;;  %v44_v58 = vld [vmem:[%s3924_s0 + $0xf8] sm:$0xff]  ;;  %v2247_v63 = vcombine.low %v3704_v60, %v3709_v61  ;;  %v2256_v0 = vcombine.high %v32_v54, %v40_v55 }
  0xcd   :  { %2118 = vmatprep.subr.bf16.mxu0 %v2888_v1  ;;  %1932 = vmatprep.mubr.bf16.mxu1 %v2240_v2  ;;  %v2264_v1 = vcombine.high %v36_v57, %v44_v58  ;;  %v2255_v2 = vcombine.low %v32_v54, %v40_v55 }
  0xce   :  { %2144 = vmatprep.mubr.bf16.mxu0 %v2248_v3  ;;  %v2263_v3 = vcombine.low %v36_v57, %v44_v58 }
  0xcf   :  { %1907 = vmatpush1.bf16.msra.mxu1 %v2883_v4 }
  0xd0   :  { %2119 = vmatpush1.bf16.msra.mxu0 %v2886_v5  ;;  %1908 = vmatprep.subr.bf16.mxu1 %v2891_v6 }
  0xd1   :  { %2120 = vmatprep.subr.bf16.mxu0 %v2894_v7 }
  0xd3   :  { %1909 = vmatpush1.bf16.msra.mxu1 %v2889_v8 }
  0xd4   :  { %2121 = vmatpush1.bf16.msra.mxu0 %v2892_v9  ;;  %1910 = vmatprep.subr.bf16.mxu1 %v2897_v10 }
  0xd5   :  { %2122 = vmatprep.subr.bf16.mxu0 %v2900_v11 }
  0xd7   :  { %1911 = vmatpush1.bf16.msra.mxu1 %v2895_v12 }
  0xd8   :  { %2123 = vmatpush1.bf16.msra.mxu0 %v2898_v13  ;;  %1912 = vmatprep.subr.bf16.mxu1 %v2903_v14 }
  0xd9   :  { %2124 = vmatprep.subr.bf16.mxu0 %v2906_v15 }
  0xdb   :  { %1913 = vmatpush1.bf16.msra.mxu1 %v2901_v16 }
  0xdc   :  { %2125 = vmatpush1.bf16.msra.mxu0 %v2904_v17  ;;  %1914 = vmatprep.subr.bf16.mxu1 %v2909_v18 }
  0xdd   :  { %2126 = vmatprep.subr.bf16.mxu0 %v2912_v19 }
  0xdf   :  { %1915 = vmatpush1.bf16.msra.mxu1 %v2907_v20 }
  0xe0   :  { %2127 = vmatpush1.bf16.msra.mxu0 %v2910_v21  ;;  %1916 = vmatprep.subr.bf16.mxu1 %v2915_v22 }
  0xe1   :  { %2128 = vmatprep.subr.bf16.mxu0 %v2918_v23 }
  0xe3   :  { %1917 = vmatpush1.bf16.msra.mxu1 %v2913_v24 }
  0xe4   :  { %2129 = vmatpush1.bf16.msra.mxu0 %v2916_v25  ;;  %1918 = vmatprep.subr.bf16.mxu1 %v2921_v26 }
  0xe5   :  { %2130 = vmatprep.subr.bf16.mxu0 %v2924_v27 }
  0xe7   :  { %1919 = vmatpush1.bf16.msra.mxu1 %v2919_v28 }
  0xe8   :  { %2131 = vmatpush1.bf16.msra.mxu0 %v2922_v29  ;;  %1920 = vmatprep.subr.bf16.mxu1 %v2927_v30 }
  0xe9   :  { %2132 = vmatprep.subr.bf16.mxu0 %v2930_v31 }
  0xeb   :  { %1921 = vmatpush1.bf16.msra.mxu1 %v2925_v32 }
  0xec   :  { %2133 = vmatpush1.bf16.msra.mxu0 %v2928_v33  ;;  %1922 = vmatprep.subr.bf16.mxu1 %v2933_v34 }
  0xed   :  { %2134 = vmatprep.subr.bf16.mxu0 %v2936_v35 }
  0xef   :  { %1923 = vmatpush1.bf16.msra.mxu1 %v2931_v36 }
  0xf0   :  { %2135 = vmatpush1.bf16.msra.mxu0 %v2934_v37  ;;  %1924 = vmatprep.subr.bf16.mxu1 %v2939_v38 }
  0xf1   :  { %2136 = vmatprep.subr.bf16.mxu0 %v2942_v39 }
  0xf3   :  { %1925 = vmatpush1.bf16.msra.mxu1 %v2937_v40 }
  0xf4   :  { %2137 = vmatpush1.bf16.msra.mxu0 %v2940_v41  ;;  %1926 = vmatprep.subr.bf16.mxu1 %v2945_v43 }
  0xf5   :  { %2138 = vmatprep.subr.bf16.mxu0 %v2948_v44 }
  0xf7   :  { %1927 = vmatpush1.bf16.msra.mxu1 %v2943_v48 }
  0xf8   :  { %2139 = vmatpush1.bf16.msra.mxu0 %v2946_v49  ;;  %1928 = vmatprep.subr.bf16.mxu1 %v2951_v42 }
  0xf9   :  { %2140 = vmatprep.subr.bf16.mxu0 %v2954_v45 }
  0xfb   :  { %1929 = vmatpush1.bf16.msra.mxu1 %v2949_v46 }
  0xfc   :  { %2141 = vmatpush1.bf16.msra.mxu0 %v2952_v47  ;;  %1930 = vmatprep.subr.bf16.mxu1 %v2957_v50 }
  0xfd   :  { %2142 = vmatprep.subr.bf16.mxu0 %v2960_v51 }
  0xff   :  { %1931 = vmatpush1.bf16.msra.mxu1 %v2955_v52 }
 0x100   :  { %2143 = vmatpush1.bf16.msra.mxu0 %v2958_v53 }
 0x102   :  { %1933 = vmatmul.mubr.bf16.vlgmr.msra.gmra.mrb[0].mxu1 %v2239_v62 }
 0x103   :  { %2145 = vmatmul.mubr.bf16.vlgmr.msra.gmra.mrb[0].mxu0 %v2247_v63  ;;  %1942 = vmatprep.mubr.bf16.mxu1 %v2256_v0 }
 0x104   :  { %2154 = vmatprep.mubr.bf16.mxu0 %v2264_v1 }
 0x10a   :  { %1943 = vmatmul.mubr.bf16.gmra.mrb[4].mxu1 %v2255_v2 }
 0x10b   :  { %2155 = vmatmul.mubr.bf16.gmra.mrb[4].mxu0 %v2263_v3 }
 0x1d5   :  { %v1934_v4 = vpop.f32.mrb[0].mxu1 }
 0x1d6   :  { %v2146_v5 = vpop.f32.mrb[0].mxu0  ;;  %v1936_v7 = vpop.f32.mrb[1].mxu1 }
 0x1d7   :  { %v2521_v6 = vadd.f32 %v2146_v5, %v1934_v4  ;;  %v2148_v56 = vpop.f32.mrb[1].mxu0  ;;  %v1938_v8 = vpop.f32.mrb[2].mxu1 }
 0x1d8   :  { %v2522_v59 = vadd.f32 %v2148_v56, %v1936_v7  ;;  %v2150_v60 = vpop.f32.mrb[2].mxu0  ;;  %v1940_v9 = vpop.f32.mrb[3].mxu1 }
 0x1d9   :  { %2165 = vst [vmem:[%s3925_s2] sm:$0xff] %v2521_v6  ;;  %v2523_v61 = vadd.f32 %v2150_v60, %v1938_v8  ;;  %v2152_v10 = vpop.f32.mrb[3].mxu0  ;;  %v2191_v12 = vmul.f32 %v2521_v6, %v2521_v6 }
 0x1da   :  { %2166 = vst [vmem:[%s3925_s2 + $0x8] sm:$0xff] %v2522_v59  ;;  %v2524_v11 = vadd.f32 %v2152_v10, %v1940_v9  ;;  %v2192_v15 = vmul.f32 %v2522_v59, %v2522_v59 }
 0x1db   :  { %2167 = vst [vmem:[%s3925_s2 + $0x10] sm:$0xff] %v2523_v61  ;;  %v2173_v13 = vadd.f32 %v2523_v61, %v2521_v6  ;;  %v2193_v14 = vmul.f32 %v2523_v61, %v2523_v61 }
 0x1dc   :  { %2168 = vst [vmem:[%s3925_s2 + $0x18] sm:$0xff] %v2524_v11  ;;  %v2182_v16 = vadd.f32 %v2524_v11, %v2522_v59  ;;  %v2194_v17 = vmul.f32 %v2524_v11, %v2524_v11 }
 0x1dd   :  { %v2199_v18 = vadd.f32 %v2193_v14, %v2191_v12  ;;  %v1944_v20 = vpop.f32.mrb[4].mxu1 }
 0x1de   :  { %v2208_v19 = vadd.f32 %v2194_v17, %v2192_v15  ;;  %v2156_v21 = vpop.f32.mrb[4].mxu0  ;;  %v1946_v23 = vpop.f32.mrb[5].mxu1 }
 0x1df   :  { %v2525_v22 = vadd.f32 %v2156_v21, %v1944_v20  ;;  %v2158_v24 = vpop.f32.mrb[5].mxu0  ;;  %v1948_v26 = vpop.f32.mrb[6].mxu1 }
 0x1e0   :  { %v2526_v25 = vadd.f32 %v2158_v24, %v1946_v23  ;;  %v2160_v27 = vpop.f32.mrb[6].mxu0  ;;  %v1950_v31 = vpop.f32.mrb[7].mxu1 }
 0x1e1   :  { %2169 = vst [vmem:[%s3925_s2 + $0x20] sm:$0xff] %v2525_v22  ;;  %v2174_v28 = vadd.f32 %v2525_v22, %v2173_v13  ;;  %v2195_v29 = vmul.f32 %v2525_v22, %v2525_v22  ;;  %v2527_v30 = vadd.f32 %v2160_v27, %v1948_v26  ;;  %v2162_v32 = vpop.f32.mrb[7].mxu0 }
 0x1e2   :  { %2170 = vst [vmem:[%s3925_s2 + $0x28] sm:$0xff] %v2526_v25  ;;  %v2183_v33 = vadd.f32 %v2526_v25, %v2182_v16  ;;  %v2196_v34 = vmul.f32 %v2526_v25, %v2526_v25  ;;  %v2528_v35 = vadd.f32 %v2162_v32, %v1950_v31 }
 0x1e3   :  { %v2200_v36 = vadd.f32 %v2199_v18, %v2195_v29  ;;  %2171 = vst [vmem:[%s3925_s2 + $0x30] sm:$0xff] %v2527_v30  ;;  %v2175_v37 = vadd.f32 %v2527_v30, %v2174_v28  ;;  %v2197_v38 = vmul.f32 %v2527_v30, %v2527_v30 }
 0x1e4   :  { %v2209_v39 = vadd.f32 %v2208_v19, %v2196_v34  ;;  %2172 = vst [vmem:[%s3925_s2 + $0x38] sm:$0xff] %v2528_v35  ;;  %v2184_v40 = vadd.f32 %v2528_v35, %v2183_v33  ;;  %v2198_v41 = vmul.f32 %v2528_v35, %v2528_v35 }
 0x1e5   :  { %v2176_v43 = vrot.slane %v2175_v37, 4  ;;  %v2201_v44 = vadd.f32 %v2200_v36, %v2197_v38 }
 0x1e6   :  { %v2185_v48 = vrot.slane %v2184_v40, 4  ;;  %v2210_v49 = vadd.f32 %v2209_v39, %v2198_v41 }
 0x1e7   :  { %v2177_v42 = vadd.f32 %v2176_v43, %v2175_v37  ;;  %v2202_v45 = vrot.slane %v2201_v44, 4 }
 0x1e8   :  { %v2186_v46 = vadd.f32 %v2185_v48, %v2184_v40  ;;  %v2211_v47 = vrot.slane %v2210_v49, 4 }
 0x1e9   :  { %v2178_v50 = vrot.slane %v2177_v42, 2  ;;  %v2203_v51 = vadd.f32 %v2202_v45, %v2201_v44 }
 0x1ea   :  { %v2187_v52 = vrot.slane %v2186_v46, 2  ;;  %v2212_v53 = vadd.f32 %v2211_v47, %v2210_v49 }
 0x1eb   :  { %v2179_v54 = vadd.f32 %v2178_v50, %v2177_v42  ;;  %v2204_v55 = vrot.slane %v2203_v51, 2 }
 0x1ec   :  { %v2188_v57 = vadd.f32 %v2187_v52, %v2186_v46  ;;  %v2213_v58 = vrot.slane %v2212_v53, 2 }
 0x1ed   :  { %v2180_v62 = vrot.slane %v2179_v54, 1  ;;  %v2205_v63 = vadd.f32 %v2204_v55, %v2203_v51 }
 0x1ee   :  { %v2189_v0 = vrot.slane %v2188_v57, 1  ;;  %v2214_v1 = vadd.f32 %v2213_v58, %v2212_v53 }
 0x1ef   :  { %v2206_v2 = vrot.slane %v2205_v63, 1  ;;  %v2181_v4 = vadd.f32 %v2180_v62, %v2179_v54 }
 0x1f0   :  { %v2215_v3 = vrot.slane %v2214_v1, 1  ;;  %v2190_v6 = vadd.f32 %v2189_v0, %v2188_v57 }
 0x1f1   :  { %v2207_v5 = vadd.f32 %v2206_v2, %v2205_v63 }
 0x1f2   :  { %v2216_v7 = vadd.f32 %v2215_v3, %v2214_v1 }
 0x1f3   :  { %v2218_v56 = vsel %vm2217_vm0, %v2181_v4, %v2207_v5 }
 0x1f4   :  { %v2221_v59 = vsel %vm2220_vm1, %v2218_v56, 0.0  ;;  %v2219_v8 = vsel %vm2217_vm0, %v2190_v6, %v2216_v7 }
 0x1f5   :  { %2223 = vst [vmem:[%s3926_s3] sm:$0xff] %v2221_v59  ;;  %v2222_v60 = vsel %vm2220_vm1, %v2219_v8, 0.0 }
 0x1f6   :  { %2224 = vst [vmem:[%s3926_s3 + $0x8] sm:$0xff] %v2222_v60 }

// kernel: discriminator_forward.10
= control target key start
LH: loop header
LB: loop body
LE: loop exit
PB: predicated region body
PF: predicated region fallthrough
CT: control target
= control target key end

     0   :  { %v24_v0 = vlaneseq  ;;  %s188_s1 = inlined_call_operand.vmem [shape: f32[1,256], index: 1, kind: input, shape index: {}]   ;;  %s189_s2 = inlined_call_operand.vmem [shape: f32[1,256], index: 2, kind: input, shape index: {}]   ;;  %s190_s0 = inlined_call_operand.vmem [shape: f32[32,256], index: 0, kind: input, shape index: {}]   ;;  %s191_s3 = inlined_call_operand.vmem [shape: bf16[32,256], index: 3, kind: output, shape index: {}]  }
   0x1   :  { %v22_v2 = vld [vmem:[%s188_s1] sm:$0x3]  ;;  %v15_v5 = vld [vmem:[%s190_s0 + $0x8] sm:$0xff]  ;;  %v16_v8 = vld [vmem:[%s190_s0 + $0x10] sm:$0xff] }
   0x2   :  { %v25_v1 = vshrl.u32 %v24_v0, 7  ;;  %v42_v3 = vld [vmem:[%s189_s2] sm:$0x3]  ;;  %v17_v9 = vld [vmem:[%s190_s0 + $0x18] sm:$0xff]  ;;  %v19_v15 = vld [vmem:[%s190_s0 + $0x28] sm:$0xff] }
   0x3   :  { %v14_v4 = vld [vmem:[%s190_s0] sm:$0xff]  ;;  %v20_v16 = vld [vmem:[%s190_s0 + $0x30] sm:$0xff]  ;;  %v21_v17 = vld [vmem:[%s190_s0 + $0x38] sm:$0xff] }
   0x4   :  { %v26_v6 = vsub.s32 0, %v25_v1  ;;  %v30_v7 = vsub.s32 1, %v25_v1  ;;  %v18_v10 = vld [vmem:[%s190_s0 + $0x20] sm:$0xff] }
   0x6   :  { %v27_v11 = vrot.slane %v22_v2, %v26_v6  ;;  %v31_v12 = vrot.slane %v22_v2, %v30_v7  ;;  %v47_v13 = vrot.slane %v42_v3, %v26_v6  ;;  %v51_v14 = vrot.slane %v42_v3, %v30_v7 }
   0x8   :  { %v34_v18 = vmul.f32 %v27_v11, %v14_v4  ;;  %v35_v19 = vmul.f32 %v31_v12, %v15_v5  ;;  %v36_v20 = vmul.f32 %v27_v11, %v16_v8  ;;  %v37_v21 = vmul.f32 %v31_v12, %v17_v9 }
   0x9   :  { %v38_v22 = vmul.f32 %v27_v11, %v18_v10  ;;  %v39_v23 = vmul.f32 %v31_v12, %v19_v15  ;;  %v40_v24 = vmul.f32 %v27_v11, %v20_v16  ;;  %v41_v25 = vmul.f32 %v31_v12, %v21_v17 }
   0xa   :  { %v54_v26 = vadd.f32 %v47_v13, %v34_v18  ;;  %v55_v27 = vadd.f32 %v51_v14, %v35_v19  ;;  %v56_v28 = vadd.f32 %v47_v13, %v36_v20  ;;  %v57_v29 = vadd.f32 %v51_v14, %v37_v21 }
   0xb   :  { %v58_v30 = vadd.f32 %v47_v13, %v38_v22  ;;  %v59_v31 = vadd.f32 %v51_v14, %v39_v23  ;;  %v60_v32 = vadd.f32 %v47_v13, %v40_v24  ;;  %v61_v33 = vadd.f32 %v51_v14, %v41_v25 }
   0xc   :  { %vm62_vm0 = vcmp.gt.f32.partialorder %v54_v26, 0.0  ;;  %vm63_vm1 = vcmp.gt.f32.partialorder %v55_v27, 0.0  ;;  %v70_v34 = vmul.f32 0.2, %v54_v26  ;;  %v71_v35 = vmul.f32 0.2, %v55_v27 }
   0xd   :  { %vm64_vm2 = vcmp.gt.f32.partialorder %v56_v28, 0.0  ;;  %vm65_vm3 = vcmp.gt.f32.partialorder %v57_v29, 0.0  ;;  %v72_v36 = vmul.f32 0.2, %v56_v28  ;;  %v73_v37 = vmul.f32 0.2, %v57_v29 }
   0xe   :  { %v78_v38 = vsel %vm62_vm0, %v54_v26, %v70_v34  ;;  %v79_v39 = vsel %vm63_vm1, %v55_v27, %v71_v35  ;;  %vm66_vm4 = vcmp.gt.f32.partialorder %v58_v30, 0.0  ;;  %vm67_vm5 = vcmp.gt.f32.partialorder %v59_v31, 0.0 }
   0xf   :  { %v122_v40 = vpack.c.bf16 %v79_v39, %v78_v38  ;;  %v80_v41 = vsel %vm64_vm2, %v56_v28, %v72_v36  ;;  %v81_v42 = vsel %vm65_vm3, %v57_v29, %v73_v37  ;;  %v74_v43 = vmul.f32 0.2, %v58_v30 }
  0x10   :  { %v123_v44 = vpack.c.bf16 %v81_v42, %v80_v41  ;;  %v75_v45 = vmul.f32 0.2, %v59_v31  ;;  %vm68_vm6 = vcmp.gt.f32.partialorder %v60_v32, 0.0  ;;  %vm69_vm7 = vcmp.gt.f32.partialorder %v61_v33, 0.0 }
  0x11   :  { %110 = vst [vmem:[%s191_s3] sm:$0xff] %v122_v40  ;;  %v82_v46 = vsel %vm66_vm4, %v58_v30, %v74_v43  ;;  %v76_v47 = vmul.f32 0.2, %v60_v32  ;;  %v77_v48 = vmul.f32 0.2, %v61_v33 }
  0x12   :  { %111 = vst [vmem:[%s191_s3 + $0x8] sm:$0xff] %v123_v44  ;;  %v83_v49 = vsel %vm67_vm5, %v59_v31, %v75_v45 }
  0x13   :  { %v124_v50 = vpack.c.bf16 %v83_v49, %v82_v46  ;;  %v84_v51 = vsel %vm68_vm6, %v60_v32, %v76_v47  ;;  %v85_v52 = vsel %vm69_vm7, %v61_v33, %v77_v48 }
  0x14   :  { %v125_v53 = vpack.c.bf16 %v85_v52, %v84_v51 }
  0x15   :  { %112 = vst [vmem:[%s191_s3 + $0x10] sm:$0xff] %v124_v50 }
  0x16   :  { %113 = vst [vmem:[%s191_s3 + $0x18] sm:$0xff] %v125_v53 }

// kernel: discriminator_forward.11
= control target key start
LH: loop header
LB: loop body
LE: loop exit
PB: predicated region body
PF: predicated region fallthrough
CT: control target
= control target key end

     0   :  { %s4744_s1 = inlined_call_operand.vmem [shape: bf16[4096,128], index: 1, kind: input, shape index: {}]   ;;  %s4745_s0 = inlined_call_operand.vmem [shape: bf16[16,4096], index: 0, kind: input, shape index: {}]   ;;  %s4746_s2 = inlined_call_operand.vmem [shape: f32[1,128], index: 2, kind: input, shape index: {}]   ;;  %s4747_s3 = inlined_call_operand.vmem [shape: f32[16,128], index: 3, kind: output, shape index: {}]  }
   0x1   :  { %v3587_v0 = vld [vmem:[%s4744_s1 + $0x40] sm:$0xff]   ;;  %v3591_v4 = vld [vmem:[%s4744_s1 + $0x48] sm:$0xff]   ;;  %v3595_v8 = vld [vmem:[%s4744_s1 + $0x50] sm:$0xff]  }
   0x2   :  { %v3588_v1 = vld [vmem:[%s4744_s1 + $0xc0] sm:$0xff]   ;;  %3235 = vmatprep.subr.bf16.mxu0 %v3587_v0  ;;  %v3592_v5 = vld [vmem:[%s4744_s1 + $0xc8] sm:$0xff]   ;;  %v3596_v9 = vld [vmem:[%s4744_s1 + $0xd0] sm:$0xff]  }
   0x3   :  { %v3589_v2 = vld [vmem:[%s4744_s1] sm:$0xff]   ;;  %3257 = vmatprep.subr.bf16.mxu1 %v3588_v1  ;;  %v3593_v6 = vld [vmem:[%s4744_s1 + $0x8] sm:$0xff]   ;;  %v3597_v10 = vld [vmem:[%s4744_s1 + $0x10] sm:$0xff]  }
   0x4   :  { %v3590_v3 = vld [vmem:[%s4744_s1 + $0x80] sm:$0xff]   ;;  %3236 = vmatpush3.bf16.msra.mxu0 %v3589_v2  ;;  %v3594_v7 = vld [vmem:[%s4744_s1 + $0x88] sm:$0xff]   ;;  %v3598_v11 = vld [vmem:[%s4744_s1 + $0x90] sm:$0xff]  }
   0x5   :  { %3258 = vmatpush3.bf16.msra.mxu1 %v3590_v3  ;;  %3237 = vmatprep.subr.bf16.mxu0 %v3591_v4  ;;  %v3599_v12 = vld [vmem:[%s4744_s1 + $0x58] sm:$0xff]   ;;  %v3603_v16 = vld [vmem:[%s4744_s1 + $0x60] sm:$0xff]   ;;  %v3607_v20 = vld [vmem:[%s4744_s1 + $0x68] sm:$0xff]  }
   0x6   :  { %3259 = vmatprep.subr.bf16.mxu1 %v3592_v5  ;;  %v3600_v13 = vld [vmem:[%s4744_s1 + $0xd8] sm:$0xff]   ;;  %v3604_v17 = vld [vmem:[%s4744_s1 + $0xe0] sm:$0xff]   ;;  %v3608_v21 = vld [vmem:[%s4744_s1 + $0xe8] sm:$0xff]  }
   0x7   :  { %v3601_v14 = vld [vmem:[%s4744_s1 + $0x18] sm:$0xff]   ;;  %v3605_v18 = vld [vmem:[%s4744_s1 + $0x20] sm:$0xff]   ;;  %v3609_v22 = vld [vmem:[%s4744_s1 + $0x28] sm:$0xff]  }
   0x8   :  { %3238 = vmatpush3.bf16.msra.mxu0 %v3593_v6  ;;  %v3602_v15 = vld [vmem:[%s4744_s1 + $0x98] sm:$0xff]   ;;  %v3606_v19 = vld [vmem:[%s4744_s1 + $0xa0] sm:$0xff]   ;;  %v3610_v23 = vld [vmem:[%s4744_s1 + $0xa8] sm:$0xff]  }
   0x9   :  { %3260 = vmatpush3.bf16.msra.mxu1 %v3594_v7  ;;  %3239 = vmatprep.subr.bf16.mxu0 %v3595_v8  ;;  %v3611_v24 = vld [vmem:[%s4744_s1 + $0x70] sm:$0xff]   ;;  %v3615_v28 = vld [vmem:[%s4744_s1 + $0x78] sm:$0xff]   ;;  %v15_v32 = vld [vmem:[%s4745_s0] sm:$0xff] }
   0xa   :  { %3261 = vmatprep.subr.bf16.mxu1 %v3596_v9  ;;  %v3612_v25 = vld [vmem:[%s4744_s1 + $0xf0] sm:$0xff]   ;;  %v3616_v29 = vld [vmem:[%s4744_s1 + $0xf8] sm:$0xff]   ;;  %v31_v33 = vld [vmem:[%s4745_s0 + $0x80] sm:$0xff] }
   0xb   :  { %v3613_v26 = vld [vmem:[%s4744_s1 + $0x30] sm:$0xff]   ;;  %v3617_v30 = vld [vmem:[%s4744_s1 + $0x38] sm:$0xff]   ;;  %v16_v34 = vld [vmem:[%s4745_s0 + $0x8] sm:$0xff]  ;;  %v2947_v35 = vcombine.low %v15_v32, %v31_v33  ;;  %v2948_v36 = vcombine.high %v15_v32, %v31_v33 }
   0xc   :  { %3240 = vmatpush3.bf16.msra.mxu0 %v3597_v10  ;;  %v3614_v27 = vld [vmem:[%s4744_s1 + $0xb0] sm:$0xff]   ;;  %v3618_v31 = vld [vmem:[%s4744_s1 + $0xb8] sm:$0xff]   ;;  %v32_v37 = vld [vmem:[%s4745_s0 + $0x88] sm:$0xff] }
   0xd   :  { %3262 = vmatpush3.bf16.msra.mxu1 %v3598_v11  ;;  %3241 = vmatprep.subr.bf16.mxu0 %v3599_v12  ;;  %v2949_v38 = vcombine.low %v16_v34, %v32_v37  ;;  %v2950_v39 = vcombine.high %v16_v34, %v32_v37  ;;  %v3619_v40 = vld [vmem:[%s4744_s1 + $0x140] sm:$0xff]   ;;  %v3623_v44 = vld [vmem:[%s4744_s1 + $0x148] sm:$0xff]   ;;  %v3627_v48 = vld [vmem:[%s4744_s1 + $0x150] sm:$0xff]  }
   0xe   :  { %3263 = vmatprep.subr.bf16.mxu1 %v3600_v13  ;;  %2294 = vmatprep.mubr.bf16.mxu0 %v2948_v36  ;;  %v3620_v41 = vld [vmem:[%s4744_s1 + $0x1c0] sm:$0xff]   ;;  %v3624_v45 = vld [vmem:[%s4744_s1 + $0x1c8] sm:$0xff]   ;;  %v3628_v49 = vld [vmem:[%s4744_s1 + $0x1d0] sm:$0xff]  }
   0xf   :  { %2335 = vmatprep.mubr.bf16.mxu1 %v2950_v39  ;;  %v3621_v42 = vld [vmem:[%s4744_s1 + $0x100] sm:$0xff]   ;;  %v3625_v46 = vld [vmem:[%s4744_s1 + $0x108] sm:$0xff]   ;;  %v3629_v50 = vld [vmem:[%s4744_s1 + $0x110] sm:$0xff]  }
  0x10   :  { %3242 = vmatpush3.bf16.msra.mxu0 %v3601_v14  ;;  %v3622_v43 = vld [vmem:[%s4744_s1 + $0x180] sm:$0xff]   ;;  %v3626_v47 = vld [vmem:[%s4744_s1 + $0x188] sm:$0xff]   ;;  %v3630_v51 = vld [vmem:[%s4744_s1 + $0x190] sm:$0xff]  }
  0x11   :  { %3264 = vmatpush3.bf16.msra.mxu1 %v3602_v15  ;;  %3243 = vmatprep.subr.bf16.mxu0 %v3603_v16  ;;  %v3631_v52 = vld [vmem:[%s4744_s1 + $0x158] sm:$0xff]   ;;  %v3635_v56 = vld [vmem:[%s4744_s1 + $0x160] sm:$0xff]   ;;  %v3639_v60 = vld [vmem:[%s4744_s1 + $0x168] sm:$0xff]  }
  0x12   :  { %3265 = vmatprep.subr.bf16.mxu1 %v3604_v17  ;;  %v3632_v53 = vld [vmem:[%s4744_s1 + $0x1d8] sm:$0xff]   ;;  %v3636_v57 = vld [vmem:[%s4744_s1 + $0x1e0] sm:$0xff]   ;;  %v3640_v61 = vld [vmem:[%s4744_s1 + $0x1e8] sm:$0xff]  }
  0x13   :  { %v3633_v54 = vld [vmem:[%s4744_s1 + $0x118] sm:$0xff]   ;;  %v3637_v58 = vld [vmem:[%s4744_s1 + $0x120] sm:$0xff]   ;;  %v3641_v62 = vld [vmem:[%s4744_s1 + $0x128] sm:$0xff]  }
  0x14   :  { %3244 = vmatpush3.bf16.msra.mxu0 %v3605_v18  ;;  %v3634_v55 = vld [vmem:[%s4744_s1 + $0x198] sm:$0xff]   ;;  %v3638_v59 = vld [vmem:[%s4744_s1 + $0x1a0] sm:$0xff]   ;;  %v3642_v63 = vld [vmem:[%s4744_s1 + $0x1a8] sm:$0xff]  }
  0x15   :  { %3266 = vmatpush3.bf16.msra.mxu1 %v3606_v19  ;;  %3245 = vmatprep.subr.bf16.mxu0 %v3607_v20  ;;  %v3643_v0 = vld [vmem:[%s4744_s1 + $0x170] sm:$0xff]   ;;  %v3647_v4 = vld [vmem:[%s4744_s1 + $0x178] sm:$0xff]   ;;  %v3651_v16 = vld [vmem:[%s4744_s1 + $0x240] sm:$0xff]  }
  0x16   :  { %3267 = vmatprep.subr.bf16.mxu1 %v3608_v21  ;;  %v3644_v1 = vld [vmem:[%s4744_s1 + $0x1f0] sm:$0xff]   ;;  %v3648_v5 = vld [vmem:[%s4744_s1 + $0x1f8] sm:$0xff]   ;;  %v3652_v17 = vld [vmem:[%s4744_s1 + $0x2c0] sm:$0xff]  }
  0x17   :  { %v3645_v2 = vld [vmem:[%s4744_s1 + $0x130] sm:$0xff]   ;;  %v3649_v6 = vld [vmem:[%s4744_s1 + $0x138] sm:$0xff]   ;;  %v3653_v18 = vld [vmem:[%s4744_s1 + $0x200] sm:$0xff]  }
  0x18   :  { %3246 = vmatpush3.bf16.msra.mxu0 %v3609_v22  ;;  %v3646_v3 = vld [vmem:[%s4744_s1 + $0x1b0] sm:$0xff]   ;;  %v3650_v7 = vld [vmem:[%s4744_s1 + $0x1b8] sm:$0xff]   ;;  %v3654_v19 = vld [vmem:[%s4744_s1 + $0x280] sm:$0xff]  }
  0x19   :  { %3268 = vmatpush3.bf16.msra.mxu1 %v3610_v23  ;;  %3247 = vmatprep.subr.bf16.mxu0 %v3611_v24  ;;  %v17_v8 = vld [vmem:[%s4745_s0 + $0x10] sm:$0xff]  ;;  %v18_v12 = vld [vmem:[%s4745_s0 + $0x18] sm:$0xff]  ;;  %v3655_v20 = vld [vmem:[%s4744_s1 + $0x248] sm:$0xff]  }
  0x1a   :  { %3269 = vmatprep.subr.bf16.mxu1 %v3612_v25  ;;  %v33_v9 = vld [vmem:[%s4745_s0 + $0x90] sm:$0xff]  ;;  %v34_v13 = vld [vmem:[%s4745_s0 + $0x98] sm:$0xff]  ;;  %v3656_v21 = vld [vmem:[%s4744_s1 + $0x2c8] sm:$0xff]  }
  0x1b   :  { %v2951_v10 = vcombine.low %v17_v8, %v33_v9  ;;  %v2952_v11 = vcombine.high %v17_v8, %v33_v9  ;;  %v2953_v14 = vcombine.low %v18_v12, %v34_v13  ;;  %v2954_v15 = vcombine.high %v18_v12, %v34_v13  ;;  %v3657_v22 = vld [vmem:[%s4744_s1 + $0x208] sm:$0xff]   ;;  %v3659_v24 = vld [vmem:[%s4744_s1 + $0x250] sm:$0xff]   ;;  %v3667_v32 = vld [vmem:[%s4744_s1 + $0x260] sm:$0xff]  }
  0x1c   :  { %3248 = vmatpush3.bf16.msra.mxu0 %v3613_v26  ;;  %v3658_v23 = vld [vmem:[%s4744_s1 + $0x288] sm:$0xff]   ;;  %v3660_v25 = vld [vmem:[%s4744_s1 + $0x2d0] sm:$0xff]   ;;  %v3668_v33 = vld [vmem:[%s4744_s1 + $0x2e0] sm:$0xff]  }
  0x1d   :  { %3270 = vmatpush3.bf16.msra.mxu1 %v3614_v27  ;;  %3249 = vmatprep.subr.bf16.mxu0 %v3615_v28  ;;  %v3661_v26 = vld [vmem:[%s4744_s1 + $0x210] sm:$0xff]   ;;  %v3663_v28 = vld [vmem:[%s4744_s1 + $0x258] sm:$0xff]   ;;  %v3669_v34 = vld [vmem:[%s4744_s1 + $0x220] sm:$0xff]  }
  0x1e   :  { %3271 = vmatprep.subr.bf16.mxu1 %v3616_v29  ;;  %v3662_v27 = vld [vmem:[%s4744_s1 + $0x290] sm:$0xff]   ;;  %v3664_v29 = vld [vmem:[%s4744_s1 + $0x2d8] sm:$0xff]   ;;  %v3671_v36 = vld [vmem:[%s4744_s1 + $0x268] sm:$0xff]  }
  0x1f   :  { %v3672_v37 = vld [vmem:[%s4744_s1 + $0x2e8] sm:$0xff]   ;;  %v3699_v8 = vld [vmem:[%s4744_s1 + $0x360] sm:$0xff]  }
  0x20   :  { %3250 = vmatpush3.bf16.msra.mxu0 %v3617_v30  ;;  %v3665_v30 = vld [vmem:[%s4744_s1 + $0x218] sm:$0xff]   ;;  %v3674_v39 = vld [vmem:[%s4744_s1 + $0x2a8] sm:$0xff]   ;;  %v3700_v9 = vld [vmem:[%s4744_s1 + $0x3e0] sm:$0xff]  }
  0x21   :  { %3272 = vmatpush3.bf16.msra.mxu1 %v3618_v31  ;;  %3279 = vmatprep.subr.bf16.mxu0 %v3619_v40  ;;  %v3666_v31 = vld [vmem:[%s4744_s1 + $0x298] sm:$0xff]   ;;  %v3675_v40 = vld [vmem:[%s4744_s1 + $0x270] sm:$0xff]   ;;  %v3703_v12 = vld [vmem:[%s4744_s1 + $0x368] sm:$0xff]  }
  0x22   :  { %3301 = vmatprep.subr.bf16.mxu1 %v3620_v41  ;;  %v3676_v41 = vld [vmem:[%s4744_s1 + $0x2f0] sm:$0xff]   ;;  %v3704_v13 = vld [vmem:[%s4744_s1 + $0x3e8] sm:$0xff]  }
  0x23   :  { %2295 = vmatmul.mubr.bf16.vlgmr.msra.gmra.mrb[0].mxu0 %v2947_v35  ;;  %v3670_v35 = vld [vmem:[%s4744_s1 + $0x2a0] sm:$0xff]  }
  0x24   :  { %2336 = vmatmul.mubr.bf16.vlgmr.msra.gmra.mrb[0].mxu1 %v2949_v38  ;;  %3280 = vmatpush3.bf16.msra.mxu0 %v3621_v42  ;;  %v3673_v38 = vld [vmem:[%s4744_s1 + $0x228] sm:$0xff]   ;;  %v3677_v42 = vld [vmem:[%s4744_s1 + $0x230] sm:$0xff]  }
  0x25   :  { %3302 = vmatpush3.bf16.msra.mxu1 %v3622_v43  ;;  %3281 = vmatprep.subr.bf16.mxu0 %v3623_v44  ;;  %v3678_v43 = vld [vmem:[%s4744_s1 + $0x2b0] sm:$0xff]   ;;  %v3679_v44 = vld [vmem:[%s4744_s1 + $0x278] sm:$0xff]  }
  0x26   :  { %3303 = vmatprep.subr.bf16.mxu1 %v3624_v45  ;;  %2376 = vmatprep.mubr.bf16.mxu0 %v2952_v11  ;;  %v3680_v45 = vld [vmem:[%s4744_s1 + $0x2f8] sm:$0xff]   ;;  %v3702_v11 = vld [vmem:[%s4744_s1 + $0x3a0] sm:$0xff]  }
  0x27   :  { %2417 = vmatprep.mubr.bf16.mxu1 %v2954_v15  ;;  %v3706_v15 = vld [vmem:[%s4744_s1 + $0x3a8] sm:$0xff]  }
  0x28   :  { %3282 = vmatpush3.bf16.msra.mxu0 %v3625_v46  ;;  %v3681_v46 = vld [vmem:[%s4744_s1 + $0x238] sm:$0xff]  }
  0x29   :  { %3304 = vmatpush3.bf16.msra.mxu1 %v3626_v47  ;;  %3283 = vmatprep.subr.bf16.mxu0 %v3627_v48  ;;  %v3682_v47 = vld [vmem:[%s4744_s1 + $0x2b8] sm:$0xff]   ;;  %v19_v48 = vld [vmem:[%s4745_s0 + $0x20] sm:$0xff] }
  0x2a   :  { %3305 = vmatprep.subr.bf16.mxu1 %v3628_v49  ;;  %v35_v49 = vld [vmem:[%s4745_s0 + $0xa0] sm:$0xff] }
  0x2c   :  { %3284 = vmatpush3.bf16.msra.mxu0 %v3629_v50  ;;  %v20_v50 = vld [vmem:[%s4745_s0 + $0x28] sm:$0xff] }
  0x2d   :  { %3306 = vmatpush3.bf16.msra.mxu1 %v3630_v51  ;;  %3285 = vmatprep.subr.bf16.mxu0 %v3631_v52  ;;  %v36_v51 = vld [vmem:[%s4745_s0 + $0xa8] sm:$0xff]  ;;  %v2955_v52 = vcombine.low %v19_v48, %v35_v49 }
  0x2e   :  { %3307 = vmatprep.subr.bf16.mxu1 %v3632_v53  ;;  %v2956_v53 = vcombine.high %v19_v48, %v35_v49  ;;  %v3731_v48 = vld [vmem:[%s4744_s1 + $0x460] sm:$0xff]  }
  0x2f   :  { %v3732_v49 = vld [vmem:[%s4744_s1 + $0x4e0] sm:$0xff]  }
  0x30   :  { %3286 = vmatpush3.bf16.msra.mxu0 %v3633_v54  ;;  %v2957_v54 = vcombine.low %v20_v50, %v36_v51 }
  0x31   :  { %3308 = vmatpush3.bf16.msra.mxu1 %v3634_v55  ;;  %3287 = vmatprep.subr.bf16.mxu0 %v3635_v56  ;;  %v2958_v55 = vcombine.high %v20_v50, %v36_v51  ;;  %v3683_v56 = vld [vmem:[%s4744_s1 + $0x340] sm:$0xff]  }
  0x32   :  { %3309 = vmatprep.subr.bf16.mxu1 %v3636_v57  ;;  %v3684_v57 = vld [vmem:[%s4744_s1 + $0x3c0] sm:$0xff]  }
  0x33   :  { %v3733_v50 = vld [vmem:[%s4744_s1 + $0x420] sm:$0xff]  }
  0x34   :  { %3288 = vmatpush3.bf16.msra.mxu0 %v3637_v58  ;;  %v3685_v58 = vld [vmem:[%s4744_s1 + $0x300] sm:$0xff]  }
  0x35   :  { %3310 = vmatpush3.bf16.msra.mxu1 %v3638_v59  ;;  %3289 = vmatprep.subr.bf16.mxu0 %v3639_v60  ;;  %v3686_v59 = vld [vmem:[%s4744_s1 + $0x380] sm:$0xff]   ;;  %v3687_v60 = vld [vmem:[%s4744_s1 + $0x348] sm:$0xff]  }
  0x36   :  { %3311 = vmatprep.subr.bf16.mxu1 %v3640_v61  ;;  %v3688_v61 = vld [vmem:[%s4744_s1 + $0x3c8] sm:$0xff]   ;;  %v3734_v51 = vld [vmem:[%s4744_s1 + $0x4a0] sm:$0xff]  }
  0x38   :  { %3290 = vmatpush3.bf16.msra.mxu0 %v3641_v62  ;;  %v3689_v62 = vld [vmem:[%s4744_s1 + $0x308] sm:$0xff]  }
  0x39   :  { %3312 = vmatpush3.bf16.msra.mxu1 %v3642_v63  ;;  %3291 = vmatprep.subr.bf16.mxu0 %v3643_v0  ;;  %v3690_v63 = vld [vmem:[%s4744_s1 + $0x388] sm:$0xff]   ;;  %v3691_v0 = vld [vmem:[%s4744_s1 + $0x350] sm:$0xff]  }
  0x3a   :  { %3313 = vmatprep.subr.bf16.mxu1 %v3644_v1  ;;  %v3692_v1 = vld [vmem:[%s4744_s1 + $0x3d0] sm:$0xff]  }
  0x3c   :  { %3292 = vmatpush3.bf16.msra.mxu0 %v3645_v2  ;;  %v3693_v2 = vld [vmem:[%s4744_s1 + $0x310] sm:$0xff]  }
  0x3d   :  { %3314 = vmatpush3.bf16.msra.mxu1 %v3646_v3  ;;  %3293 = vmatprep.subr.bf16.mxu0 %v3647_v4  ;;  %v3694_v3 = vld [vmem:[%s4744_s1 + $0x390] sm:$0xff]   ;;  %v3695_v4 = vld [vmem:[%s4744_s1 + $0x358] sm:$0xff]  }
  0x3e   :  { %3315 = vmatprep.subr.bf16.mxu1 %v3648_v5  ;;  %v3696_v5 = vld [vmem:[%s4744_s1 + $0x3d8] sm:$0xff]  }
  0x40   :  { %3294 = vmatpush3.bf16.msra.mxu0 %v3649_v6  ;;  %v3697_v6 = vld [vmem:[%s4744_s1 + $0x318] sm:$0xff]  }
  0x41   :  { %3316 = vmatpush3.bf16.msra.mxu1 %v3650_v7  ;;  %3323 = vmatprep.subr.bf16.mxu0 %v3651_v16  ;;  %v3698_v7 = vld [vmem:[%s4744_s1 + $0x398] sm:$0xff]   ;;  %v3707_v16 = vld [vmem:[%s4744_s1 + $0x370] sm:$0xff]  }
  0x42   :  { %3345 = vmatprep.subr.bf16.mxu1 %v3652_v17  ;;  %v3708_v17 = vld [vmem:[%s4744_s1 + $0x3f0] sm:$0xff]  }
  0x43   :  { %2377 = vmatmul.mubr.bf16.vlgmr.msra.gmra.mrb[4].mxu0 %v2951_v10  ;;  %v3701_v10 = vld [vmem:[%s4744_s1 + $0x320] sm:$0xff]  }
  0x44   :  { %2418 = vmatmul.mubr.bf16.vlgmr.msra.gmra.mrb[4].mxu1 %v2953_v14  ;;  %3324 = vmatpush3.bf16.msra.mxu0 %v3653_v18  ;;  %v3705_v14 = vld [vmem:[%s4744_s1 + $0x328] sm:$0xff]   ;;  %v3709_v18 = vld [vmem:[%s4744_s1 + $0x330] sm:$0xff]  }
  0x45   :  { %3346 = vmatpush3.bf16.msra.mxu1 %v3654_v19  ;;  %3325 = vmatprep.subr.bf16.mxu0 %v3655_v20  ;;  %v3710_v19 = vld [vmem:[%s4744_s1 + $0x3b0] sm:$0xff]   ;;  %v3711_v20 = vld [vmem:[%s4744_s1 + $0x378] sm:$0xff]  }
  0x46   :  { %3347 = vmatprep.subr.bf16.mxu1 %v3656_v21  ;;  %2458 = vmatprep.mubr.bf16.mxu0 %v2956_v53  ;;  %v3712_v21 = vld [vmem:[%s4744_s1 + $0x3f8] sm:$0xff]   ;;  %v3736_v53 = vld [vmem:[%s4744_s1 + $0x4e8] sm:$0xff]  }
  0x47   :  { %2499 = vmatprep.mubr.bf16.mxu1 %v2958_v55  ;;  %v3738_v55 = vld [vmem:[%s4744_s1 + $0x4a8] sm:$0xff]  }
  0x48   :  { %3326 = vmatpush3.bf16.msra.mxu0 %v3657_v22  ;;  %v3713_v22 = vld [vmem:[%s4744_s1 + $0x338] sm:$0xff]  }
  0x49   :  { %3348 = vmatpush3.bf16.msra.mxu1 %v3658_v23  ;;  %3327 = vmatprep.subr.bf16.mxu0 %v3659_v24  ;;  %v3714_v23 = vld [vmem:[%s4744_s1 + $0x3b8] sm:$0xff]   ;;  %v21_v24 = vld [vmem:[%s4745_s0 + $0x30] sm:$0xff] }
  0x4a   :  { %3349 = vmatprep.subr.bf16.mxu1 %v3660_v25  ;;  %v37_v25 = vld [vmem:[%s4745_s0 + $0xb0] sm:$0xff] }
  0x4c   :  { %3328 = vmatpush3.bf16.msra.mxu0 %v3661_v26  ;;  %v22_v26 = vld [vmem:[%s4745_s0 + $0x38] sm:$0xff] }
  0x4d   :  { %3350 = vmatpush3.bf16.msra.mxu1 %v3662_v27  ;;  %3329 = vmatprep.subr.bf16.mxu0 %v3663_v28  ;;  %v2959_v27 = vcombine.low %v21_v24, %v37_v25  ;;  %v2960_v28 = vcombine.high %v21_v24, %v37_v25  ;;  %v3763_v24 = vld [vmem:[%s4744_s1 + $0x560] sm:$0xff]  }
  0x4e   :  { %3351 = vmatprep.subr.bf16.mxu1 %v3664_v29  ;;  %v38_v29 = vld [vmem:[%s4745_s0 + $0xb8] sm:$0xff]  ;;  %v3764_v25 = vld [vmem:[%s4744_s1 + $0x5e0] sm:$0xff]  }
  0x50   :  { %3330 = vmatpush3.bf16.msra.mxu0 %v3665_v30  ;;  %v2961_v30 = vcombine.low %v22_v26, %v38_v29 }
  0x51   :  { %3352 = vmatpush3.bf16.msra.mxu1 %v3666_v31  ;;  %3331 = vmatprep.subr.bf16.mxu0 %v3667_v32  ;;  %v2962_v31 = vcombine.high %v22_v26, %v38_v29  ;;  %v3715_v32 = vld [vmem:[%s4744_s1 + $0x440] sm:$0xff]   ;;  %v3768_v29 = vld [vmem:[%s4744_s1 + $0x5e8] sm:$0xff]  }
  0x52   :  { %3353 = vmatprep.subr.bf16.mxu1 %v3668_v33  ;;  %v3716_v33 = vld [vmem:[%s4744_s1 + $0x4c0] sm:$0xff]  }
  0x53   :  { %v3765_v26 = vld [vmem:[%s4744_s1 + $0x520] sm:$0xff]  }
  0x54   :  { %3332 = vmatpush3.bf16.msra.mxu0 %v3669_v34  ;;  %v3717_v34 = vld [vmem:[%s4744_s1 + $0x400] sm:$0xff]  }
  0x55   :  { %3354 = vmatpush3.bf16.msra.mxu1 %v3670_v35  ;;  %3333 = vmatprep.subr.bf16.mxu0 %v3671_v36  ;;  %v3718_v35 = vld [vmem:[%s4744_s1 + $0x480] sm:$0xff]   ;;  %v3719_v36 = vld [vmem:[%s4744_s1 + $0x448] sm:$0xff]  }
  0x56   :  { %3355 = vmatprep.subr.bf16.mxu1 %v3672_v37  ;;  %v3720_v37 = vld [vmem:[%s4744_s1 + $0x4c8] sm:$0xff]  }
  0x58   :  { %3334 = vmatpush3.bf16.msra.mxu0 %v3673_v38  ;;  %v3721_v38 = vld [vmem:[%s4744_s1 + $0x408] sm:$0xff]  }
  0x59   :  { %3356 = vmatpush3.bf16.msra.mxu1 %v3674_v39  ;;  %3335 = vmatprep.subr.bf16.mxu0 %v3675_v40  ;;  %v3722_v39 = vld [vmem:[%s4744_s1 + $0x488] sm:$0xff]   ;;  %v3723_v40 = vld [vmem:[%s4744_s1 + $0x450] sm:$0xff]  }
  0x5a   :  { %3357 = vmatprep.subr.bf16.mxu1 %v3676_v41  ;;  %v3724_v41 = vld [vmem:[%s4744_s1 + $0x4d0] sm:$0xff]  }
  0x5c   :  { %3336 = vmatpush3.bf16.msra.mxu0 %v3677_v42  ;;  %v3725_v42 = vld [vmem:[%s4744_s1 + $0x410] sm:$0xff]  }
  0x5d   :  { %3358 = vmatpush3.bf16.msra.mxu1 %v3678_v43  ;;  %3337 = vmatprep.subr.bf16.mxu0 %v3679_v44  ;;  %v3726_v43 = vld [vmem:[%s4744_s1 + $0x490] sm:$0xff]   ;;  %v3727_v44 = vld [vmem:[%s4744_s1 + $0x458] sm:$0xff]  }
  0x5e   :  { %3359 = vmatprep.subr.bf16.mxu1 %v3680_v45  ;;  %v3728_v45 = vld [vmem:[%s4744_s1 + $0x4d8] sm:$0xff]  }
  0x60   :  { %3338 = vmatpush3.bf16.msra.mxu0 %v3681_v46  ;;  %v3729_v46 = vld [vmem:[%s4744_s1 + $0x418] sm:$0xff]  }
  0x61   :  { %3360 = vmatpush3.bf16.msra.mxu1 %v3682_v47  ;;  %3367 = vmatprep.subr.bf16.mxu0 %v3683_v56  ;;  %v3730_v47 = vld [vmem:[%s4744_s1 + $0x498] sm:$0xff]   ;;  %v3739_v56 = vld [vmem:[%s4744_s1 + $0x470] sm:$0xff]  }
  0x62   :  { %3389 = vmatprep.subr.bf16.mxu1 %v3684_v57  ;;  %v3740_v57 = vld [vmem:[%s4744_s1 + $0x4f0] sm:$0xff]  }
  0x63   :  { %2459 = vmatmul.mubr.bf16.vlgmr.msra.gmra.mrb[8].mxu0 %v2955_v52  ;;  %v3735_v52 = vld [vmem:[%s4744_s1 + $0x468] sm:$0xff]  }
  0x64   :  { %2500 = vmatmul.mubr.bf16.vlgmr.msra.gmra.mrb[8].mxu1 %v2957_v54  ;;  %3368 = vmatpush3.bf16.msra.mxu0 %v3685_v58  ;;  %v3737_v54 = vld [vmem:[%s4744_s1 + $0x428] sm:$0xff]   ;;  %v3741_v58 = vld [vmem:[%s4744_s1 + $0x430] sm:$0xff]  }
  0x65   :  { %3390 = vmatpush3.bf16.msra.mxu1 %v3686_v59  ;;  %3369 = vmatprep.subr.bf16.mxu0 %v3687_v60  ;;  %v3742_v59 = vld [vmem:[%s4744_s1 + $0x4b0] sm:$0xff]   ;;  %v3743_v60 = vld [vmem:[%s4744_s1 + $0x478] sm:$0xff]  }
  0x66   :  { %3391 = vmatprep.subr.bf16.mxu1 %v3688_v61  ;;  %2540 = vmatprep.mubr.bf16.mxu0 %v2960_v28  ;;  %v3744_v61 = vld [vmem:[%s4744_s1 + $0x4f8] sm:$0xff]   ;;  %v3767_v28 = vld [vmem:[%s4744_s1 + $0x568] sm:$0xff]  }
  0x67   :  { %2581 = vmatprep.mubr.bf16.mxu1 %v2962_v31  ;;  %v3770_v31 = vld [vmem:[%s4744_s1 + $0x5a8] sm:$0xff]  }
  0x68   :  { %3370 = vmatpush3.bf16.msra.mxu0 %v3689_v62  ;;  %v3745_v62 = vld [vmem:[%s4744_s1 + $0x438] sm:$0xff]  }
  0x69   :  { %3392 = vmatpush3.bf16.msra.mxu1 %v3690_v63  ;;  %3371 = vmatprep.subr.bf16.mxu0 %v3691_v0  ;;  %v3746_v63 = vld [vmem:[%s4744_s1 + $0x4b8] sm:$0xff]   ;;  %v23_v0 = vld [vmem:[%s4745_s0 + $0x40] sm:$0xff] }
  0x6a   :  { %3393 = vmatprep.subr.bf16.mxu1 %v3692_v1  ;;  %v39_v1 = vld [vmem:[%s4745_s0 + $0xc0] sm:$0xff] }
  0x6c   :  { %3372 = vmatpush3.bf16.msra.mxu0 %v3693_v2  ;;  %v2963_v2 = vcombine.low %v23_v0, %v39_v1 }
  0x6d   :  { %3394 = vmatpush3.bf16.msra.mxu1 %v3694_v3  ;;  %3373 = vmatprep.subr.bf16.mxu0 %v3695_v4  ;;  %v2964_v3 = vcombine.high %v23_v0, %v39_v1  ;;  %v24_v4 = vld [vmem:[%s4745_s0 + $0x48] sm:$0xff]  ;;  %v3795_v0 = vld [vmem:[%s4744_s1 + $0x660] sm:$0xff]  }
  0x6e   :  { %3395 = vmatprep.subr.bf16.mxu1 %v3696_v5  ;;  %v40_v5 = vld [vmem:[%s4745_s0 + $0xc8] sm:$0xff]  ;;  %v3796_v1 = vld [vmem:[%s4744_s1 + $0x6e0] sm:$0xff]  }
  0x70   :  { %3374 = vmatpush3.bf16.msra.mxu0 %v3697_v6  ;;  %v2965_v6 = vcombine.low %v24_v4, %v40_v5 }
  0x71   :  { %3396 = vmatpush3.bf16.msra.mxu1 %v3698_v7  ;;  %3375 = vmatprep.subr.bf16.mxu0 %v3699_v8  ;;  %v2966_v7 = vcombine.high %v24_v4, %v40_v5  ;;  %v3747_v8 = vld [vmem:[%s4744_s1 + $0x540] sm:$0xff]   ;;  %v3799_v4 = vld [vmem:[%s4744_s1 + $0x668] sm:$0xff]  }
  0x72   :  { %3397 = vmatprep.subr.bf16.mxu1 %v3700_v9  ;;  %v3748_v9 = vld [vmem:[%s4744_s1 + $0x5c0] sm:$0xff]   ;;  %v3800_v5 = vld [vmem:[%s4744_s1 + $0x6e8] sm:$0xff]  }
  0x74   :  { %3376 = vmatpush3.bf16.msra.mxu0 %v3701_v10  ;;  %v3749_v10 = vld [vmem:[%s4744_s1 + $0x500] sm:$0xff]  }
  0x75   :  { %3398 = vmatpush3.bf16.msra.mxu1 %v3702_v11  ;;  %3377 = vmatprep.subr.bf16.mxu0 %v3703_v12  ;;  %v3750_v11 = vld [vmem:[%s4744_s1 + $0x580] sm:$0xff]   ;;  %v3751_v12 = vld [vmem:[%s4744_s1 + $0x548] sm:$0xff]  }
  0x76   :  { %3399 = vmatprep.subr.bf16.mxu1 %v3704_v13  ;;  %v3752_v13 = vld [vmem:[%s4744_s1 + $0x5c8] sm:$0xff]  }
  0x78   :  { %3378 = vmatpush3.bf16.msra.mxu0 %v3705_v14  ;;  %v3753_v14 = vld [vmem:[%s4744_s1 + $0x508] sm:$0xff]  }
  0x79   :  { %3400 = vmatpush3.bf16.msra.mxu1 %v3706_v15  ;;  %3379 = vmatprep.subr.bf16.mxu0 %v3707_v16  ;;  %v3754_v15 = vld [vmem:[%s4744_s1 + $0x588] sm:$0xff]   ;;  %v3755_v16 = vld [vmem:[%s4744_s1 + $0x550] sm:$0xff]  }
  0x7a   :  { %3401 = vmatprep.subr.bf16.mxu1 %v3708_v17  ;;  %v3756_v17 = vld [vmem:[%s4744_s1 + $0x5d0] sm:$0xff]  }
  0x7c   :  { %3380 = vmatpush3.bf16.msra.mxu0 %v3709_v18  ;;  %v3757_v18 = vld [vmem:[%s4744_s1 + $0x510] sm:$0xff]  }
  0x7d   :  { %3402 = vmatpush3.bf16.msra.mxu1 %v3710_v19  ;;  %3381 = vmatprep.subr.bf16.mxu0 %v3711_v20  ;;  %v3758_v19 = vld [vmem:[%s4744_s1 + $0x590] sm:$0xff]   ;;  %v3759_v20 = vld [vmem:[%s4744_s1 + $0x558] sm:$0xff]  }
  0x7e   :  { %3403 = vmatprep.subr.bf16.mxu1 %v3712_v21  ;;  %v3760_v21 = vld [vmem:[%s4744_s1 + $0x5d8] sm:$0xff]  }
  0x80   :  { %3382 = vmatpush3.bf16.msra.mxu0 %v3713_v22  ;;  %v3761_v22 = vld [vmem:[%s4744_s1 + $0x518] sm:$0xff]  }
  0x81   :  { %3404 = vmatpush3.bf16.msra.mxu1 %v3714_v23  ;;  %3411 = vmatprep.subr.bf16.mxu0 %v3715_v32  ;;  %v3762_v23 = vld [vmem:[%s4744_s1 + $0x598] sm:$0xff]   ;;  %v3771_v32 = vld [vmem:[%s4744_s1 + $0x570] sm:$0xff]  }
  0x82   :  { %3433 = vmatprep.subr.bf16.mxu1 %v3716_v33  ;;  %v3772_v33 = vld [vmem:[%s4744_s1 + $0x5f0] sm:$0xff]  }
  0x83   :  { %2541 = vmatmul.mubr.bf16.vlgmr.msra.gmra.mrb[12].mxu0 %v2959_v27  ;;  %v3766_v27 = vld [vmem:[%s4744_s1 + $0x5a0] sm:$0xff]  }
  0x84   :  { %2582 = vmatmul.mubr.bf16.vlgmr.msra.gmra.mrb[12].mxu1 %v2961_v30  ;;  %3412 = vmatpush3.bf16.msra.mxu0 %v3717_v34  ;;  %v3769_v30 = vld [vmem:[%s4744_s1 + $0x528] sm:$0xff]   ;;  %v3773_v34 = vld [vmem:[%s4744_s1 + $0x530] sm:$0xff]  }
  0x85   :  { %3434 = vmatpush3.bf16.msra.mxu1 %v3718_v35  ;;  %3413 = vmatprep.subr.bf16.mxu0 %v3719_v36  ;;  %v3774_v35 = vld [vmem:[%s4744_s1 + $0x5b0] sm:$0xff]   ;;  %v3775_v36 = vld [vmem:[%s4744_s1 + $0x578] sm:$0xff]  }
  0x86   :  { %3435 = vmatprep.subr.bf16.mxu1 %v3720_v37  ;;  %2622 = vmatprep.mubr.bf16.mxu0 %v2964_v3  ;;  %v3776_v37 = vld [vmem:[%s4744_s1 + $0x5f8] sm:$0xff]   ;;  %v3798_v3 = vld [vmem:[%s4744_s1 + $0x6a0] sm:$0xff]  }
  0x87   :  { %2663 = vmatprep.mubr.bf16.mxu1 %v2966_v7  ;;  %v3802_v7 = vld [vmem:[%s4744_s1 + $0x6a8] sm:$0xff]  }
  0x88   :  { %3414 = vmatpush3.bf16.msra.mxu0 %v3721_v38  ;;  %v3777_v38 = vld [vmem:[%s4744_s1 + $0x538] sm:$0xff]  }
  0x89   :  { %3436 = vmatpush3.bf16.msra.mxu1 %v3722_v39  ;;  %3415 = vmatprep.subr.bf16.mxu0 %v3723_v40  ;;  %v3778_v39 = vld [vmem:[%s4744_s1 + $0x5b8] sm:$0xff]   ;;  %v25_v40 = vld [vmem:[%s4745_s0 + $0x50] sm:$0xff] }
  0x8a   :  { %3437 = vmatprep.subr.bf16.mxu1 %v3724_v41  ;;  %v41_v41 = vld [vmem:[%s4745_s0 + $0xd0] sm:$0xff] }
  0x8c   :  { %3416 = vmatpush3.bf16.msra.mxu0 %v3725_v42  ;;  %v26_v42 = vld [vmem:[%s4745_s0 + $0x58] sm:$0xff] }
  0x8d   :  { %3438 = vmatpush3.bf16.msra.mxu1 %v3726_v43  ;;  %3417 = vmatprep.subr.bf16.mxu0 %v3727_v44  ;;  %v42_v43 = vld [vmem:[%s4745_s0 + $0xd8] sm:$0xff]  ;;  %v2967_v44 = vcombine.low %v25_v40, %v41_v41 }
  0x8e   :  { %3439 = vmatprep.subr.bf16.mxu1 %v3728_v45  ;;  %v2968_v45 = vcombine.high %v25_v40, %v41_v41  ;;  %v3826_v41 = vld [vmem:[%s4744_s1 + $0x798] sm:$0xff]  }
  0x90   :  { %3418 = vmatpush3.bf16.msra.mxu0 %v3729_v46  ;;  %v2969_v46 = vcombine.low %v26_v42, %v42_v43 }
  0x91   :  { %3440 = vmatpush3.bf16.msra.mxu1 %v3730_v47  ;;  %3419 = vmatprep.subr.bf16.mxu0 %v3731_v48  ;;  %v2970_v47 = vcombine.high %v26_v42, %v42_v43  ;;  %v3779_v48 = vld [vmem:[%s4744_s1 + $0x640] sm:$0xff]  }
  0x92   :  { %3441 = vmatprep.subr.bf16.mxu1 %v3732_v49  ;;  %v3780_v49 = vld [vmem:[%s4744_s1 + $0x6c0] sm:$0xff]  }
  0x93   :  { %v3827_v43 = vld [vmem:[%s4744_s1 + $0x760] sm:$0xff]  }
  0x94   :  { %3420 = vmatpush3.bf16.msra.mxu0 %v3733_v50  ;;  %v3781_v50 = vld [vmem:[%s4744_s1 + $0x600] sm:$0xff]  }
  0x95   :  { %3442 = vmatpush3.bf16.msra.mxu1 %v3734_v51  ;;  %3421 = vmatprep.subr.bf16.mxu0 %v3735_v52  ;;  %v3782_v51 = vld [vmem:[%s4744_s1 + $0x680] sm:$0xff]   ;;  %v3783_v52 = vld [vmem:[%s4744_s1 + $0x648] sm:$0xff]  }
  0x96   :  { %3443 = vmatprep.subr.bf16.mxu1 %v3736_v53  ;;  %v3784_v53 = vld [vmem:[%s4744_s1 + $0x6c8] sm:$0xff]  }
  0x98   :  { %3422 = vmatpush3.bf16.msra.mxu0 %v3737_v54  ;;  %v3785_v54 = vld [vmem:[%s4744_s1 + $0x608] sm:$0xff]  }
  0x99   :  { %3444 = vmatpush3.bf16.msra.mxu1 %v3738_v55  ;;  %3423 = vmatprep.subr.bf16.mxu0 %v3739_v56  ;;  %v3786_v55 = vld [vmem:[%s4744_s1 + $0x688] sm:$0xff]   ;;  %v3787_v56 = vld [vmem:[%s4744_s1 + $0x650] sm:$0xff]  }
  0x9a   :  { %3445 = vmatprep.subr.bf16.mxu1 %v3740_v57  ;;  %v3788_v57 = vld [vmem:[%s4744_s1 + $0x6d0] sm:$0xff]  }
  0x9c   :  { %3424 = vmatpush3.bf16.msra.mxu0 %v3741_v58  ;;  %v3789_v58 = vld [vmem:[%s4744_s1 + $0x610] sm:$0xff]  }
  0x9d   :  { %3446 = vmatpush3.bf16.msra.mxu1 %v3742_v59  ;;  %3425 = vmatprep.subr.bf16.mxu0 %v3743_v60  ;;  %v3790_v59 = vld [vmem:[%s4744_s1 + $0x690] sm:$0xff]   ;;  %v3791_v60 = vld [vmem:[%s4744_s1 + $0x658] sm:$0xff]  }
  0x9e   :  { %3447 = vmatprep.subr.bf16.mxu1 %v3744_v61  ;;  %v3792_v61 = vld [vmem:[%s4744_s1 + $0x6d8] sm:$0xff]  }
  0xa0   :  { %3426 = vmatpush3.bf16.msra.mxu0 %v3745_v62  ;;  %v3793_v62 = vld [vmem:[%s4744_s1 + $0x618] sm:$0xff]  }
  0xa1   :  { %3448 = vmatpush3.bf16.msra.mxu1 %v3746_v63  ;;  %3455 = vmatprep.subr.bf16.mxu0 %v3747_v8  ;;  %v3794_v63 = vld [vmem:[%s4744_s1 + $0x698] sm:$0xff]   ;;  %v3803_v8 = vld [vmem:[%s4744_s1 + $0x670] sm:$0xff]  }
  0xa2   :  { %3477 = vmatprep.subr.bf16.mxu1 %v3748_v9  ;;  %v3804_v9 = vld [vmem:[%s4744_s1 + $0x6f0] sm:$0xff]  }
  0xa3   :  { %2623 = vmatmul.mubr.bf16.vlgmr.msra.gmra.mrb[16].mxu0 %v2963_v2  ;;  %v3797_v2 = vld [vmem:[%s4744_s1 + $0x620] sm:$0xff]  }
  0xa4   :  { %2664 = vmatmul.mubr.bf16.vlgmr.msra.gmra.mrb[16].mxu1 %v2965_v6  ;;  %3456 = vmatpush3.bf16.msra.mxu0 %v3749_v10  ;;  %v3801_v6 = vld [vmem:[%s4744_s1 + $0x628] sm:$0xff]   ;;  %v3805_v10 = vld [vmem:[%s4744_s1 + $0x630] sm:$0xff]  }
  0xa5   :  { %3478 = vmatpush3.bf16.msra.mxu1 %v3750_v11  ;;  %3457 = vmatprep.subr.bf16.mxu0 %v3751_v12  ;;  %v3806_v11 = vld [vmem:[%s4744_s1 + $0x6b0] sm:$0xff]   ;;  %v3807_v12 = vld [vmem:[%s4744_s1 + $0x678] sm:$0xff]  }
  0xa6   :  { %3479 = vmatprep.subr.bf16.mxu1 %v3752_v13  ;;  %2704 = vmatprep.mubr.bf16.mxu0 %v2968_v45  ;;  %v3808_v13 = vld [vmem:[%s4744_s1 + $0x6f8] sm:$0xff]  }
  0xa7   :  { %2745 = vmatprep.mubr.bf16.mxu1 %v2970_v47 }
  0xa8   :  { %3458 = vmatpush3.bf16.msra.mxu0 %v3753_v14  ;;  %v3809_v14 = vld [vmem:[%s4744_s1 + $0x638] sm:$0xff]  }
  0xa9   :  { %3480 = vmatpush3.bf16.msra.mxu1 %v3754_v15  ;;  %3459 = vmatprep.subr.bf16.mxu0 %v3755_v16  ;;  %v3810_v15 = vld [vmem:[%s4744_s1 + $0x6b8] sm:$0xff]   ;;  %v27_v16 = vld [vmem:[%s4745_s0 + $0x60] sm:$0xff] }
  0xaa   :  { %3481 = vmatprep.subr.bf16.mxu1 %v3756_v17  ;;  %v43_v17 = vld [vmem:[%s4745_s0 + $0xe0] sm:$0xff] }
  0xac   :  { %3460 = vmatpush3.bf16.msra.mxu0 %v3757_v18  ;;  %v28_v18 = vld [vmem:[%s4745_s0 + $0x68] sm:$0xff] }
  0xad   :  { %3482 = vmatpush3.bf16.msra.mxu1 %v3758_v19  ;;  %3461 = vmatprep.subr.bf16.mxu0 %v3759_v20  ;;  %v2971_v19 = vcombine.low %v27_v16, %v43_v17  ;;  %v2972_v20 = vcombine.high %v27_v16, %v43_v17 }
  0xae   :  { %3483 = vmatprep.subr.bf16.mxu1 %v3760_v21  ;;  %v44_v21 = vld [vmem:[%s4745_s0 + $0xe8] sm:$0xff] }
  0xb0   :  { %3462 = vmatpush3.bf16.msra.mxu0 %v3761_v22  ;;  %v2973_v22 = vcombine.low %v28_v18, %v44_v21 }
  0xb1   :  { %3484 = vmatpush3.bf16.msra.mxu1 %v3762_v23  ;;  %3463 = vmatprep.subr.bf16.mxu0 %v3763_v24  ;;  %v2974_v23 = vcombine.high %v28_v18, %v44_v21  ;;  %v3811_v24 = vld [vmem:[%s4744_s1 + $0x740] sm:$0xff]  }
  0xb2   :  { %3485 = vmatprep.subr.bf16.mxu1 %v3764_v25  ;;  %v3812_v25 = vld [vmem:[%s4744_s1 + $0x7c0] sm:$0xff]  }
  0xb4   :  { %3464 = vmatpush3.bf16.msra.mxu0 %v3765_v26  ;;  %v3813_v26 = vld [vmem:[%s4744_s1 + $0x700] sm:$0xff]  }
  0xb5   :  { %3486 = vmatpush3.bf16.msra.mxu1 %v3766_v27  ;;  %3465 = vmatprep.subr.bf16.mxu0 %v3767_v28  ;;  %v3814_v27 = vld [vmem:[%s4744_s1 + $0x780] sm:$0xff]   ;;  %v3815_v28 = vld [vmem:[%s4744_s1 + $0x748] sm:$0xff]  }
  0xb6   :  { %3487 = vmatprep.subr.bf16.mxu1 %v3768_v29  ;;  %v3816_v29 = vld [vmem:[%s4744_s1 + $0x7c8] sm:$0xff]  }
  0xb8   :  { %3466 = vmatpush3.bf16.msra.mxu0 %v3769_v30  ;;  %v3817_v30 = vld [vmem:[%s4744_s1 + $0x708] sm:$0xff]  }
  0xb9   :  { %3488 = vmatpush3.bf16.msra.mxu1 %v3770_v31  ;;  %3467 = vmatprep.subr.bf16.mxu0 %v3771_v32  ;;  %v3818_v31 = vld [vmem:[%s4744_s1 + $0x788] sm:$0xff]   ;;  %v3819_v32 = vld [vmem:[%s4744_s1 + $0x750] sm:$0xff]  }
  0xba   :  { %3489 = vmatprep.subr.bf16.mxu1 %v3772_v33  ;;  %v3820_v33 = vld [vmem:[%s4744_s1 + $0x7d0] sm:$0xff]  }
  0xbc   :  { %3468 = vmatpush3.bf16.msra.mxu0 %v3773_v34  ;;  %v3821_v34 = vld [vmem:[%s4744_s1 + $0x710] sm:$0xff]  }
  0xbd   :  { %3490 = vmatpush3.bf16.msra.mxu1 %v3774_v35  ;;  %3469 = vmatprep.subr.bf16.mxu0 %v3775_v36  ;;  %v3822_v35 = vld [vmem:[%s4744_s1 + $0x790] sm:$0xff]   ;;  %v3823_v36 = vld [vmem:[%s4744_s1 + $0x758] sm:$0xff]  }
  0xbe   :  { %3491 = vmatprep.subr.bf16.mxu1 %v3776_v37  ;;  %v3824_v37 = vld [vmem:[%s4744_s1 + $0x7d8] sm:$0xff]  }
  0xc0   :  { %3470 = vmatpush3.bf16.msra.mxu0 %v3777_v38 }
  0xc1   :  { %3492 = vmatpush3.bf16.msra.mxu1 %v3778_v39  ;;  %3499 = vmatprep.subr.bf16.mxu0 %v3779_v48  ;;  %v3825_v39 = vld [vmem:[%s4744_s1 + $0x718] sm:$0xff]  }
  0xc2   :  { %3521 = vmatprep.subr.bf16.mxu1 %v3780_v49  ;;  %v3829_v49 = vld [vmem:[%s4744_s1 + $0x720] sm:$0xff]  }
  0xc3   :  { %2705 = vmatmul.mubr.bf16.vlgmr.msra.gmra.mrb[20].mxu0 %v2967_v44 }
  0xc4   :  { %2746 = vmatmul.mubr.bf16.vlgmr.msra.gmra.mrb[20].mxu1 %v2969_v46  ;;  %3500 = vmatpush3.bf16.msra.mxu0 %v3781_v50  ;;  %v3828_v46 = vld [vmem:[%s4744_s1 + $0x7e0] sm:$0xff]  }
  0xc5   :  { %3522 = vmatpush3.bf16.msra.mxu1 %v3782_v51  ;;  %3501 = vmatprep.subr.bf16.mxu0 %v3783_v52  ;;  %v3830_v51 = vld [vmem:[%s4744_s1 + $0x7a0] sm:$0xff]  }
  0xc6   :  { %3523 = vmatprep.subr.bf16.mxu1 %v3784_v53  ;;  %2786 = vmatprep.mubr.bf16.mxu0 %v2972_v20  ;;  %v2946_v52 = vld [vmem:[%s4746_s2] ss:$0 sm:$0xff] }
  0xc7   :  { %2827 = vmatprep.mubr.bf16.mxu1 %v2974_v23 }
  0xc8   :  { %3502 = vmatpush3.bf16.msra.mxu0 %v3785_v54 }
  0xc9   :  { %3524 = vmatpush3.bf16.msra.mxu1 %v3786_v55  ;;  %3503 = vmatprep.subr.bf16.mxu0 %v3787_v56  ;;  %v3831_v55 = vld [vmem:[%s4744_s1 + $0x768] sm:$0xff]  }
  0xca   :  { %3525 = vmatprep.subr.bf16.mxu1 %v3788_v57 }
  0xcc   :  { %3504 = vmatpush3.bf16.msra.mxu0 %v3789_v58  ;;  %v3832_v58 = vld [vmem:[%s4744_s1 + $0x7e8] sm:$0xff]  }
  0xcd   :  { %3526 = vmatpush3.bf16.msra.mxu1 %v3790_v59  ;;  %3505 = vmatprep.subr.bf16.mxu0 %v3791_v60 }
  0xce   :  { %3527 = vmatprep.subr.bf16.mxu1 %v3792_v61  ;;  %v3833_v61 = vld [vmem:[%s4744_s1 + $0x728] sm:$0xff]  }
  0xd0   :  { %3506 = vmatpush3.bf16.msra.mxu0 %v3793_v62 }
  0xd1   :  { %3528 = vmatpush3.bf16.msra.mxu1 %v3794_v63  ;;  %3507 = vmatprep.subr.bf16.mxu0 %v3795_v0  ;;  %v3834_v63 = vld [vmem:[%s4744_s1 + $0x7a8] sm:$0xff]  }
  0xd2   :  { %3529 = vmatprep.subr.bf16.mxu1 %v3796_v1  ;;  %v3835_v1 = vld [vmem:[%s4744_s1 + $0x770] sm:$0xff]  }
  0xd4   :  { %3508 = vmatpush3.bf16.msra.mxu0 %v3797_v2  ;;  %v3836_v2 = vld [vmem:[%s4744_s1 + $0x7f0] sm:$0xff]  }
  0xd5   :  { %3530 = vmatpush3.bf16.msra.mxu1 %v3798_v3  ;;  %3509 = vmatprep.subr.bf16.mxu0 %v3799_v4  ;;  %v3837_v3 = vld [vmem:[%s4744_s1 + $0x730] sm:$0xff]  }
  0xd6   :  { %3531 = vmatprep.subr.bf16.mxu1 %v3800_v5  ;;  %v3838_v4 = vld [vmem:[%s4744_s1 + $0x7b0] sm:$0xff]   ;;  %v3839_v5 = vld [vmem:[%s4744_s1 + $0x778] sm:$0xff]  }
  0xd8   :  { %3510 = vmatpush3.bf16.msra.mxu0 %v3801_v6  ;;  %v3840_v6 = vld [vmem:[%s4744_s1 + $0x7f8] sm:$0xff]  }
  0xd9   :  { %3532 = vmatpush3.bf16.msra.mxu1 %v3802_v7  ;;  %3511 = vmatprep.subr.bf16.mxu0 %v3803_v8  ;;  %v3841_v7 = vld [vmem:[%s4744_s1 + $0x738] sm:$0xff]  }
  0xda   :  { %3533 = vmatprep.subr.bf16.mxu1 %v3804_v9  ;;  %v3842_v8 = vld [vmem:[%s4744_s1 + $0x7b8] sm:$0xff]   ;;  %v29_v9 = vld [vmem:[%s4745_s0 + $0x70] sm:$0xff] }
  0xdc   :  { %3512 = vmatpush3.bf16.msra.mxu0 %v3805_v10  ;;  %v45_v10 = vld [vmem:[%s4745_s0 + $0xf0] sm:$0xff] }
  0xdd   :  { %3534 = vmatpush3.bf16.msra.mxu1 %v3806_v11  ;;  %3513 = vmatprep.subr.bf16.mxu0 %v3807_v12  ;;  %v30_v11 = vld [vmem:[%s4745_s0 + $0x78] sm:$0xff] }
  0xde   :  { %3535 = vmatprep.subr.bf16.mxu1 %v3808_v13  ;;  %v46_v12 = vld [vmem:[%s4745_s0 + $0xf8] sm:$0xff]  ;;  %v2975_v13 = vcombine.low %v29_v9, %v45_v10 }
  0xdf   :  { %v2978_v16 = vcombine.high %v30_v11, %v46_v12 }
  0xe0   :  { %3514 = vmatpush3.bf16.msra.mxu0 %v3809_v14  ;;  %v2976_v14 = vcombine.high %v29_v9, %v45_v10 }
  0xe1   :  { %3536 = vmatpush3.bf16.msra.mxu1 %v3810_v15  ;;  %3543 = vmatprep.subr.bf16.mxu0 %v3811_v24  ;;  %v2977_v15 = vcombine.low %v30_v11, %v46_v12 }
  0xe2   :  { %3565 = vmatprep.subr.bf16.mxu1 %v3812_v25 }
  0xe3   :  { %2787 = vmatmul.mubr.bf16.vlgmr.msra.gmra.mrb[24].mxu0 %v2971_v19 }
  0xe4   :  { %2828 = vmatmul.mubr.bf16.vlgmr.msra.gmra.mrb[24].mxu1 %v2973_v22  ;;  %3544 = vmatpush3.bf16.msra.mxu0 %v3813_v26 }
  0xe5   :  { %3566 = vmatpush3.bf16.msra.mxu1 %v3814_v27  ;;  %3545 = vmatprep.subr.bf16.mxu0 %v3815_v28 }
  0xe6   :  { %3567 = vmatprep.subr.bf16.mxu1 %v3816_v29  ;;  %2868 = vmatprep.mubr.bf16.mxu0 %v2976_v14 }
  0xe7   :  { %2909 = vmatprep.mubr.bf16.mxu1 %v2978_v16 }
  0xe8   :  { %3546 = vmatpush3.bf16.msra.mxu0 %v3817_v30 }
  0xe9   :  { %3568 = vmatpush3.bf16.msra.mxu1 %v3818_v31  ;;  %3547 = vmatprep.subr.bf16.mxu0 %v3819_v32 }
  0xea   :  { %3569 = vmatprep.subr.bf16.mxu1 %v3820_v33 }
  0xec   :  { %3548 = vmatpush3.bf16.msra.mxu0 %v3821_v34 }
  0xed   :  { %3570 = vmatpush3.bf16.msra.mxu1 %v3822_v35  ;;  %3549 = vmatprep.subr.bf16.mxu0 %v3823_v36 }
  0xee   :  { %3571 = vmatprep.subr.bf16.mxu1 %v3824_v37 }
  0xf0   :  { %3550 = vmatpush3.bf16.msra.mxu0 %v3825_v39 }
  0xf1   :  { %3572 = vmatpush3.bf16.msra.mxu1 %v3826_v41  ;;  %3551 = vmatprep.subr.bf16.mxu0 %v3827_v43 }
  0xf2   :  { %3573 = vmatprep.subr.bf16.mxu1 %v3828_v46 }
  0xf4   :  { %3552 = vmatpush3.bf16.msra.mxu0 %v3829_v49 }
  0xf5   :  { %3574 = vmatpush3.bf16.msra.mxu1 %v3830_v51  ;;  %3553 = vmatprep.subr.bf16.mxu0 %v3831_v55 }
  0xf6   :  { %v3251_v38 = vpop.f32.mrb[0].mxu0  ;;  %3575 = vmatprep.subr.bf16.mxu1 %v3832_v58 }
  0xf7   :  { %v3273_v40 = vpop.f32.mrb[0].mxu1  ;;  %v3252_v42 = vpop.f32.mrb[1].mxu0 }
  0xf8   :  { %v3253_v44 = vadd.f32 %v3252_v42, %v3251_v38  ;;  %v3274_v45 = vpop.f32.mrb[1].mxu1  ;;  %v3254_v48 = vpop.f32.mrb[2].mxu0  ;;  %3554 = vmatpush3.bf16.msra.mxu0 %v3833_v61 }
  0xf9   :  { %v3275_v47 = vadd.f32 %v3274_v45, %v3273_v40  ;;  %v3276_v50 = vpop.f32.mrb[2].mxu1  ;;  %v3255_v53 = vpop.f32.mrb[3].mxu0  ;;  %3576 = vmatpush3.bf16.msra.mxu1 %v3834_v63  ;;  %3555 = vmatprep.subr.bf16.mxu0 %v3835_v1 }
  0xfa   :  { %v2297_v54 = vadd.f32 %v3253_v44, %v2946_v52  ;;  %v3256_v56 = vadd.f32 %v3255_v53, %v3254_v48  ;;  %v3277_v57 = vpop.f32.mrb[3].mxu1  ;;  %3577 = vmatprep.subr.bf16.mxu1 %v3836_v2 }
  0xfb   :  { %v3278_v59 = vadd.f32 %v3277_v57, %v3276_v50 }
  0xfc   :  { %v2338_v60 = vadd.f32 %v3275_v47, %v2297_v54  ;;  %v2300_v62 = vadd.f32 %v3256_v56, %v2946_v52  ;;  %3556 = vmatpush3.bf16.msra.mxu0 %v3837_v3 }
  0xfd   :  { %3578 = vmatpush3.bf16.msra.mxu1 %v3838_v4  ;;  %3557 = vmatprep.subr.bf16.mxu0 %v3839_v5 }
  0xfe   :  { %v2341_v0 = vadd.f32 %v3278_v59, %v2300_v62  ;;  %3579 = vmatprep.subr.bf16.mxu1 %v3840_v6 }
 0x100   :  { %3558 = vmatpush3.bf16.msra.mxu0 %v3841_v7 }
 0x101   :  { %3580 = vmatpush3.bf16.msra.mxu1 %v3842_v8 }
 0x103   :  { %2869 = vmatmul.mubr.bf16.vlgmr.msra.gmra.mrb[28].mxu0 %v2975_v13 }
 0x104   :  { %2910 = vmatmul.mubr.bf16.vlgmr.msra.gmra.mrb[28].mxu1 %v2977_v15 }
 0x116   :  { %v3295_v17 = vpop.f32.mrb[4].mxu0 }
 0x117   :  { %v3317_v18 = vpop.f32.mrb[4].mxu1  ;;  %v3296_v19 = vpop.f32.mrb[5].mxu0 }
 0x118   :  { %v3297_v20 = vadd.f32 %v3296_v19, %v3295_v17  ;;  %v3318_v21 = vpop.f32.mrb[5].mxu1  ;;  %v3298_v22 = vpop.f32.mrb[6].mxu0 }
 0x119   :  { %v3319_v23 = vadd.f32 %v3318_v21, %v3317_v18  ;;  %v3320_v24 = vpop.f32.mrb[6].mxu1  ;;  %v3299_v25 = vpop.f32.mrb[7].mxu0 }
 0x11a   :  { %v2379_v26 = vadd.f32 %v3297_v20, %v2338_v60  ;;  %v3300_v27 = vadd.f32 %v3299_v25, %v3298_v22  ;;  %v3321_v28 = vpop.f32.mrb[7].mxu1 }
 0x11b   :  { %v3322_v29 = vadd.f32 %v3321_v28, %v3320_v24 }
 0x11c   :  { %v2420_v30 = vadd.f32 %v3319_v23, %v2379_v26  ;;  %v2382_v31 = vadd.f32 %v3300_v27, %v2341_v0 }
 0x11e   :  { %v2423_v32 = vadd.f32 %v3322_v29, %v2382_v31 }
 0x136   :  { %v3339_v33 = vpop.f32.mrb[8].mxu0 }
 0x137   :  { %v3361_v34 = vpop.f32.mrb[8].mxu1  ;;  %v3340_v35 = vpop.f32.mrb[9].mxu0 }
 0x138   :  { %v3362_v36 = vpop.f32.mrb[9].mxu1  ;;  %v3341_v37 = vadd.f32 %v3340_v35, %v3339_v33  ;;  %v3342_v39 = vpop.f32.mrb[10].mxu0 }
 0x139   :  { %v3363_v38 = vadd.f32 %v3362_v36, %v3361_v34  ;;  %v3364_v40 = vpop.f32.mrb[10].mxu1  ;;  %v3343_v41 = vpop.f32.mrb[11].mxu0 }
 0x13a   :  { %v3365_v42 = vpop.f32.mrb[11].mxu1  ;;  %v2461_v43 = vadd.f32 %v3341_v37, %v2420_v30  ;;  %v3344_v44 = vadd.f32 %v3343_v41, %v3342_v39 }
 0x13b   :  { %v3366_v45 = vadd.f32 %v3365_v42, %v3364_v40 }
 0x13c   :  { %v2502_v46 = vadd.f32 %v3363_v38, %v2461_v43  ;;  %v2464_v47 = vadd.f32 %v3344_v44, %v2423_v32 }
 0x13e   :  { %v2505_v48 = vadd.f32 %v3366_v45, %v2464_v47 }
 0x156   :  { %v3383_v49 = vpop.f32.mrb[12].mxu0 }
 0x157   :  { %v3405_v50 = vpop.f32.mrb[12].mxu1  ;;  %v3384_v51 = vpop.f32.mrb[13].mxu0 }
 0x158   :  { %v3385_v52 = vadd.f32 %v3384_v51, %v3383_v49  ;;  %v3406_v53 = vpop.f32.mrb[13].mxu1  ;;  %v3386_v54 = vpop.f32.mrb[14].mxu0 }
 0x159   :  { %v3407_v55 = vadd.f32 %v3406_v53, %v3405_v50  ;;  %v3408_v56 = vpop.f32.mrb[14].mxu1  ;;  %v3387_v57 = vpop.f32.mrb[15].mxu0 }
 0x15a   :  { %v2543_v58 = vadd.f32 %v3385_v52, %v2502_v46  ;;  %v3388_v59 = vadd.f32 %v3387_v57, %v3386_v54  ;;  %v3409_v60 = vpop.f32.mrb[15].mxu1 }
 0x15b   :  { %v3410_v61 = vadd.f32 %v3409_v60, %v3408_v56 }
 0x15c   :  { %v2584_v62 = vadd.f32 %v3407_v55, %v2543_v58  ;;  %v2546_v63 = vadd.f32 %v3388_v59, %v2505_v48 }
 0x15e   :  { %v2587_v0 = vadd.f32 %v3410_v61, %v2546_v63 }
 0x176   :  { %v3427_v1 = vpop.f32.mrb[16].mxu0 }
 0x177   :  { %v3449_v2 = vpop.f32.mrb[16].mxu1  ;;  %v3428_v3 = vpop.f32.mrb[17].mxu0 }
 0x178   :  { %v3429_v4 = vadd.f32 %v3428_v3, %v3427_v1  ;;  %v3450_v5 = vpop.f32.mrb[17].mxu1  ;;  %v3430_v6 = vpop.f32.mrb[18].mxu0 }
 0x179   :  { %v3451_v7 = vadd.f32 %v3450_v5, %v3449_v2  ;;  %v3452_v8 = vpop.f32.mrb[18].mxu1  ;;  %v3431_v9 = vpop.f32.mrb[19].mxu0 }
 0x17a   :  { %v2625_v10 = vadd.f32 %v3429_v4, %v2584_v62  ;;  %v3432_v11 = vadd.f32 %v3431_v9, %v3430_v6  ;;  %v3453_v12 = vpop.f32.mrb[19].mxu1 }
 0x17b   :  { %v3454_v13 = vadd.f32 %v3453_v12, %v3452_v8 }
 0x17c   :  { %v2666_v14 = vadd.f32 %v3451_v7, %v2625_v10  ;;  %v2628_v15 = vadd.f32 %v3432_v11, %v2587_v0 }
 0x17e   :  { %v2669_v16 = vadd.f32 %v3454_v13, %v2628_v15 }
 0x196   :  { %v3471_v17 = vpop.f32.mrb[20].mxu0 }
 0x197   :  { %v3493_v18 = vpop.f32.mrb[20].mxu1  ;;  %v3472_v19 = vpop.f32.mrb[21].mxu0 }
 0x198   :  { %v3494_v20 = vpop.f32.mrb[21].mxu1  ;;  %v3473_v21 = vadd.f32 %v3472_v19, %v3471_v17  ;;  %v3474_v23 = vpop.f32.mrb[22].mxu0 }
 0x199   :  { %v3495_v22 = vadd.f32 %v3494_v20, %v3493_v18  ;;  %v3496_v24 = vpop.f32.mrb[22].mxu1  ;;  %v3475_v25 = vpop.f32.mrb[23].mxu0 }
 0x19a   :  { %v3497_v26 = vpop.f32.mrb[23].mxu1  ;;  %v2707_v27 = vadd.f32 %v3473_v21, %v2666_v14  ;;  %v3476_v28 = vadd.f32 %v3475_v25, %v3474_v23 }
 0x19b   :  { %v3498_v29 = vadd.f32 %v3497_v26, %v3496_v24 }
 0x19c   :  { %v2748_v30 = vadd.f32 %v3495_v22, %v2707_v27  ;;  %v2710_v31 = vadd.f32 %v3476_v28, %v2669_v16 }
 0x19e   :  { %v2751_v32 = vadd.f32 %v3498_v29, %v2710_v31 }
 0x1b6   :  { %v3515_v33 = vpop.f32.mrb[24].mxu0 }
 0x1b7   :  { %v3537_v34 = vpop.f32.mrb[24].mxu1  ;;  %v3516_v35 = vpop.f32.mrb[25].mxu0 }
 0x1b8   :  { %v3517_v36 = vadd.f32 %v3516_v35, %v3515_v33  ;;  %v3538_v37 = vpop.f32.mrb[25].mxu1  ;;  %v3518_v38 = vpop.f32.mrb[26].mxu0 }
 0x1b9   :  { %v3539_v39 = vadd.f32 %v3538_v37, %v3537_v34  ;;  %v3540_v40 = vpop.f32.mrb[26].mxu1  ;;  %v3519_v41 = vpop.f32.mrb[27].mxu0 }
 0x1ba   :  { %v2789_v42 = vadd.f32 %v3517_v36, %v2748_v30  ;;  %v3520_v43 = vadd.f32 %v3519_v41, %v3518_v38  ;;  %v3541_v44 = vpop.f32.mrb[27].mxu1 }
 0x1bb   :  { %v3542_v45 = vadd.f32 %v3541_v44, %v3540_v40 }
 0x1bc   :  { %v2830_v46 = vadd.f32 %v3539_v39, %v2789_v42  ;;  %v2792_v47 = vadd.f32 %v3520_v43, %v2751_v32 }
 0x1be   :  { %v2833_v48 = vadd.f32 %v3542_v45, %v2792_v47 }
 0x1d6   :  { %v3559_v49 = vpop.f32.mrb[28].mxu0 }
 0x1d7   :  { %v3581_v50 = vpop.f32.mrb[28].mxu1  ;;  %v3560_v51 = vpop.f32.mrb[29].mxu0 }
 0x1d8   :  { %v3582_v52 = vpop.f32.mrb[29].mxu1  ;;  %v3561_v53 = vadd.f32 %v3560_v51, %v3559_v49  ;;  %v3562_v55 = vpop.f32.mrb[30].mxu0 }
 0x1d9   :  { %v3583_v54 = vadd.f32 %v3582_v52, %v3581_v50  ;;  %v3584_v56 = vpop.f32.mrb[30].mxu1  ;;  %v3563_v57 = vpop.f32.mrb[31].mxu0 }
 0x1da   :  { %v3585_v58 = vpop.f32.mrb[31].mxu1  ;;  %v2871_v59 = vadd.f32 %v3561_v53, %v2830_v46  ;;  %v3564_v60 = vadd.f32 %v3563_v57, %v3562_v55 }
 0x1db   :  { %v3586_v61 = vadd.f32 %v3585_v58, %v3584_v56 }
 0x1dc   :  { %v2912_v62 = vadd.f32 %v3583_v54, %v2871_v59  ;;  %v2874_v63 = vadd.f32 %v3564_v60, %v2833_v48 }
 0x1de   :  { %v2918_v0 = vand.u32 2147483647, %v2912_v62  ;;  %v2915_v1 = vadd.f32 %v3586_v61, %v2874_v63  ;;  %vm2926_vm0 = vcmp.ge.f32.partialorder %v2912_v62, 0.0 }
 0x1e0   :  { %v2920_v2 = vsub.f32 0.0, %v2918_v0  ;;  %v2919_v3 = vand.u32 2147483647, %v2915_v1  ;;  %vm2927_vm1 = vcmp.ge.f32.partialorder %v2915_v1, 0.0 }
 0x1e2   :  { %v2922_v4 = vmul.f32 1.442695, %v2920_v2  ;;  %v2921_v5 = vsub.f32 0.0, %v2919_v3 }
 0x1e4   :  { %3843 = vpow2.f32 %v2922_v4  ;;  %v2924_v6 = vmul.f32 1.442695, %v2921_v5 }
 0x1e6   :  { %3845 = vpow2.f32 %v2924_v6 }
 0x1ee   :  { %v3844_v7 = vpop.eup %3843 }
 0x1ef   :  { %v2930_v8 = vadd.f32 1.0, %v3844_v7  ;;  %v2928_v12 = vsel %vm2926_vm0, 1.0, %v3844_v7 }
 0x1f0   :  { %v3846_v9 = vpop.eup %3845 }
 0x1f1   :  { %3847 = vrcp.f32 %v2930_v8  ;;  %v2931_v10 = vadd.f32 1.0, %v3846_v9  ;;  %v2929_v15 = vsel %vm2927_vm1, 1.0, %v3846_v9 }
 0x1f3   :  { %3849 = vrcp.f32 %v2931_v10 }
 0x1fb   :  { %v3848_v11 = vpop.eup %3847 }
 0x1fc   :  { %v2934_v13 = vmul.f32 %v3848_v11, %v2928_v12 }
 0x1fd   :  { %v3850_v14 = vpop.eup %3849 }
 0x1fe   :  { %v2936_v16 = vmax.f32 %v2934_v13, 0.0  ;;  %v2935_v17 = vmul.f32 %v3850_v14, %v2929_v15 }
 0x200   :  { %v2938_v18 = vmin.f32 %v2936_v16, 1.0  ;;  %v2937_v19 = vmax.f32 %v2935_v17, 0.0 }
 0x202   :  { %2940 = vst [vmem:[%s4747_s3] sm:$0xff] %v2938_v18  ;;  %v2939_v20 = vmin.f32 %v2937_v19, 1.0 }
 0x204   :  { %2941 = vst [vmem:[%s4747_s3 + $0x8] sm:$0xff] %v2939_v20 }

</bundles_post_ra>
